<compile_context>
chip_gen: v7x
topology: tpu7x:2x2x1
jax: 0.10.0
libtpu: 0.0.40
codegen_flags: <defaults>
</compile_context>

<pallas_src>
import jax
import jax.numpy as jnp
from jax.experimental import pallas as pl
from jax.experimental.pallas import tpu as pltpu

D_IN = 8194             # fixed by the module (Linear(8194, n_hidden))
D_PAD = 8448            # 66 * 128 : lane-aligned, 2-way chunkable, %32 == 0 (int8)
N_HIDDEN = 128          # n_hidden

NK1 = 2                 # fc1 reduction (K) chunks
NK2 = 2                 # fc2 output-column chunks
GRID = NK1 + NK2        # 4 grid steps total (<= 4 per review: ~0.35 us/step)

K_CH = D_PAD // NK1     # 4224
COL_CH = D_PAD // NK2   # 4224
assert K_CH % 128 == 0 and K_CH % 32 == 0 and COL_CH % 128 == 0


def lstm_model_kernel(x_ref, w1_ref, s1_ref,
                      wih_ref, whh_ref, blp_ref,
                      h0_ref, c0_ref,
                      w2_ref, s2_ref, b2_ref,
                      out_ref, h_ref, c_ref,
                      y_acc):
    i = pl.program_id(0)
    H = h0_ref.shape[-1]

    # ---------------- fc1: accumulate one K-chunk into y_acc -----------------
    @pl.when(i == 0)
    def _():
        y_acc[...] = jnp.zeros_like(y_acc)

    @pl.when(i < NK1)
    def _():
        # (1, K_CH) bf16 @ (K_CH, H) int8->bf16, f32 accumulation on the MXU.
        y_acc[...] += jnp.dot(x_ref[...],
                              w1_ref[...].astype(jnp.bfloat16),
                              preferred_element_type=jnp.float32)

    # ------------- LSTM single step (on the last fc1 chunk) ------------------
    @pl.when(i == NK1 - 1)
    def _():
        # Per-output-channel dequant; b1 is folded into blp (= bl + b1 @ Wih).
        y = y_acc[...] * s1_ref[...]
        # Gate matmuls kept in f32 (tiny) for recurrent fidelity; no concat.
        z = (jnp.dot(y, wih_ref[...].astype(jnp.float32),
                     preferred_element_type=jnp.float32)
             + jnp.dot(h0_ref[...], whh_ref[...].astype(jnp.float32),
                       preferred_element_type=jnp.float32)
             + blp_ref[...])
        i_g = jax.nn.sigmoid(z[:, 0 * H:1 * H])
        f_g = jax.nn.sigmoid(z[:, 1 * H:2 * H])
        g_g = jnp.tanh(z[:, 2 * H:3 * H])
        o_g = jax.nn.sigmoid(z[:, 3 * H:4 * H])
        c_new = f_g * c0_ref[...] + i_g * g_g
        h_new = o_g * jnp.tanh(c_new)
        # Constant-index output blocks stay resident in VMEM -> reused below.
        h_ref[...] = h_new[None]
        c_ref[...] = c_new[None]

    # ---------------- fc2: one output-column chunk per later step ------------
    @pl.when(i >= NK1)
    def _():
        h = h_ref[0].astype(jnp.bfloat16)                      # (1, H), resident
        out_ref[...] = (jnp.dot(h, w2_ref[...].astype(jnp.bfloat16),
                                preferred_element_type=jnp.float32)
                        * s2_ref[...] + b2_ref[...])


def _quantize_per_col(w):
    """Symmetric per-output-channel int8 quantization. w: (K, N) f32."""
    amax = jnp.max(jnp.abs(w), axis=0, keepdims=True)
    scale = jnp.maximum(amax, 1e-12) / 127.0
    q = jnp.clip(jnp.round(w / scale), -127, 127).astype(jnp.int8)
    return q, scale.astype(jnp.float32)


def prepare_params(params):
    """One-time (outside the jitted forward): pad, quantize, fold, cast."""
    w1, b1, wih, whh, bl, w2, b2 = params
    # fc1 weight: zero-pad K to D_PAD (pads contribute exactly 0), int8 + scale.
    w1_p = jnp.zeros((D_PAD, N_HIDDEN), jnp.float32).at[:D_IN, :].set(w1)
    w1_q, s1 = _quantize_per_col(w1_p)
    # fc2 weight / bias: zero-pad output columns to D_PAD, int8 + scale.
    w2_p = jnp.zeros((N_HIDDEN, D_PAD), jnp.float32).at[:, :D_IN].set(w2)
    w2_q, s2 = _quantize_per_col(w2_p)
    b2_p = jnp.zeros((1, D_PAD), jnp.float32).at[:, :D_IN].set(b2)
    # Fold fc1 bias into the gate bias: z = (x@W1)@Wih + h0@Whh + (bl + b1@Wih).
    blp = (bl + b1 @ wih).astype(jnp.float32)
    return (w1_q, s1,
            wih.astype(jnp.bfloat16), whh.astype(jnp.bfloat16), blp,
            w2_q, s2, b2_p)


@jax.jit
def lstm_model_forward(x, prepared, h0, c0):
    """x: (1, 8194) f32.  Returns (out (1,1,8194), h (1,1,H), c (1,1,H))."""
    w1_q, s1, wih, whh, blp, w2_q, s2, b2_p = prepared

    # Per-call input pad + bf16 cast (17 KB DMA; everything else is prepared).
    x_p = jnp.zeros((1, D_PAD), jnp.bfloat16).at[:, :D_IN].set(
        x.astype(jnp.bfloat16))

    in_specs = [
        pl.BlockSpec((1, K_CH),
                     lambda i: (0, jnp.minimum(i, NK1 - 1))),            # x chunk
        pl.BlockSpec((K_CH, N_HIDDEN),
                     lambda i: (jnp.minimum(i, NK1 - 1), 0)),            # W1 chunk (i8)
        pl.BlockSpec((1, N_HIDDEN), lambda i: (0, 0)),                   # s1
        pl.BlockSpec((N_HIDDEN, 4 * N_HIDDEN), lambda i: (0, 0)),        # Wih (bf16)
        pl.BlockSpec((N_HIDDEN, 4 * N_HIDDEN), lambda i: (0, 0)),        # Whh (bf16)
        pl.BlockSpec((1, 4 * N_HIDDEN), lambda i: (0, 0)),               # fused gate bias
        pl.BlockSpec((1, N_HIDDEN), lambda i: (0, 0)),                   # h0
        pl.BlockSpec((1, N_HIDDEN), lambda i: (0, 0)),                   # c0
        pl.BlockSpec((N_HIDDEN, COL_CH),
                     lambda i: (0, jnp.maximum(i - NK1, 0))),            # W2 col chunk (i8)
        pl.BlockSpec((1, COL_CH),
                     lambda i: (0, jnp.maximum(i - NK1, 0))),            # s2 col chunk
        pl.BlockSpec((1, COL_CH),
                     lambda i: (0, jnp.maximum(i - NK1, 0))),            # b2 col chunk
    ]
    out_specs = (
        pl.BlockSpec((1, COL_CH),
                     lambda i: (0, jnp.maximum(i - NK1, 0))),            # out col chunk
        pl.BlockSpec((1, 1, N_HIDDEN), lambda i: (0, 0, 0)),             # h
        pl.BlockSpec((1, 1, N_HIDDEN), lambda i: (0, 0, 0)),             # c
    )
    out_shapes = (
        jax.ShapeDtypeStruct((1, D_PAD), jnp.float32),
        jax.ShapeDtypeStruct((1, 1, N_HIDDEN), jnp.float32),
        jax.ShapeDtypeStruct((1, 1, N_HIDDEN), jnp.float32),
    )

    out_pad, h_new, c_new = pl.pallas_call(
        lstm_model_kernel,
        out_shape=out_shapes,
        grid=(GRID,),
        in_specs=in_specs,
        out_specs=out_specs,
        scratch_shapes=[pltpu.VMEM((1, N_HIDDEN), jnp.float32)],         # y accumulator
        compiler_params=pltpu.CompilerParams(
            dimension_semantics=("arbitrary",),
            vmem_limit_bytes=32 * 1024 * 1024),
        cost_estimate=pl.CostEstimate(
            flops=4_600_000, transcendentals=640, bytes_accessed=2_600_000),
    )(x_p, w1_q, s1, wih, whh, blp, h0, c0, w2_q, s2, b2_p)

    out = out_pad[:, :D_IN].reshape(1, 1, D_IN)      # matches LSTM output (1,1,8194)
    return out, h_new, c_new


def init_params(key, n_hidden=N_HIDDEN):
    """Deterministic synthetic parameters (shapes match the PyTorch module)."""
    ks = jax.random.split(key, 7)
    s = 0.02
    w1 = s * jax.random.normal(ks[0], (D_IN, n_hidden), jnp.float32)           # fc1 W^T
    b1 = s * jax.random.normal(ks[1], (1, n_hidden), jnp.float32)
    wih = s * jax.random.normal(ks[2], (n_hidden, 4 * n_hidden), jnp.float32)  # W_ih^T
    whh = s * jax.random.normal(ks[3], (n_hidden, 4 * n_hidden), jnp.float32)  # W_hh^T
    bl = s * jax.random.normal(ks[4], (1, 4 * n_hidden), jnp.float32)          # b_ih + b_hh
    w2 = s * jax.random.normal(ks[5], (n_hidden, D_IN), jnp.float32)           # fc2 W^T
    b2 = s * jax.random.normal(ks[6], (1, D_IN), jnp.float32)
    return (w1, b1, wih, whh, bl, w2, b2)


def reference_forward(x, params, h0, c0):
    """Pure-JAX f32 reference mirroring the PyTorch forward (eval mode)."""
    w1, b1, wih, whh, bl, w2, b2 = params
    y = x @ w1 + b1
    z = y @ wih + h0 @ whh + bl
    H = h0.shape[-1]
    i = jax.nn.sigmoid(z[:, :H])
    f = jax.nn.sigmoid(z[:, H:2 * H])
    g = jnp.tanh(z[:, 2 * H:3 * H])
    o = jax.nn.sigmoid(z[:, 3 * H:])
    c = f * c0 + i * g
    h = o * jnp.tanh(c)
    return (h @ w2 + b2).reshape(1, 1, D_IN), h, c


if __name__ == "__main__":
    key = jax.random.PRNGKey(0)
    kx, kx2, kp = jax.random.split(key, 3)

    x = jax.random.normal(kx, (1, D_IN), jnp.float32)
    params = init_params(kp)
    prepared = prepare_params(params)   # pad + quantize + fold ONCE, outside jit

    # Step 1: self.hidden is None -> LSTM starts from zero state.
    h0 = jnp.zeros((1, N_HIDDEN), jnp.float32)
    c0 = jnp.zeros((1, N_HIDDEN), jnp.float32)
    out, h1, c1 = lstm_model_forward(x, prepared, h0, c0)
    jax.block_until_ready((out, h1, c1))

    ref_out, ref_h, ref_c = reference_forward(x, params, h0, c0)
    assert out.shape == (1, 1, D_IN)
    # Tolerance accounts for int8 weights + bf16 fc1/fc2 activations
    # (f32 accumulation and f32 gate activations retained).
    err_out = float(jnp.max(jnp.abs(out - ref_out)))
    err_h = float(jnp.max(jnp.abs(h1.reshape(1, -1) - ref_h)))
    err_c = float(jnp.max(jnp.abs(c1.reshape(1, -1) - ref_c)))
    assert err_out < 3e-2, f"output mismatch vs reference: {err_out}"
    assert err_h < 3e-2 and err_c < 3e-2, f"state mismatch: {err_h}, {err_c}"

    # Step 2: exercise the recurrent path (self.hidden != None).
    x2 = jax.random.normal(kx2, (1, D_IN), jnp.float32)
    out2, h2, c2 = lstm_model_forward(x2, prepared,
                                      h1.reshape(1, N_HIDDEN),
                                      c1.reshape(1, N_HIDDEN))
    jax.block_until_ready((out2, h2, c2))
    ref_out2, ref_h2, ref_c2 = reference_forward(x2, params, ref_h, ref_c)
    err_out2 = float(jnp.max(jnp.abs(out2 - ref_out2)))
    err_h2 = float(jnp.max(jnp.abs(h2.reshape(1, -1) - ref_h2)))
    assert err_out2 < 3e-2 and err_h2 < 3e-2, \
        f"recurrent-step mismatch: {err_out2}, {err_h2}"

    print("KERNEL_OK")
</pallas_src>

<mosaic_0001>
module attributes {stable_mosaic.version = 11 : i64} {
  func.func @lstm_model_kernel(%arg0: i32, %arg1: memref<1x4224xbf16, #tpu.memory_space<vmem>>, %arg2: memref<4224x128xi8, #tpu.memory_space<vmem>>, %arg3: memref<1x128xf32, #tpu.memory_space<vmem>>, %arg4: memref<128x512xbf16, #tpu.memory_space<vmem>>, %arg5: memref<128x512xbf16, #tpu.memory_space<vmem>>, %arg6: memref<1x512xf32, #tpu.memory_space<vmem>>, %arg7: memref<1x128xf32, #tpu.memory_space<vmem>>, %arg8: memref<1x128xf32, #tpu.memory_space<vmem>>, %arg9: memref<128x4224xi8, #tpu.memory_space<vmem>>, %arg10: memref<1x4224xf32, #tpu.memory_space<vmem>>, %arg11: memref<1x4224xf32, #tpu.memory_space<vmem>>, %arg12: memref<1x4224xf32, #tpu.memory_space<vmem>>, %arg13: memref<1x1x128xf32, #tpu.memory_space<vmem>>, %arg14: memref<1x1x128xf32, #tpu.memory_space<vmem>>, %arg15: memref<1x128xf32, #tpu.memory_space<vmem>>) attributes {dimension_semantics = [#tpu.dimension_semantics<arbitrary>], iteration_bounds = array<i64: 4>, scalar_prefetch = 0 : i64, scratch_operands = 1 : i64, tpu.core_type = #tpu.core_type<tc>, window_params = [{transform_indices = @transform_0, window_bounds = array<i64: 1, 4224>}, {transform_indices = @transform_1, window_bounds = array<i64: 4224, 128>}, {pipeline_mode = #tpu.pipeline_mode<synchronous>, transform_indices = @transform_2, window_bounds = array<i64: 1, 128>}, {pipeline_mode = #tpu.pipeline_mode<synchronous>, transform_indices = @transform_3, window_bounds = array<i64: 128, 512>}, {pipeline_mode = #tpu.pipeline_mode<synchronous>, transform_indices = @transform_4, window_bounds = array<i64: 128, 512>}, {pipeline_mode = #tpu.pipeline_mode<synchronous>, transform_indices = @transform_5, window_bounds = array<i64: 1, 512>}, {pipeline_mode = #tpu.pipeline_mode<synchronous>, transform_indices = @transform_6, window_bounds = array<i64: 1, 128>}, {pipeline_mode = #tpu.pipeline_mode<synchronous>, transform_indices = @transform_7, window_bounds = array<i64: 1, 128>}, {transform_indices = @transform_8, window_bounds = array<i64: 128, 4224>}, {transform_indices = @transform_9, window_bounds = array<i64: 1, 4224>}, {transform_indices = @transform_10, window_bounds = array<i64: 1, 4224>}, {transform_indices = @transform_11, window_bounds = array<i64: 1, 4224>}, {pipeline_mode = #tpu.pipeline_mode<synchronous>, transform_indices = @transform_12, window_bounds = array<i64: 1, 1, 128>}, {pipeline_mode = #tpu.pipeline_mode<synchronous>, transform_indices = @transform_13, window_bounds = array<i64: 1, 1, 128>}]} {
    %c0_i32 = arith.constant 0 : i32
    %0 = arith.cmpi eq, %arg0, %c0_i32 : i32
    %1 = arith.extui %0 : i1 to i32
    %c0_i32_0 = arith.constant 0 : i32
    %2 = arith.cmpi ne, %1, %c0_i32_0 : i32
    scf.if %2 {
      %cst = arith.constant 0.000000e+00 : f32
      %12 = vector.broadcast %cst : f32 to vector<1x128xf32>
      %c0 = arith.constant 0 : index
      %c0_5 = arith.constant 0 : index
      %13 = vector.load %arg15[%c0, %c0_5] : memref<1x128xf32, #tpu.memory_space<vmem>>, vector<1x128xf32>
      tpu.vector_store %arg15[%c0, %c0_5], %12 {strides = array<i32>} : memref<1x128xf32, #tpu.memory_space<vmem>>, vector<1x128xf32>,
    } else {
    }
    %c2_i32 = arith.constant 2 : i32
    %3 = arith.cmpi slt, %arg0, %c2_i32 : i32
    %4 = arith.extui %3 : i1 to i32
    %c0_i32_1 = arith.constant 0 : i32
    %5 = arith.cmpi ne, %4, %c0_i32_1 : i32
    scf.if %5 {
      %c0 = arith.constant 0 : index
      %c0_5 = arith.constant 0 : index
      %12 = vector.load %arg15[%c0, %c0_5] : memref<1x128xf32, #tpu.memory_space<vmem>>, vector<1x128xf32>
      %c0_6 = arith.constant 0 : index
      %c0_7 = arith.constant 0 : index
      %13 = vector.load %arg1[%c0_6, %c0_7] : memref<1x4224xbf16, #tpu.memory_space<vmem>>, vector<1x4224xbf16>
      %c0_8 = arith.constant 0 : index
      %c0_9 = arith.constant 0 : index
      %14 = vector.load %arg2[%c0_8, %c0_9] : memref<4224x128xi8, #tpu.memory_space<vmem>>, vector<4224x128xi8>
      %15 = arith.sitofp %14 : vector<4224x128xi8> to vector<4224x128xbf16>
      %cst = arith.constant dense<0.000000e+00> : vector<1x128xf32>
      %16 = tpu.matmul %13, %15, %cst {dimension_numbers = #tpu.dot_dimension_numbers<[1], [0], [0], [1], [0, 0, 1, 1], [], []>} : vector<1x4224xbf16>, vector<4224x128xbf16>, vector<1x128xf32> -> vector<1x128xf32>
      %17 = arith.addf %12, %16 : vector<1x128xf32>
      %c0_10 = arith.constant 0 : index
      %c0_11 = arith.constant 0 : index
      %18 = vector.load %arg15[%c0_10, %c0_11] : memref<1x128xf32, #tpu.memory_space<vmem>>, vector<1x128xf32>
      tpu.vector_store %arg15[%c0_10, %c0_11], %17 {strides = array<i32>} : memref<1x128xf32, #tpu.memory_space<vmem>>, vector<1x128xf32>,
    } else {
    }
    %c1_i32 = arith.constant 1 : i32
    %6 = arith.cmpi eq, %arg0, %c1_i32 : i32
    %7 = arith.extui %6 : i1 to i32
    %c0_i32_2 = arith.constant 0 : i32
    %8 = arith.cmpi ne, %7, %c0_i32_2 : i32
    scf.if %8 {
      %c0 = arith.constant 0 : index
      %c0_5 = arith.constant 0 : index
      %12 = vector.load %arg15[%c0, %c0_5] : memref<1x128xf32, #tpu.memory_space<vmem>>, vector<1x128xf32>
      %c0_6 = arith.constant 0 : index
      %c0_7 = arith.constant 0 : index
      %13 = vector.load %arg3[%c0_6, %c0_7] : memref<1x128xf32, #tpu.memory_space<vmem>>, vector<1x128xf32>
      %14 = arith.mulf %12, %13 : vector<1x128xf32>
      %c0_8 = arith.constant 0 : index
      %c0_9 = arith.constant 0 : index
      %15 = vector.load %arg4[%c0_8, %c0_9] : memref<128x512xbf16, #tpu.memory_space<vmem>>, vector<128x512xbf16>
      %16 = arith.extf %15 : vector<128x512xbf16> to vector<128x512xf32>
      %cst = arith.constant dense<0.000000e+00> : vector<1x512xf32>
      %17 = tpu.matmul %14, %16, %cst {dimension_numbers = #tpu.dot_dimension_numbers<[1], [0], [0], [1], [0, 0, 1, 1], [], []>} : vector<1x128xf32>, vector<128x512xf32>, vector<1x512xf32> -> vector<1x512xf32>
      %c0_10 = arith.constant 0 : index
      %c0_11 = arith.constant 0 : index
      %18 = vector.load %arg7[%c0_10, %c0_11] : memref<1x128xf32, #tpu.memory_space<vmem>>, vector<1x128xf32>
      %c0_12 = arith.constant 0 : index
      %c0_13 = arith.constant 0 : index
      %19 = vector.load %arg5[%c0_12, %c0_13] : memref<128x512xbf16, #tpu.memory_space<vmem>>, vector<128x512xbf16>
      %20 = arith.extf %19 : vector<128x512xbf16> to vector<128x512xf32>
      %cst_14 = arith.constant dense<0.000000e+00> : vector<1x512xf32>
      %21 = tpu.matmul %18, %20, %cst_14 {dimension_numbers = #tpu.dot_dimension_numbers<[1], [0], [0], [1], [0, 0, 1, 1], [], []>} : vector<1x128xf32>, vector<128x512xf32>, vector<1x512xf32> -> vector<1x512xf32>
      %22 = arith.addf %17, %21 : vector<1x512xf32>
      %c0_15 = arith.constant 0 : index
      %c0_16 = arith.constant 0 : index
      %23 = vector.load %arg6[%c0_15, %c0_16] : memref<1x512xf32, #tpu.memory_space<vmem>>, vector<1x512xf32>
      %24 = arith.addf %22, %23 : vector<1x512xf32>
      %25 = vector.extract_strided_slice %24 {offsets = [0, 0], sizes = [1, 128], strides = [1, 1]} : vector<1x512xf32> to vector<1x128xf32>
      %26 = arith.negf %25 : vector<1x128xf32>
      %27 = math.exp %26 : vector<1x128xf32>
      %cst_17 = arith.constant 1.000000e+00 : f32
      %28 = vector.broadcast %cst_17 : f32 to vector<1x128xf32>
      %29 = arith.addf %28, %27 : vector<1x128xf32>
      %30 = arith.divf %28, %29 : vector<1x128xf32>
      %31 = vector.extract_strided_slice %24 {offsets = [0, 128], sizes = [1, 128], strides = [1, 1]} : vector<1x512xf32> to vector<1x128xf32>
      %32 = arith.negf %31 : vector<1x128xf32>
      %33 = math.exp %32 : vector<1x128xf32>
      %cst_18 = arith.constant 1.000000e+00 : f32
      %34 = vector.broadcast %cst_18 : f32 to vector<1x128xf32>
      %35 = arith.addf %34, %33 : vector<1x128xf32>
      %36 = arith.divf %34, %35 : vector<1x128xf32>
      %37 = vector.extract_strided_slice %24 {offsets = [0, 256], sizes = [1, 128], strides = [1, 1]} : vector<1x512xf32> to vector<1x128xf32>
      %38 = math.tanh %37 : vector<1x128xf32>
      %39 = vector.extract_strided_slice %24 {offsets = [0, 384], sizes = [1, 128], strides = [1, 1]} : vector<1x512xf32> to vector<1x128xf32>
      %40 = arith.negf %39 : vector<1x128xf32>
      %41 = math.exp %40 : vector<1x128xf32>
      %cst_19 = arith.constant 1.000000e+00 : f32
      %42 = vector.broadcast %cst_19 : f32 to vector<1x128xf32>
      %43 = arith.addf %42, %41 : vector<1x128xf32>
      %44 = arith.divf %42, %43 : vector<1x128xf32>
      %c0_20 = arith.constant 0 : index
      %c0_21 = arith.constant 0 : index
      %45 = vector.load %arg8[%c0_20, %c0_21] : memref<1x128xf32, #tpu.memory_space<vmem>>, vector<1x128xf32>
      %46 = arith.mulf %36, %45 : vector<1x128xf32>
      %47 = arith.mulf %30, %38 : vector<1x128xf32>
      %48 = arith.addf %46, %47 : vector<1x128xf32>
      %49 = math.tanh %48 : vector<1x128xf32>
      %50 = arith.mulf %44, %49 : vector<1x128xf32>
      %51 = vector.shape_cast %50 : vector<1x128xf32> to vector<1x1x128xf32>
      %c0_22 = arith.constant 0 : index
      %c0_23 = arith.constant 0 : index
      %c0_24 = arith.constant 0 : index
      %52 = vector.load %arg13[%c0_22, %c0_23, %c0_24] : memref<1x1x128xf32, #tpu.memory_space<vmem>>, vector<1x1x128xf32>
      tpu.vector_store %arg13[%c0_22, %c0_23, %c0_24], %51 {strides = array<i32>} : memref<1x1x128xf32, #tpu.memory_space<vmem>>, vector<1x1x128xf32>,
      %53 = vector.shape_cast %48 : vector<1x128xf32> to vector<1x1x128xf32>
      %c0_25 = arith.constant 0 : index
      %c0_26 = arith.constant 0 : index
      %c0_27 = arith.constant 0 : index
      %54 = vector.load %arg14[%c0_25, %c0_26, %c0_27] : memref<1x1x128xf32, #tpu.memory_space<vmem>>, vector<1x1x128xf32>
      tpu.vector_store %arg14[%c0_25, %c0_26, %c0_27], %53 {strides = array<i32>} : memref<1x1x128xf32, #tpu.memory_space<vmem>>, vector<1x1x128xf32>,
    } else {
    }
    %c2_i32_3 = arith.constant 2 : i32
    %9 = arith.cmpi sge, %arg0, %c2_i32_3 : i32
    %10 = arith.extui %9 : i1 to i32
    %c0_i32_4 = arith.constant 0 : i32
    %11 = arith.cmpi ne, %10, %c0_i32_4 : i32
    scf.if %11 {
      %c0 = arith.constant 0 : index
      %c0_5 = arith.constant 0 : index
      %c0_6 = arith.constant 0 : index
      %12 = vector.load %arg13[%c0, %c0_5, %c0_6] : memref<1x1x128xf32, #tpu.memory_space<vmem>>, vector<1x1x128xf32>
      %13 = vector.shape_cast %12 : vector<1x1x128xf32> to vector<1x128xf32>
      %14 = arith.truncf %13 : vector<1x128xf32> to vector<1x128xbf16>
      %c0_7 = arith.constant 0 : index
      %c0_8 = arith.constant 0 : index
      %15 = vector.load %arg9[%c0_7, %c0_8] : memref<128x4224xi8, #tpu.memory_space<vmem>>, vector<128x4224xi8>
      %16 = arith.sitofp %15 : vector<128x4224xi8> to vector<128x4224xbf16>
      %cst = arith.constant dense<0.000000e+00> : vector<1x4224xf32>
      %17 = tpu.matmul %14, %16, %cst {dimension_numbers = #tpu.dot_dimension_numbers<[1], [0], [0], [1], [0, 0, 1, 1], [], []>} : vector<1x128xbf16>, vector<128x4224xbf16>, vector<1x4224xf32> -> vector<1x4224xf32>
      %c0_9 = arith.constant 0 : index
      %c0_10 = arith.constant 0 : index
      %18 = vector.load %arg10[%c0_9, %c0_10] : memref<1x4224xf32, #tpu.memory_space<vmem>>, vector<1x4224xf32>
      %19 = arith.mulf %17, %18 : vector<1x4224xf32>
      %c0_11 = arith.constant 0 : index
      %c0_12 = arith.constant 0 : index
      %20 = vector.load %arg11[%c0_11, %c0_12] : memref<1x4224xf32, #tpu.memory_space<vmem>>, vector<1x4224xf32>
      %21 = arith.addf %19, %20 : vector<1x4224xf32>
      %c0_13 = arith.constant 0 : index
      %c0_14 = arith.constant 0 : index
      %22 = vector.load %arg12[%c0_13, %c0_14] : memref<1x4224xf32, #tpu.memory_space<vmem>>, vector<1x4224xf32>
      tpu.vector_store %arg12[%c0_13, %c0_14], %21 {strides = array<i32>} : memref<1x4224xf32, #tpu.memory_space<vmem>>, vector<1x4224xf32>,
    } else {
    }
    return
  }
  func.func @transform_0(%arg0: i32) -> (i32, i32) {
    %c1_i32 = arith.constant 1 : i32
    %0 = arith.minsi %arg0, %c1_i32 : i32
    %c0_i32 = arith.constant 0 : i32
    %c0_i32_0 = arith.constant 0 : i32
    return %c0_i32, %0 : i32, i32
  }
  func.func @transform_1(%arg0: i32) -> (i32, i32) {
    %c1_i32 = arith.constant 1 : i32
    %0 = arith.minsi %arg0, %c1_i32 : i32
    %c0_i32 = arith.constant 0 : i32
    %c0_i32_0 = arith.constant 0 : i32
    return %0, %c0_i32 : i32, i32
  }
  func.func @transform_2(%arg0: i32) -> (i32, i32) {
    %c0_i32 = arith.constant 0 : i32
    %c0_i32_0 = arith.constant 0 : i32
    %c0_i32_1 = arith.constant 0 : i32
    return %c0_i32, %c0_i32_0 : i32, i32
  }
  func.func @transform_3(%arg0: i32) -> (i32, i32) {
    %c0_i32 = arith.constant 0 : i32
    %c0_i32_0 = arith.constant 0 : i32
    %c0_i32_1 = arith.constant 0 : i32
    return %c0_i32, %c0_i32_0 : i32, i32
  }
  func.func @transform_4(%arg0: i32) -> (i32, i32) {
    %c0_i32 = arith.constant 0 : i32
    %c0_i32_0 = arith.constant 0 : i32
    %c0_i32_1 = arith.constant 0 : i32
    return %c0_i32, %c0_i32_0 : i32, i32
  }
  func.func @transform_5(%arg0: i32) -> (i32, i32) {
    %c0_i32 = arith.constant 0 : i32
    %c0_i32_0 = arith.constant 0 : i32
    %c0_i32_1 = arith.constant 0 : i32
    return %c0_i32, %c0_i32_0 : i32, i32
  }
  func.func @transform_6(%arg0: i32) -> (i32, i32) {
    %c0_i32 = arith.constant 0 : i32
    %c0_i32_0 = arith.constant 0 : i32
    %c0_i32_1 = arith.constant 0 : i32
    return %c0_i32, %c0_i32_0 : i32, i32
  }
  func.func @transform_7(%arg0: i32) -> (i32, i32) {
    %c0_i32 = arith.constant 0 : i32
    %c0_i32_0 = arith.constant 0 : i32
    %c0_i32_1 = arith.constant 0 : i32
    return %c0_i32, %c0_i32_0 : i32, i32
  }
  func.func @transform_8(%arg0: i32) -> (i32, i32) {
    %c2_i32 = arith.constant 2 : i32
    %0 = arith.subi %arg0, %c2_i32 : i32
    %c0_i32 = arith.constant 0 : i32
    %1 = arith.maxsi %0, %c0_i32 : i32
    %c0_i32_0 = arith.constant 0 : i32
    %c0_i32_1 = arith.constant 0 : i32
    return %c0_i32_0, %1 : i32, i32
  }
  func.func @transform_9(%arg0: i32) -> (i32, i32) {
    %c2_i32 = arith.constant 2 : i32
    %0 = arith.subi %arg0, %c2_i32 : i32
    %c0_i32 = arith.constant 0 : i32
    %1 = arith.maxsi %0, %c0_i32 : i32
    %c0_i32_0 = arith.constant 0 : i32
    %c0_i32_1 = arith.constant 0 : i32
    return %c0_i32_0, %1 : i32, i32
  }
  func.func @transform_10(%arg0: i32) -> (i32, i32) {
    %c2_i32 = arith.constant 2 : i32
    %0 = arith.subi %arg0, %c2_i32 : i32
    %c0_i32 = arith.constant 0 : i32
    %1 = arith.maxsi %0, %c0_i32 : i32
    %c0_i32_0 = arith.constant 0 : i32
    %c0_i32_1 = arith.constant 0 : i32
    return %c0_i32_0, %1 : i32, i32
  }
  func.func @transform_11(%arg0: i32) -> (i32, i32) {
    %c2_i32 = arith.constant 2 : i32
    %0 = arith.subi %arg0, %c2_i32 : i32
    %c0_i32 = arith.constant 0 : i32
    %1 = arith.maxsi %0, %c0_i32 : i32
    %c0_i32_0 = arith.constant 0 : i32
    %c0_i32_1 = arith.constant 0 : i32
    return %c0_i32_0, %1 : i32, i32
  }
  func.func @transform_12(%arg0: i32) -> (i32, i32, i32) {
    %c0_i32 = arith.constant 0 : i32
    %c0_i32_0 = arith.constant 0 : i32
    %c0_i32_1 = arith.constant 0 : i32
    %c0_i32_2 = arith.constant 0 : i32
    return %c0_i32, %c0_i32_0, %c0_i32_1 : i32, i32, i32
  }
  func.func @transform_13(%arg0: i32) -> (i32, i32, i32) {
    %c0_i32 = arith.constant 0 : i32
    %c0_i32_0 = arith.constant 0 : i32
    %c0_i32_1 = arith.constant 0 : i32
    %c0_i32_2 = arith.constant 0 : i32
    return %c0_i32, %c0_i32_0, %c0_i32_1 : i32, i32, i32
  }
}

</mosaic_0001>

<bundles_post_ra>
// kernel: lstm_model_forward.1
= control target key start
LH: loop header
LB: loop body
LE: loop exit
PB: predicated region body
PF: predicated region fallthrough
CT: control target
= control target key end

     0   :  { %s7190_s0 = inlined_call_operand.vmem [shape: bf16[1,8448], index: 0, kind: input, shape index: {}]   ;;  %s7191_s1 = inlined_call_operand.hbm [shape: s8[8448,128], index: 1, kind: input, shape index: {}]   ;;  %s7192_s2 = inlined_call_operand.hbm [shape: f32[1,128], index: 2, kind: input, shape index: {}]   ;;  %s7193_s3 = inlined_call_operand.hbm [shape: bf16[128,512], index: 3, kind: input, shape index: {}]   ;;  %s7194_s4 = inlined_call_operand.hbm [shape: bf16[128,512], index: 4, kind: input, shape index: {}]   ;;  %s7195_s5 = inlined_call_operand.hbm [shape: f32[1,512], index: 5, kind: input, shape index: {}]   ;;  %s7196_s6 = inlined_call_operand.hbm [shape: f32[1,128], index: 6, kind: input, shape index: {}]   ;;  %s7197_s7 = inlined_call_operand.hbm [shape: f32[1,128], index: 7, kind: input, shape index: {}]   ;;  %s7198_s8 = inlined_call_operand.hbm [shape: s8[128,8448], index: 8, kind: input, shape index: {}]   ;;  %s7199_s9 = inlined_call_operand.hbm [shape: f32[1,8448], index: 9, kind: input, shape index: {}]   ;;  %s7200_s10 = inlined_call_operand.hbm [shape: f32[1,8448], index: 10, kind: input, shape index: {}]   ;;  %s7201_s11 = inlined_call_operand.vmem [shape: f32[1,8448], index: 11, kind: output, shape index: {0}]   ;;  %s7202_s12 = inlined_call_operand.hbm [shape: f32[1,1,128], index: 12, kind: output, shape index: {1}]   ;;  %s7203_s13 = inlined_call_operand.hbm [shape: f32[1,1,128], index: 13, kind: output, shape index: {2}]  }
   0x1   :  { %7230 = sst [smem:[#allocation35_spill]] %s7190_s0 }
   0x2   :  { %7231 = sst [smem:[#allocation36_spill]] %s7191_s1 }
   0x3   :  { %7232 = sst [smem:[#allocation37_spill]] %s7192_s2 }
   0x4   :  { %7233 = sst [smem:[#allocation38_spill]] %s7193_s3 }
   0x5   :  { %7234 = sst [smem:[#allocation39_spill]] %s7194_s4 }
   0x6   :  { %7235 = sst [smem:[#allocation40_spill]] %s7196_s6 }
   0x7   :  { %7236 = sst [smem:[#allocation41_spill]] %s7198_s8 }
   0x8   :  { %7237 = sst [smem:[#allocation42_spill]] %s7199_s9 }
   0x9   :  { %7238 = sst [smem:[#allocation43_spill]] %s7200_s10 }
   0xa   :  { %7239 = sst [smem:[#allocation44_spill]] %s7201_s11 }
   0xb   :  { %7240 = sst [smem:[#allocation45_spill]] %s7202_s12 }
   0xc   :  { %7241 = sst [smem:[#allocation46_spill]] %s7203_s13 }
   0xd   :  { %19 = vsyncpa [#allocation4], 0 }
   0xe   :  { %21 = vsyncpa [#allocation4 + $0x1], 0 }
   0xf   :  { %22 = vsyncpa [#allocation7], 0 }
  0x10   :  { %23 = vsyncpa [#allocation10], 0 }
  0x11   :  { %24 = vsyncpa [#allocation13], 0 }
  0x12   :  { %25 = vsyncpa [#allocation16], 0 }
  0x13   :  { %27 = vsyncpa [#allocation16 + $0x1], 0 }
  0x14   :  { %28 = vsyncpa [#allocation19], 0 }
  0x15   :  { %30 = vsyncpa [#allocation19 + $0x1], 0 }
  0x16   :  { %31 = vsyncpa [#allocation5], 0 }
  0x17   :  { %32 = vsyncpa [#allocation22], 0  ;;  %s6120_s25 = smov 0   ;;  %s6122_s26 = smov 0  }
  0x18   :  { %s6124_s27 = smov 0   ;;  %s6126_s28 = smov 0  }
  0x19   :  { %s6128_s29 = smov 0   ;;  %s6130_s30 = smov 0  }
  0x1a   :  { %s6132_s14 = smov 0  }
  0x1b LB: > { %7242 = sst [smem:[#allocation31_spill]] %s6000_s26  ;;  %s6022_s15 = smov [#allocation6]   ;;  %s6020_s14 = sphi %s6132_s14, %s7300_s14   ;;  %s6016_s30 = sphi %s6130_s30, %s7299_s30   ;;  %s6012_s29 = sphi %s6128_s29, %s7298_s29   ;;  %s6008_s28 = sphi %s6126_s28, %s7297_s28   ;;  %s6004_s27 = sphi %s6124_s27, %s7296_s27   ;;  %s6000_s26 = sphi %s6122_s26, %s7295_s26   ;;  %s5996_s25 = sphi %s6120_s25, %s7293_s25  }
  0x1c   : > { %s412_s16 = sshll.u32 %s6022_s15, 4  ;;  %s6156_s17 = sadd.s32 4294967295, %s6020_s14   ;;  %s413_s16 = int_to_ptr.vmem [resolvable:$true] %s412_s16 }
  0x1d   : > { %p4653_p0 = scmp.ge.s32.totalorder %s6020_s14, 1  ;;  %p7206_p1 = scmp.eq.s32.totalorder %s6156_s17, 0 }
  0x1e   : > { %p399_p2 = scmp.lt.s32.totalorder %s6020_s14, 5  ;;  %s6023_s19 = smov [#allocation9]  }
  0x1f   : > { %s435_s20 = sshll.u32 %s6023_s19, 4  ;;  %s6024_s22 = smov [#allocation12]   ;;  %s6174_s20 = int_to_ptr.vmem [resolvable:$true] %s435_s20 }
  0x20   : > { %p6162_p4 = pnand %p4653_p0, %p399_p2  ;;  %s460_s23 = sshll.u32 %s6024_s22, 4  ;;  %s6176_s23 = int_to_ptr.vmem [resolvable:$true] %s460_s23 }
  0x21   : > { %s7246_s2 = sld [smem:[#allocation37_spill]] }
  0x22   : > { %s7243_s18 = scalar_select %p6162_p4, 1, 0 }
  0x23   : > { %p5349_p5 = pneg %p6162_p4 }
  0x24   : > { %7244 = sst [smem:[#allocation32_spill]] %s7243_s18 }
  0x25   : > { %p6170_p6 = pnand %p5349_p5, %p7206_p1 }
  0x27   : > { %s7245_s21 = scalar_select %p6170_p6, 1, 0 }
  0x28   : > { %s5594_s13 = scalar_lea.hbm %s7246_s2, 16  ;;  %p6186_p8 = pneg %p6170_p6 }
  0x29   : > { %p5595_p7 = scmp.ne.s32.totalorder %s7246_s2, %s5594_s13  ;;  %p5601_p11 = scmp.lt.u32.totalorder %s5594_s13, %s7246_s2 }
  0x2a   : > { %s7247_s19 = scalar_select %p6186_p8, 1, 0 }
  0x2b   : > { %p5597_p9 = pnand %p6186_p8, %p5595_p7 }
  0x2d   : > { %p5598_p10 = pneg %p5597_p9 }
  0x2f   : > { %p5603_p12 = pnand %p5601_p11, %p5598_p10 }
  0x31   : > { %5606 = shalt.err (!%p5603_p12)
}
  0x32   : > { %s5607_s24 = scalar_lea.vmem %s413_s16, 16  ;;  %s5614_s11 = scalar_lea.vmem %s413_s16, 32 }
  0x33   : > { %p5608_p13 = scmp.ne.s32.totalorder %s413_s16, %s5607_s24  ;;  %p5615_p5 = scmp.lt.s32.totalorder %s413_s16, %s413_s16 }
  0x34   : > { %p5616_p3 = scmp.lt.s32.totalorder %s5614_s11, %s5607_s24 }
  0x35   : > { %p5610_p0 = pnand %p5608_p13, %p6186_p8 }
  0x36   : > { %p5617_p1 = por %p5616_p3, %p5615_p5 }
  0x37   : > { %p5611_p2 = pneg %p5610_p0 }
  0x39   : > { %p5618_p4 = pnand %p5617_p1, %p5611_p2 }
  0x3b   : > { %5621 = shalt.err (!%p5618_p4)
}
  0x3c   : > { %5352 = dma.hbm_to_vmem [thread:$0]  (!%p6170_p6), %s7246_s2, 16, %s413_s16, [#allocation7]  }
  0x3d   : > { %s7248_s4 = sld [smem:[#allocation39_spill]] }
  0x43   : > { %s5622_s22 = scalar_lea.hbm %s7248_s4, 4096 }
  0x44   : > { %p5623_p7 = scmp.ne.s32.totalorder %s7248_s4, %s5622_s22  ;;  %p5629_p1 = scmp.lt.u32.totalorder %s5622_s22, %s7248_s4 }
  0x46   : > { %p5625_p9 = pnand %p5623_p7, %p6186_p8 }
  0x48   : > { %p5626_p3 = pneg %p5625_p9 }
  0x4a   : > { %p5631_p4 = pnand %p5629_p1, %p5626_p3 }
  0x4c   : > { %5634 = shalt.err (!%p5631_p4)
}
  0x4d   : > { %s5635_s16 = scalar_lea.vmem %s6174_s20, 4096  ;;  %p5643_p13 = scmp.lt.s32.totalorder %s6174_s20, %s6174_s20 }
  0x4e   : > { %p5636_p10 = scmp.ne.s32.totalorder %s6174_s20, %s5635_s16  ;;  %p5644_p0 = scmp.lt.s32.totalorder %s5635_s16, %s5635_s16 }
  0x50   : > { %p5638_p11 = pnand %p5636_p10, %p6186_p8  ;;  %p5645_p2 = por %p5644_p0, %p5643_p13 }
  0x52   : > { %p5639_p12 = pneg %p5638_p11 }
  0x54   : > { %p5646_p5 = pnand %p5645_p2, %p5639_p12 }
  0x56   : > { %5649 = shalt.err (!%p5646_p5)
}
  0x57   : > { %s7210_s10 = smov 256   ;;  %s7211_s18 = smov 16  }
  0x58   : > { %5358 = dma.hbm_to_vmem [thread:$0]  (!%p6170_p6), %s7248_s4, 4096, %s6174_s20, [#allocation10], %s7210_s10, %s7210_s10, %s7211_s18  }
  0x59   : > { %s7249_s6 = sld [smem:[#allocation40_spill]] }
  0x5f   : > { %s5650_s22 = scalar_lea.hbm %s7249_s6, 16 }
  0x60   : > { %p5651_p7 = scmp.ne.s32.totalorder %s7249_s6, %s5650_s22  ;;  %p5657_p1 = scmp.lt.u32.totalorder %s5650_s22, %s7249_s6 }
  0x62   : > { %p5653_p9 = pnand %p5651_p7, %p6186_p8 }
  0x64   : > { %p5654_p3 = pneg %p5653_p9 }
  0x66   : > { %p5659_p4 = pnand %p5657_p1, %p5654_p3 }
  0x68   : > { %5662 = shalt.err (!%p5659_p4)
}
  0x69   : > { %s5663_s20 = scalar_lea.vmem %s6176_s23, 16  ;;  %s5670_s12 = scalar_lea.vmem %s6176_s23, 32 }
  0x6a   : > { %p5664_p10 = scmp.ne.s32.totalorder %s6176_s23, %s5663_s20  ;;  %p5671_p13 = scmp.lt.s32.totalorder %s6176_s23, %s6176_s23 }
  0x6b   : > { %p5672_p0 = scmp.lt.s32.totalorder %s5670_s12, %s5663_s20 }
  0x6c   : > { %p5666_p11 = pnand %p5664_p10, %p6186_p8 }
  0x6d   : > { %p5673_p2 = por %p5672_p0, %p5671_p13 }
  0x6e   : > { %p5667_p12 = pneg %p5666_p11 }
  0x70   : > { %p5674_p5 = pnand %p5673_p2, %p5667_p12 }
  0x72   : > { %5677 = shalt.err (!%p5674_p5)
}
  0x73   : > { %5364 = dma.hbm_to_vmem [thread:$0]  (!%p6170_p6), %s7249_s6, 16, %s6176_s23, [#allocation13]  }
  0x74   : > { %p7213_p7 = scmp.eq.s32.totalorder %s6020_s14, 0  ;;  %s4645_s0 = sadd.s32 4294967294, %s6020_s14 }
  0x75   : > { %p229_p9 = scmp.gt.s32.totalorder %s4645_s0, 0  ;;  %p244_p3 = scmp.ne.s32.totalorder %s6004_s27, %s6000_s26 }
  0x76   : > { %p250_p1 = scmp.ne.s32.totalorder %s6000_s26, %s5996_s25  ;;  %p7212_p4 = scmp.lt.s32.totalorder %s6020_s14, 4 }
  0x77   : > { %s7302_s0 = smov (!%p229_p9, %s4645_s0), 0  ;;  %p246_p10 = por %p244_p3, %p7213_p7 }
  0x78   : > { %p7250_p11 = scmp.eq.s32.totalorder %s6156_s17, 0  ;;  %s517_s24 = sand.u32 1, %s6020_s14  }
  0x79   : > { %s6272_s11 = sand.u32 1, %s6004_s27   ;;  %s4693_s16 = smul.u32 4224, %s7302_s0 }
  0x7a   : > { %p6266_p12 = por %p250_p1, %p7250_p11  ;;  %s5303_s23 = smul.u32 1056, %s6272_s11 }
  0x7b   : > { %p6278_p13 = pnand %p7212_p4, %p246_p10  ;;  %s7255_s8 = sld [smem:[#allocation41_spill]] }
  0x7c   : > { %s7251_s22 = scalar_select %p6266_p12, 1, 0 }
  0x7d   : > { %s7253_s25 = scalar_select %p6278_p13, 1, 0 }
  0x7e   : > { %7252 = sst [smem:[#allocation33_spill]] %s7251_s22  ;;  %s521_s15 = scalar_lea.vmem [#allocation15], %s5303_s23 }
  0x7f   : > { %7254 = sst [smem:[#allocation34_spill]] %s7253_s25  ;;  %s531_s13 = sshll.u32 %s521_s15, 4  ;;  %s6287_s13 = int_to_ptr.vmem [resolvable:$true] %s531_s13 }
  0x80   : > { %s6289_s10 = scalar_lea.sflag [#allocation16], %s517_s24  ;;  %p6295_p2 = pneg %p6278_p13 }
  0x81   : > { %s6285_s2 = scalar_lea.hbm %s7255_s8, %s4693_s16  ;;  %s5683_s23 = scalar_lea.hbm %s7255_s8, 33792 }
  0x82   : > { %s5678_s18 = scalar_lea.hbm %s6285_s2, 16896  ;;  %p5684_p3 = scmp.lt.u32.totalorder %s6285_s2, %s7255_s8 }
  0x83   : > { %p5679_p0 = scmp.ne.s32.totalorder %s6285_s2, %s5678_s18  ;;  %p5685_p1 = scmp.lt.u32.totalorder %s5683_s23, %s5678_s18 }
  0x84   : > { %s7256_s4 = scalar_select %p6295_p2, 1, 0 }
  0x85   : > { %p5681_p5 = pnand %p6295_p2, %p5679_p0  ;;  %p5686_p10 = por %p5685_p1, %p5684_p3 }
  0x86   : > { %p5687_p11 = scmp.lt.u32.totalorder %s5678_s18, %s6285_s2 }
  0x87   : > { %p5682_p9 = pneg %p5681_p5 }
  0x88   : > { %p5688_p4 = por %p5687_p11, %p5686_p10 }
  0x8a   : > { %p5689_p7 = pnand %p5688_p4, %p5682_p9 }
  0x8c   : > { %5692 = shalt.err (!%p5689_p7)
}
  0x8d   : > { %s5693_s24 = scalar_lea.vmem %s6287_s13, 16896  ;;  %s6027_s16 = smov [#allocation15]  }
  0x8e   : > { %p5694_p0 = scmp.ne.s32.totalorder %s6287_s13, %s5693_s24  ;;  %s5698_s20 = sshll.u32 %s6027_s16, 4  ;;  %s5699_s20 = int_to_ptr.vmem [resolvable:$false] %s5698_s20 }
  0x8f   : > { %s5700_s12 = scalar_lea.vmem %s5699_s20, 33792  ;;  %p5701_p6 = scmp.lt.s32.totalorder %s6287_s13, %s5699_s20 }
  0x90   : > { %p5696_p5 = pnand %p5694_p0, %p6295_p2  ;;  %p5702_p8 = scmp.lt.s32.totalorder %s5700_s12, %s5693_s24 }
  0x92   : > { %p5697_p12 = pneg %p5696_p5  ;;  %p5703_p3 = por %p5702_p8, %p5701_p6 }
  0x94   : > { %p5704_p1 = pnand %p5703_p3, %p5697_p12 }
  0x96   : > { %5707 = shalt.err (!%p5704_p1)
}
  0x97   : > { %s6028_s18 = smov 8448   ;;  %s6029_s23 = smov 4224  }
  0x98   : > { %s6030_s15 = smov 264   ;;  %s6031_s6 = smov [#allocation8]  }
  0x99   : > { %5374 = dma.hbm_to_vmem [thread:$0]  (!%p6278_p13), %s6285_s2, 16896, %s6287_s13, %s6289_s10, %s6028_s18, %s6029_s23, %s6030_s15  }
  0x9a   : > { %s422_s8 = sshll.u32 %s6031_s6, 4  ;;  %s6032_s16 = smov [#allocation11]   ;;  %s423_s8 = int_to_ptr.vmem [resolvable:$true] %s422_s8 }
  0x9b   : > { %s449_s22 = sshll.u32 %s6032_s16, 4  ;;  %s7257_s3 = sld [smem:[#allocation38_spill]]  ;;  %s6319_s22 = int_to_ptr.vmem [resolvable:$true] %s449_s22 }
  0x9c   : > { %p7258_p8 = scmp.ne.s32.totalorder %s7247_s19, 0 }
  0xa1   : > { %s5708_s12 = scalar_lea.hbm %s7257_s3, 4096 }
  0xa2   : > { %p5709_p6 = scmp.ne.s32.totalorder %s7257_s3, %s5708_s12  ;;  %p5715_p12 = scmp.lt.u32.totalorder %s5708_s12, %s7257_s3 }
  0xa4   : > { %p5711_p7 = pnand %p5709_p6, %p7258_p8 }
  0xa6   : > { %p5712_p4 = pneg %p5711_p7 }
  0xa8   : > { %p5717_p9 = pnand %p5715_p12, %p5712_p4 }
  0xaa   : > { %5720 = shalt.err (!%p5717_p9)
}
  0xab   : > { %s5721_s6 = scalar_lea.vmem %s423_s8, 4096  ;;  %p5729_p5 = scmp.lt.s32.totalorder %s423_s8, %s423_s8 }
  0xac   : > { %p5722_p10 = scmp.ne.s32.totalorder %s423_s8, %s5721_s6  ;;  %p5730_p3 = scmp.lt.s32.totalorder %s5721_s6, %s5721_s6 }
  0xae   : > { %p5724_p11 = pnand %p5722_p10, %p7258_p8  ;;  %p5731_p1 = por %p5730_p3, %p5729_p5 }
  0xb0   : > { %p5725_p0 = pneg %p5724_p11 }
  0xb2   : > { %p5732_p13 = pnand %p5731_p1, %p5725_p0 }
  0xb4   : > { %5735 = shalt.err (!%p5732_p13)
}
  0xb5   : > { %p7259_p6 = scmp.ne.s32.totalorder %s7245_s21, 0  ;;  %s7260_s9 = smov 16  }
  0xb6   : > { %s7261_s26 = smov 256   ;;  %s5736_s15 = scalar_lea.hbm %s7195_s5, 64 }
  0xb7   : > { %5355 = dma.hbm_to_vmem [thread:$0]  (!%p7259_p6), %s7257_s3, 4096, %s423_s8, [#allocation7], %s7261_s26, %s7261_s26, %s7260_s9  }
  0xb8   : > { %p5737_p7 = scmp.ne.s32.totalorder %s7195_s5, %s5736_s15  ;;  %p5743_p12 = scmp.lt.u32.totalorder %s5736_s15, %s7195_s5 }
  0xba   : > { %p5739_p13 = pnand %p5737_p7, %p7258_p8 }
  0xbc   : > { %p5740_p4 = pneg %p5739_p13 }
  0xbe   : > { %p5745_p9 = pnand %p5743_p12, %p5740_p4 }
  0xc0   : > { %5748 = shalt.err (!%p5745_p9)
}
  0xc1   : > { %s5749_s8 = scalar_lea.vmem %s6319_s22, 64  ;;  %p5757_p5 = scmp.lt.s32.totalorder %s6319_s22, %s6319_s22 }
  0xc2   : > { %p5750_p10 = scmp.ne.s32.totalorder %s6319_s22, %s5749_s8  ;;  %p5758_p3 = scmp.lt.s32.totalorder %s5749_s8, %s5749_s8 }
  0xc4   : > { %p5752_p11 = pnand %p5750_p10, %p7258_p8  ;;  %p5759_p1 = por %p5758_p3, %p5757_p5 }
  0xc6   : > { %p5753_p0 = pneg %p5752_p11 }
  0xc8   : > { %p5760_p7 = pnand %p5759_p1, %p5753_p0 }
  0xca   : > { %5763 = shalt.err (!%p5760_p7)
}
  0xcb   : > { %5361 = dma.hbm_to_vmem [thread:$0]  (!%p7259_p6), %s7195_s5, 64, %s6319_s22, [#allocation10]  }
  0xcc   : > { %s6033_s9 = smov [#allocation14]   ;;  %s5764_s18 = scalar_lea.hbm %s7197_s7, 16 }
  0xcd   : > { %s471_s26 = sshll.u32 %s6033_s9, 4  ;;  %p5765_p13 = scmp.ne.s32.totalorder %s7197_s7, %s5764_s18  ;;  %s472_s26 = int_to_ptr.vmem [resolvable:$true] %s471_s26 }
  0xce   : > { %p5771_p9 = scmp.lt.u32.totalorder %s5764_s18, %s7197_s7 }
  0xcf   : > { %p5767_p4 = pnand %p5765_p13, %p7258_p8 }
  0xd1   : > { %p5768_p12 = pneg %p5767_p4 }
  0xd3   : > { %p5773_p10 = pnand %p5771_p9, %p5768_p12 }
  0xd5   : > { %5776 = shalt.err (!%p5773_p10)
}
  0xd6   : > { %s5777_s22 = scalar_lea.vmem %s472_s26, 16  ;;  %s5784_s20 = scalar_lea.vmem %s472_s26, 32 }
  0xd7   : > { %p5778_p11 = scmp.ne.s32.totalorder %s472_s26, %s5777_s22  ;;  %p5785_p3 = scmp.lt.s32.totalorder %s472_s26, %s472_s26 }
  0xd8   : > { %p5786_p1 = scmp.lt.s32.totalorder %s5784_s20, %s5777_s22 }
  0xd9   : > { %p5780_p0 = pnand %p5778_p11, %p7258_p8 }
  0xda   : > { %p5787_p7 = por %p5786_p1, %p5785_p3 }
  0xdb   : > { %p5781_p5 = pneg %p5780_p0 }
  0xdd   : > { %p5788_p2 = pnand %p5787_p7, %p5781_p5 }
  0xdf   : > { %5791 = shalt.err (!%p5788_p2)
}
  0xe0   : > { %5367 = dma.hbm_to_vmem [thread:$0]  (!%p7259_p6), %s7197_s7, 16, %s472_s26, [#allocation13]  }
  0xe1   : > { %s6384_s19 = sadd.s32 1, %s6020_s14   ;;  %p72_p2 = scmp.lt.s32.totalorder %s6020_s14, 1 }
  0xe2   : > { %p74_p8 = scmp.lt.s32.totalorder %s6384_s19, 1  ;;  %s79_s21 = sadd.s32 1, %s6016_s30 }
  0xe3   : > { %p86_p13 = scmp.ne.s32.totalorder %s6016_s30, %s6012_s29  ;;  %p7262_p4 = scmp.eq.s32.totalorder %s6020_s14, 0 }
  0xe4   : > { %s73_s13 = scalar_select %p72_p2, %s6020_s14, 1 }
  0xe5   : > { %s75_s6 = scalar_select %p74_p8, %s6384_s19, 1 }
  0xe6   : > { %p6395_p12 = por %p7262_p4, %p86_p13  ;;  %p92_p9 = scmp.ne.s32.totalorder %s6012_s29, %s6008_s28 }
  0xe7   : > { %s76_s26 = ssub.s32 %s73_s13, %s75_s6  ;;  %s4646_s25 = sadd.s32 4294967294, %s6384_s19 }
  0xe8   : > { %p77_p6 = scmp.eq.s32.totalorder %s76_s26, 0  ;;  %p7264_p10 = scmp.eq.s32.totalorder %s6156_s17, 0 }
  0xe9   : > { %p232_p0 = scmp.gt.s32.totalorder %s4646_s25, 0  ;;  %s494_s18 = sand.u32 1, %s6016_s30  }
  0xea   : > { %p6404_p11 = por %p7264_p10, %p92_p9  ;;  %s5302_s15 = smul.u32 1056, %s494_s18 }
  0xeb   : > { %s6410_s23 = scalar_select %p77_p6, %s6016_s30, %s79_s21  }
  0xec   : > { %s7265_s2 = scalar_select %p6404_p11, 1, 0 }
  0xed   : > { %s7304_s25 = smov (!%p232_p0, %s4646_s25), 0  ;;  %s4692_s16 = smul.u32 16896, %s73_s13 }
  0xee   : > { %s234_s28 = ssub.s32 %s7302_s0, %s7304_s25  ;;  %s7266_s1 = sld [smem:[#allocation36_spill]] }
  0xef   : > { %p235_p5 = scmp.eq.s32.totalorder %s234_s28, 0  ;;  %s498_s12 = scalar_lea.vmem [#allocation3], %s5302_s15 }
  0xf0   : > { %s507_s8 = sshll.u32 %s498_s12, 4  ;;  %s7267_s6 = sadd.s32 1, %s6004_s27  ;;  %s6423_s8 = int_to_ptr.vmem [resolvable:$true] %s507_s8 }
  0xf1   : > { %s6421_s26 = scalar_select %p235_p5, %s6004_s27, %s7267_s6  }
  0xf2   : > { %p7268_p3 = scmp.lt.s32.totalorder %s6020_s14, 4  ;;  %s5304_s13 = smul.u32 33, %s6272_s11 }
  0xf3   : > { %s6434_s25 = scalar_lea.sflag [#allocation4], %s494_s18 }
  0xf4   : > { %s6416_s20 = scalar_lea.hbm %s7266_s1, %s4692_s16  ;;  %p6429_p1 = pnand %p7268_p3, %p6395_p12 }
  0xf5   : > { %s5792_s28 = scalar_lea.hbm %s6416_s20, 16896  ;;  %s5797_s14 = scalar_lea.hbm %s7266_s1, 33792 }
  0xf6   : > { %p5793_p7 = scmp.ne.s32.totalorder %s6416_s20, %s5792_s28  ;;  %p5794_p2 = pneg %p6429_p1 }
  0xf7   : > { %p5798_p4 = scmp.lt.u32.totalorder %s6416_s20, %s7266_s1  ;;  %p5799_p12 = scmp.lt.u32.totalorder %s5797_s14, %s5792_s28 }
  0xf8   : > { %p5795_p8 = pnand %p5794_p2, %p5793_p7  ;;  %p5801_p6 = scmp.lt.u32.totalorder %s5792_s28, %s6416_s20 }
  0xf9   : > { %p5800_p9 = por %p5799_p12, %p5798_p4 }
  0xfa   : > { %p5796_p13 = pneg %p5795_p8 }
  0xfb   : > { %p5802_p10 = por %p5801_p6, %p5800_p9 }
  0xfd   : > { %p5803_p0 = pnand %p5802_p10, %p5796_p13 }
  0xff   : > { %5806 = shalt.err (!%p5803_p0)
}
 0x100   : > { %s5807_s18 = scalar_lea.vmem %s6423_s8, 16896  ;;  %s6034_s22 = smov [#allocation3]  }
 0x101   : > { %p5808_p5 = scmp.ne.s32.totalorder %s6423_s8, %s5807_s18  ;;  %s5812_s12 = sshll.u32 %s6034_s22, 4  ;;  %s5813_s12 = int_to_ptr.vmem [resolvable:$false] %s5812_s12 }
 0x102   : > { %s5814_s6 = scalar_lea.vmem %s5813_s12, 33792  ;;  %p5815_p8 = scmp.lt.s32.totalorder %s6423_s8, %s5813_s12 }
 0x103   : > { %p5810_p3 = pnand %p5808_p5, %p5794_p2  ;;  %p5816_p4 = scmp.lt.s32.totalorder %s5814_s6, %s5807_s18 }
 0x105   : > { %p5811_p7 = pneg %p5810_p3  ;;  %p5817_p12 = por %p5816_p4, %p5815_p8 }
 0x107   : > { %p5818_p9 = pnand %p5817_p12, %p5811_p7 }
 0x109   : > { %5821 = shalt.err (!%p5818_p9)
}
 0x10a   : > { %s6035_s28 = smov 128   ;;  %s6036_s15 = smov 8  }
 0x10b   : > { %5371 = dma.hbm_to_vmem [thread:$0]  (!%p6429_p1), %s6416_s20, 16896, %s6423_s8, %s6434_s25, %s6035_s28, %s6035_s28, %s6036_s15  }
 0x10c   : > { %s4694_s9 = smul.u32 528, %s7302_s0  ;;  %s545_s14 = scalar_lea.vmem [#allocation17], %s5304_s13 }
 0x10d   : > { %s556_s16 = sshll.u32 %s545_s14, 4  ;;  %s7270_s22 = sld [smem:[#allocation42_spill]]  ;;  %s557_s16 = int_to_ptr.vmem [resolvable:$true] %s556_s16 }
 0x10e   : > { %p7271_p13 = scmp.ne.s32.totalorder %s7256_s4, 0 }
 0x113   : > { %s554_s12 = scalar_lea.hbm %s7270_s22, %s4694_s9  ;;  %s5827_s21 = scalar_lea.hbm %s7270_s22, 1056 }
 0x114   : > { %s5822_s6 = scalar_lea.hbm %s554_s12, 528  ;;  %p5828_p1 = scmp.lt.u32.totalorder %s554_s12, %s7270_s22 }
 0x115   : > { %p5823_p2 = scmp.ne.s32.totalorder %s554_s12, %s5822_s6  ;;  %p5829_p0 = scmp.lt.u32.totalorder %s5827_s21, %s5822_s6 }
 0x116   : > { %p5831_p3 = scmp.lt.u32.totalorder %s5822_s6, %s554_s12 }
 0x117   : > { %p5825_p6 = pnand %p5823_p2, %p7271_p13  ;;  %p5830_p5 = por %p5829_p0, %p5828_p1 }
 0x119   : > { %p5826_p10 = pneg %p5825_p6  ;;  %p5832_p7 = por %p5831_p3, %p5830_p5 }
 0x11b   : > { %p5833_p8 = pnand %p5832_p7, %p5826_p10 }
 0x11d   : > { %5836 = shalt.err (!%p5833_p8)
}
 0x11e   : > { %s5837_s25 = scalar_lea.vmem %s557_s16, 528  ;;  %s6037_s28 = smov [#allocation17]  }
 0x11f   : > { %p5838_p4 = scmp.ne.s32.totalorder %s557_s16, %s5837_s25  ;;  %s5842_s15 = sshll.u32 %s6037_s28, 4  ;;  %s5843_s15 = int_to_ptr.vmem [resolvable:$false] %s5842_s15 }
 0x120   : > { %s5844_s1 = scalar_lea.vmem %s5843_s15, 1056  ;;  %p5845_p2 = scmp.lt.s32.totalorder %s557_s16, %s5843_s15 }
 0x121   : > { %p5840_p12 = pnand %p5838_p4, %p7271_p13  ;;  %p5846_p6 = scmp.lt.s32.totalorder %s5844_s1, %s5837_s25 }
 0x123   : > { %p5841_p9 = pneg %p5840_p12  ;;  %p5847_p11 = por %p5846_p6, %p5845_p2 }
 0x125   : > { %p5848_p0 = pnand %p5847_p11, %p5841_p9 }
 0x127   : > { %5851 = shalt.err (!%p5848_p0)
}
 0x128   : > { %s7272_s3 = sld [smem:[#allocation34_spill]]  ;;  %s7274_s18 = sld [smem:[#allocation43_spill]] }
 0x129   : > { %s567_s21 = scalar_lea.vmem [#allocation18], %s5304_s13  ;;  %s564_s8 = scalar_lea.sflag [#allocation19], %s6272_s11 }
 0x12a   : > { %s578_s20 = sshll.u32 %s567_s21, 4  ;;  %s579_s20 = int_to_ptr.vmem [resolvable:$true] %s578_s20 }
 0x12e   : > { %p7273_p1 = scmp.ne.s32.totalorder %s7272_s3, 0  ;;  %s6488_s6 = scalar_lea.hbm %s7274_s18, %s4694_s9 }
 0x12f   : > { %s5852_s25 = scalar_lea.hbm %s6488_s6, 528  ;;  %p5858_p3 = scmp.lt.u32.totalorder %s6488_s6, %s7274_s18 }
 0x130   : > { %5377 = dma.hbm_to_vmem [thread:$0]  (!%p7273_p1), %s554_s12, 528, %s557_s16, %s6289_s10  }
 0x131   : > { %p5853_p11 = scmp.ne.s32.totalorder %s6488_s6, %s5852_s25  ;;  %s5857_s16 = scalar_lea.hbm %s7274_s18, 1056 }
 0x132   : > { %p5859_p7 = scmp.lt.u32.totalorder %s5857_s16, %s5852_s25  ;;  %p5861_p4 = scmp.lt.u32.totalorder %s5852_s25, %s6488_s6 }
 0x133   : > { %p5855_p10 = pnand %p5853_p11, %p7271_p13 }
 0x134   : > { %p5860_p8 = por %p5859_p7, %p5858_p3 }
 0x135   : > { %p5856_p5 = pneg %p5855_p10 }
 0x136   : > { %p5862_p12 = por %p5861_p4, %p5860_p8 }
 0x138   : > { %p5863_p9 = pnand %p5862_p12, %p5856_p5 }
 0x13a   : > { %5866 = shalt.err (!%p5863_p9)
}
 0x13b   : > { %s5867_s11 = scalar_lea.vmem %s579_s20, 528  ;;  %s6038_s13 = smov [#allocation18]  }
 0x13c   : > { %p5868_p2 = scmp.ne.s32.totalorder %s579_s20, %s5867_s11  ;;  %s5872_s28 = sshll.u32 %s6038_s13, 4  ;;  %s5873_s28 = int_to_ptr.vmem [resolvable:$false] %s5872_s28 }
 0x13d   : > { %s5874_s15 = scalar_lea.vmem %s5873_s28, 1056  ;;  %p5875_p11 = scmp.lt.s32.totalorder %s579_s20, %s5873_s28 }
 0x13e   : > { %p5870_p6 = pnand %p5868_p2, %p7271_p13  ;;  %p5876_p10 = scmp.lt.s32.totalorder %s5874_s15, %s5867_s11 }
 0x140   : > { %p5871_p0 = pneg %p5870_p6  ;;  %p5877_p1 = por %p5876_p10, %p5875_p11 }
 0x142   : > { %p5878_p3 = pnand %p5877_p1, %p5871_p0 }
 0x144   : > { %5881 = shalt.err (!%p5878_p3)
}
 0x145   : > { %p7275_p7 = scmp.ne.s32.totalorder %s7272_s3, 0  ;;  %s7276_s1 = sld [smem:[#allocation32_spill]] }
 0x147   : > { %5380 = dma.hbm_to_vmem [thread:$0]  (!%p7275_p7), %s6488_s6, 528, %s579_s20, %s564_s8  }
 0x14b   : > { %p7277_p5 = scmp.ne.s32.totalorder %s7276_s1, 0 }
 0x14c   : > { %s589_s4 = sand.u32 (!%p7277_p5), 1, %s6012_s29   ;;  %p7278_p13 = scmp.ne.s32.totalorder (!%p7277_p5), %s7265_s2, 0 }
 0x14d   : > { %587 = sbr.rel (%p7277_p5) target bundleno = 1787 (0x6fb), region = 64  ;;  %s590_s24 = scalar_lea.sflag (!%p7277_p5), [#allocation4], %s589_s4 }
 0x14e   : > { %s5306_s14 = smul.u32 (!%p7277_p5), 1056, %s589_s4 }
 0x150   : > { %s6513_s21 = scalar_lea.vmem (!%p7277_p5), [#allocation3], %s5306_s14 }
 0x154   : > { %5963 = dma.done.wait (%p7278_p13), %s590_s24, 16896  }
 0x155   : > { %5965 = vsyncadd (%p7278_p13), %s590_s24, 4294950400  ;;  %p7279_p1 = scmp.eq.s32.totalorder %s6156_s17, 0 }
 0x157   : > { %5967 = dma.done.wait (%p7279_p1), [#allocation7], 4112   ;;  %p7280_p8 = pmov %p7279_p1 }
 0x158   : > { %p7281_p4 = pmov %p7279_p1 }
 0x159   : > { %5969 = vsyncadd (%p7280_p8), [#allocation7], 4294963184 }
 0x15a   : > { %5971 = dma.done.wait (%p7281_p4), [#allocation10], 4160   ;;  %p7282_p12 = pmov %p7279_p1 }
 0x15b   : > { %p7283_p9 = pmov %p7279_p1 }
 0x15c   : > { %5973 = vsyncadd (%p7282_p12), [#allocation10], 4294963136 }
 0x15d   : > { %5975 = dma.done.wait (%p7283_p9), [#allocation13], 32   ;;  %p7284_p2 = pmov %p7279_p1 }
 0x15e   : > { %s7285_s2 = sld [smem:[#allocation31_spill]]  ;;  %s7286_s3 = sld [smem:[#allocation33_spill]] }
 0x15f   : > { %5977 = vsyncadd (%p7284_p2), [#allocation13], 4294967264  ;;  %s622_s6 = sand.u32 1, %s6156_s17  }
 0x160   : > { %s623_s25 = scalar_lea.sflag [#allocation16], %s622_s6 }
 0x164   : > { %s624_s20 = sand.u32 1, %s7285_s2   ;;  %p7287_p6 = scmp.ne.s32.totalorder %s7286_s3, 0 }
 0x165   : > { %s5307_s8 = smul.u32 1056, %s624_s20 }
 0x167   : > { %s6533_s10 = scalar_lea.vmem [#allocation15], %s5307_s8 }
 0x168   : > { %5979 = dma.done.wait (%p7287_p6), %s623_s25, 17424  }
 0x169   : > { %5981 = vsyncadd (%p7287_p6), %s623_s25, 4294949872  ;;  %s5308_s0 = smul.u32 33, %s624_s20  ;;  %s641_s9 = scalar_lea.sflag [#allocation19], %s624_s20 }
 0x16b   : > { %s6539_s16 = scalar_lea.vmem [#allocation17], %s5308_s0  ;;  %s6541_s12 = scalar_lea.vmem [#allocation18], %s5308_s0 }
 0x16c   : > { %5983 = dma.done.wait (%p7287_p6), %s641_s9, 528  }
 0x16d   : > { %5985 = vsyncadd (%p7287_p6), %s641_s9, 4294966768  ;;  %p710_p0 = scmp.lt.s32.totalorder %s6156_s17, 1  ;;  %s4675_s11 = sadd.s32 4294967294, %s6156_s17 }
 0x16e   : > { %p735_p11 = scmp.gt.s32.totalorder %s4675_s11, 0  ;;  %s7288_s14 = sld [smem:[#allocation35_spill]] }
 0x16f   : > { %s711_s13 = scalar_select %p710_p0, %s6156_s17, 1 }
 0x170   : > { %s7306_s11 = smov (!%p735_p11, %s4675_s11), 0  ;;  %s7289_s6 = sld [smem:[#allocation44_spill]] }
 0x171   : > { %s712_s28 = smul.u32 33, %s711_s13  ;;  %p7290_p7 = scmp.ne.s32.totalorder %s6156_s17, 0 }
 0x172   : > { %s737_s15 = smul.u32 33, %s7306_s11  ;;  %v6039_v0 = vmov (!%p7290_p7), 0.0  }
 0x173   : > { %p713_p10 = scmp.lt.s32.totalorder %s712_s28, 65  ;;  %749 = sbr.rel (%p7290_p7) target bundleno = 378 (0x17a), region = 108  ;;  %750 = vst [vmem:[#allocation2] sm:$0x1] (!%p7290_p7), %v6039_v0 }
 0x174   : > { %p738_p3 = scmp.lt.s32.totalorder %s737_s15, 65 }
 0x175   : > { %s7308_s28 = smov (!%p713_p10, %s712_s28), 65 }
 0x176   : > { %s7310_s15 = smov (!%p738_p3, %s737_s15), 65  ;;  %s6553_s24 = scalar_lea.vmem %s7288_s14, %s7308_s28 }
 0x177   : > { %s6558_s20 = scalar_lea.vmem %s7289_s6, %s7310_s15 }
 0x17a PF: > { %p4677_p5 = scmp.ge.s32.totalorder %s6156_s17, 2 }
 0x17b   : > { %v765_v1 = vld [vmem:[%s6513_s21 + $0x20] sm:$0xff] (!%p4677_p5)  ;;  %v766_v11 = vld [vmem:[%s6513_s21 + $0x28] sm:$0xff] (!%p4677_p5)  ;;  %v1166_v19 = vlaneseq (!%p4677_p5)  ;;  %v6040_v24 = vmov (!%p4677_p5), 1966171168   ;;  %v767_v27 = vld [vmem:[%s6513_s21 + $0x30] sm:$0xff] (!%p4677_p5)  ;;  %vm6042_vm0 = vmmov (!%p4677_p5), 0  }
 0x17c   : > { %754 = sbr.rel (%p4677_p5) target bundleno = 888 (0x378), region = 112  ;;  %v773_v2 = vld [vmem:[%s6513_s21 + $0x60] sm:$0xff] (!%p4677_p5)  ;;  %v901_v4 = vunpack.c.l.s8.bf16 (!%p4677_p5), %v765_v1  ;;  %v902_v5 = vunpack.c.h.s8.bf16 (!%p4677_p5), %v765_v1  ;;  %v774_v12 = vld [vmem:[%s6513_s21 + $0x68] sm:$0xff] (!%p4677_p5)  ;;  %v903_v15 = vunpack.c.l.s8.bf16 (!%p4677_p5), %v766_v11  ;;  %v904_v22 = vunpack.c.h.s8.bf16 (!%p4677_p5), %v766_v11  ;;  %v775_v28 = vld [vmem:[%s6513_s21 + $0x70] sm:$0xff] (!%p4677_p5) }
 0x17d   : > { %v761_v3 = vld [vmem:[%s6513_s21] sm:$0xff] (!%p4677_p5)  ;;  %v917_v6 = vunpack.c.l.s8.bf16 (!%p4677_p5), %v773_v2  ;;  %v918_v7 = vunpack.c.h.s8.bf16 (!%p4677_p5), %v773_v2  ;;  %v919_v16 = vunpack.c.l.s8.bf16 (!%p4677_p5), %v774_v12  ;;  %v762_v17 = vld [vmem:[%s6513_s21 + $0x8] sm:$0xff] (!%p4677_p5)  ;;  %v920_v23 = vunpack.c.h.s8.bf16 (!%p4677_p5), %v774_v12  ;;  %v763_v35 = vld [vmem:[%s6513_s21 + $0x10] sm:$0xff] (!%p4677_p5) }
 0x17e   : > { %v769_v8 = vld [vmem:[%s6513_s21 + $0x40] sm:$0xff] (!%p4677_p5)  ;;  %v893_v9 = vunpack.c.l.s8.bf16 (!%p4677_p5), %v761_v3  ;;  %4696 = vmatprep.subr.bf16.mxu0 (!%p4677_p5), %v901_v4  ;;  %v894_v13 = vunpack.c.h.s8.bf16 (!%p4677_p5), %v761_v3  ;;  %v770_v18 = vld [vmem:[%s6513_s21 + $0x48] sm:$0xff] (!%p4677_p5)  ;;  %v895_v20 = vunpack.c.l.s8.bf16 (!%p4677_p5), %v762_v17  ;;  %v1164_v25 = vunpack.c.l.s4 (!%p4677_p5), %v6040_v24  ;;  %v771_v36 = vld [vmem:[%s6513_s21 + $0x50] sm:$0xff] (!%p4677_p5) }
 0x17f   : > { %v909_v10 = vunpack.c.l.s8.bf16 (!%p4677_p5), %v769_v8  ;;  %4718 = vmatprep.subr.bf16.mxu1 (!%p4677_p5), %v917_v6  ;;  %v910_v14 = vunpack.c.h.s8.bf16 (!%p4677_p5), %v769_v8  ;;  %v911_v21 = vunpack.c.l.s8.bf16 (!%p4677_p5), %v770_v18  ;;  %v1167_v26 = vshrl.u32 (!%p4677_p5), %v1166_v19, 7  ;;  %v756_v32 = vld [vmem:[%s6553_s24] sm:$0xff] (!%p4677_p5)  ;;  %v782_v12 = vld [vmem:[%s6513_s21 + $0xa8] sm:$0xff] (!%p4677_p5) }
 0x180   : > { %4697 = vmatpush3.bf16.msra.mxu0 (!%p4677_p5), %v893_v9  ;;  %v1165_v29 = vunpack.c.0.s8 (!%p4677_p5), %v1164_v25  ;;  %v896_v30 = vunpack.c.h.s8.bf16 (!%p4677_p5), %v762_v17  ;;  %v912_v31 = vunpack.c.h.s8.bf16 (!%p4677_p5), %v770_v18  ;;  %v905_v33 = vunpack.c.l.s8.bf16 (!%p4677_p5), %v767_v27  ;;  %v768_v44 = vld [vmem:[%s6513_s21 + $0x38] sm:$0xff] (!%p4677_p5)  ;;  %v781_v60 = vld [vmem:[%s6513_s21 + $0xa0] sm:$0xff] (!%p4677_p5)  ;;  %v778_v18 = vld [vmem:[%s6513_s21 + $0x88] sm:$0xff] (!%p4677_p5) }
 0x181   : > { %4719 = vmatpush3.bf16.msra.mxu1 (!%p4677_p5), %v909_v10  ;;  %4698 = vmatprep.subr.bf16.mxu0 (!%p4677_p5), %v902_v5  ;;  %v921_v34 = vunpack.c.l.s8.bf16 (!%p4677_p5), %v775_v28  ;;  %v897_v39 = vunpack.c.l.s8.bf16 (!%p4677_p5), %v763_v35  ;;  %v913_v40 = vunpack.c.l.s8.bf16 (!%p4677_p5), %v771_v36  ;;  %v906_v41 = vunpack.c.h.s8.bf16 (!%p4677_p5), %v767_v27  ;;  %v776_v45 = vld [vmem:[%s6513_s21 + $0x78] sm:$0xff] (!%p4677_p5)  ;;  %v789_v61 = vld [vmem:[%s6513_s21 + $0xe0] sm:$0xff] (!%p4677_p5)  ;;  %v783_v25 = vld [vmem:[%s6513_s21 + $0xb0] sm:$0xff] (!%p4677_p5) }
 0x182   : > { %4720 = vmatprep.subr.bf16.mxu1 (!%p4677_p5), %v918_v7  ;;  %v6576_v37 = vsub.s32 (!%p4677_p5), %v1165_v29, %v1167_v26  ;;  %v922_v42 = vunpack.c.h.s8.bf16 (!%p4677_p5), %v775_v28  ;;  %v1162_v46 = vcombine.high (!%p4677_p5), %v756_v32, %v756_v32  ;;  %v898_v48 = vunpack.c.h.s8.bf16 (!%p4677_p5), %v763_v35  ;;  %v764_v52 = vld [vmem:[%s6513_s21 + $0x18] sm:$0xff] (!%p4677_p5)  ;;  %v777_v3 = vld [vmem:[%s6513_s21 + $0x80] sm:$0xff] (!%p4677_p5)  ;;  %v791_v26 = vld [vmem:[%s6513_s21 + $0xf0] sm:$0xff] (!%p4677_p5) }
 0x183   : > { %v914_v49 = vunpack.c.h.s8.bf16 %v771_v36  ;;  %v907_v50 = vunpack.c.l.s8.bf16 %v768_v44  ;;  %v923_v51 = vunpack.c.l.s8.bf16 %v776_v45  ;;  %v772_v53 = vld [vmem:[%s6513_s21 + $0x58] sm:$0xff]  ;;  %v899_v56 = vunpack.c.l.s8.bf16 %v764_v52  ;;  %v785_v5 = vld [vmem:[%s6513_s21 + $0xc0] sm:$0xff] }
 0x184   : > { %4699 = vmatpush3.bf16.msra.mxu0 %v894_v13  ;;  %v1169_v38 = vrot.slane %v756_v32, %v6576_v37  ;;  %v6585_v55 = vrot.slane %v1162_v46, %v6576_v37  ;;  %v915_v57 = vunpack.c.l.s8.bf16 %v772_v53  ;;  %v908_v58 = vunpack.c.h.s8.bf16 %v768_v44  ;;  %v790_v13 = vld [vmem:[%s6513_s21 + $0xe8] sm:$0xff]  ;;  %v787_v32 = vld [vmem:[%s6513_s21 + $0xd0] sm:$0xff]  ;;  %v780_v44 = vld [vmem:[%s6513_s21 + $0x98] sm:$0xff] }
 0x185   : > { %4721 = vmatpush3.bf16.msra.mxu1 %v910_v14  ;;  %4700 = vmatprep.subr.bf16.mxu0 %v903_v15  ;;  %v924_v59 = vunpack.c.h.s8.bf16 %v776_v45  ;;  %v900_v0 = vunpack.c.h.s8.bf16 %v764_v52  ;;  %v916_v1 = vunpack.c.h.s8.bf16 %v772_v53  ;;  %v933_v2 = vunpack.c.l.s8.bf16 %v781_v60  ;;  %v788_v46 = vld [vmem:[%s6513_s21 + $0xd8] sm:$0xff]  ;;  %v797_v52 = vld [vmem:[%s6513_s21 + $0x120] sm:$0xff] }
 0x186   : > { %4722 = vmatprep.subr.bf16.mxu1 %v919_v16  ;;  %v1177_v43 = vcombine.high %v1169_v38, %v1169_v38  ;;  %v1178_v62 = vcombine.high %v6585_v55, %v6585_v55  ;;  %v1185_v63 = vrot.slane %v1169_v38, %v6576_v37  ;;  %v949_v4 = vunpack.c.l.s8.bf16 %v789_v61  ;;  %v784_v38 = vld [vmem:[%s6513_s21 + $0xb8] sm:$0xff]  ;;  %v805_v53 = vld [vmem:[%s6513_s21 + $0x160] sm:$0xff] }
 0x187   : > { %v925_v8 = vunpack.c.l.s8.bf16 %v777_v3  ;;  %v941_v9 = vunpack.c.l.s8.bf16 %v785_v5  ;;  %v934_v10 = vunpack.c.h.s8.bf16 %v781_v60  ;;  %v950_v11 = vunpack.c.h.s8.bf16 %v789_v61  ;;  %v793_v60 = vld [vmem:[%s6513_s21 + $0x100] sm:$0xff] }
 0x188   : > { %4701 = vmatpush3.bf16.msra.mxu0 %v895_v20  ;;  %v1199_v47 = vrot.slane %v1177_v43, %v6576_v37  ;;  %v1206_v6 = vrot.slane %v1178_v62, %v6576_v37  ;;  %v1207_v7 = vcombine.high %v1185_v63, %v1185_v63  ;;  %v926_v15 = vunpack.c.h.s8.bf16 %v777_v3  ;;  %v786_v20 = vld [vmem:[%s6513_s21 + $0xc8] sm:$0xff]  ;;  %v801_v62 = vld [vmem:[%s6513_s21 + $0x140] sm:$0xff] }
 0x189   : > { %4723 = vmatpush3.bf16.msra.mxu1 %v911_v21  ;;  %4702 = vmatprep.subr.bf16.mxu0 %v904_v22  ;;  %v942_v16 = vunpack.c.h.s8.bf16 %v785_v5  ;;  %v935_v17 = vunpack.c.l.s8.bf16 %v782_v12  ;;  %v951_v19 = vunpack.c.l.s8.bf16 %v790_v13  ;;  %v927_v21 = vunpack.c.l.s8.bf16 %v778_v18  ;;  %v806_v5 = vld [vmem:[%s6513_s21 + $0x168] sm:$0xff] }
 0x18a   : > { %4724 = vmatprep.subr.bf16.mxu1 %v920_v23  ;;  %v1209_v54 = vcombine.high %v1199_v47, %v1199_v47  ;;  %1437 = vmatprep.mubr.bf16.mxu0 %v1199_v47  ;;  %v1210_v14 = vcombine.high %v1206_v6, %v1206_v6  ;;  %v943_v22 = vunpack.c.l.s8.bf16 %v786_v20  ;;  %v936_v23 = vunpack.c.h.s8.bf16 %v782_v12  ;;  %v802_v12 = vld [vmem:[%s6513_s21 + $0x148] sm:$0xff] }
 0x18b   : > { %v952_v24 = vunpack.c.h.s8.bf16 %v790_v13  ;;  %v928_v27 = vunpack.c.h.s8.bf16 %v778_v18  ;;  %v944_v28 = vunpack.c.h.s8.bf16 %v786_v20  ;;  %v937_v29 = vunpack.c.l.s8.bf16 %v783_v25  ;;  %v807_v18 = vld [vmem:[%s6513_s21 + $0x170] sm:$0xff] }
 0x18c   : > { %4703 = vmatpush3.bf16.msra.mxu0 %v896_v30  ;;  %1477 = vmatprep.mubr.bf16.mxu1 %v1209_v54  ;;  %v779_v30 = vld [vmem:[%s6513_s21 + $0x90] sm:$0xff]  ;;  %v938_v35 = vunpack.c.h.s8.bf16 %v783_v25  ;;  %v954_v36 = vunpack.c.h.s8.bf16 %v791_v26  ;;  %v939_v43 = vunpack.c.l.s8.bf16 %v784_v38  ;;  %v981_v61 = vunpack.c.l.s8.bf16 %v805_v53 }
 0x18d   : > { %4725 = vmatpush3.bf16.msra.mxu1 %v912_v31  ;;  %4704 = vmatprep.subr.bf16.mxu0 %v905_v33  ;;  %v953_v31 = vunpack.c.l.s8.bf16 %v791_v26  ;;  %v929_v33 = vunpack.c.l.s8.bf16 %v779_v30  ;;  %v982_v3 = vunpack.c.h.s8.bf16 %v805_v53  ;;  %v976_v20 = vunpack.c.h.s8.bf16 %v802_v12 }
 0x18e   : > { %4726 = vmatprep.subr.bf16.mxu1 %v921_v34  ;;  %v945_v34 = vunpack.c.l.s8.bf16 %v787_v32 }
 0x190   : > { %4705 = vmatpush3.bf16.msra.mxu0 %v897_v39  ;;  %v792_v39 = vld [vmem:[%s6513_s21 + $0xf8] sm:$0xff] }
 0x191   : > { %4727 = vmatpush3.bf16.msra.mxu1 %v913_v40  ;;  %4706 = vmatprep.subr.bf16.mxu0 %v906_v41  ;;  %v6606_v40 = vld [vmem:[%s6553_s24 + $0x8] sm:$0xff]  ;;  %v930_v41 = vunpack.c.h.s8.bf16 %v779_v30  ;;  %v955_v45 = vunpack.c.l.s8.bf16 %v792_v39  ;;  %v808_v30 = vld [vmem:[%s6513_s21 + $0x178] sm:$0xff] }
 0x192   : > { %4728 = vmatprep.subr.bf16.mxu1 %v922_v42  ;;  %v946_v42 = vunpack.c.h.s8.bf16 %v787_v32  ;;  %v6612_v47 = vrot.slane %v6606_v40, %v6576_v37 }
 0x194   : > { %4707 = vmatpush3.bf16.msra.mxu0 %v898_v48  ;;  %v931_v48 = vunpack.c.l.s8.bf16 %v780_v44  ;;  %v1226_v54 = vcombine.high %v6612_v47, %v6612_v47 }
 0x195   : > { %4729 = vmatpush3.bf16.msra.mxu1 %v914_v49  ;;  %4708 = vmatprep.subr.bf16.mxu0 %v907_v50  ;;  %v947_v49 = vunpack.c.l.s8.bf16 %v788_v46  ;;  %v940_v50 = vunpack.c.h.s8.bf16 %v784_v38  ;;  %v804_v38 = vld [vmem:[%s6513_s21 + $0x158] sm:$0xff] }
 0x196   : > { %4730 = vmatprep.subr.bf16.mxu1 %v923_v51  ;;  %v956_v51 = vunpack.c.h.s8.bf16 %v792_v39 }
 0x198   : > { %4709 = vmatpush3.bf16.msra.mxu0 %v899_v56  ;;  %v1192_v56 = vrot.slane %v6585_v55, %v6576_v37  ;;  %v966_v55 = vunpack.c.h.s8.bf16 %v797_v52 }
 0x199   : > { %4731 = vmatpush3.bf16.msra.mxu1 %v915_v57  ;;  %4710 = vmatprep.subr.bf16.mxu0 %v908_v58  ;;  %v932_v57 = vunpack.c.h.s8.bf16 %v780_v44  ;;  %v948_v58 = vunpack.c.h.s8.bf16 %v788_v46  ;;  %v813_v44 = vld [vmem:[%s6513_s21 + $0x1a0] sm:$0xff] }
 0x19a   : > { %4732 = vmatprep.subr.bf16.mxu1 %v924_v59  ;;  %v965_v59 = vunpack.c.l.s8.bf16 %v797_v52  ;;  %v809_v52 = vld [vmem:[%s6513_s21 + $0x180] sm:$0xff] }
 0x19c   : > { %4711 = vmatpush3.bf16.msra.mxu0 %v900_v0  ;;  %v1208_v0 = vcombine.high %v1192_v56, %v1192_v56 }
 0x19d   : > { %4733 = vmatpush3.bf16.msra.mxu1 %v916_v1  ;;  %4740 = vmatprep.subr.bf16.mxu0 %v933_v2  ;;  %v957_v1 = vunpack.c.l.s8.bf16 %v793_v60  ;;  %v973_v2 = vunpack.c.l.s8.bf16 %v801_v62 }
 0x19e   : > { %4762 = vmatprep.subr.bf16.mxu1 %v949_v4  ;;  %v798_v4 = vld [vmem:[%s6513_s21 + $0x128] sm:$0xff] }
 0x19f   : > { %1438 = vmatmul.mubr.bf16.vlgmr.msra.gmra.mrb[0].mxu0 %v1185_v63  ;;  %v1248_v63 = vrot.slane %v1226_v54, %v6576_v37  ;;  %v817_v54 = vld [vmem:[%s6513_s21 + $0x1c0] sm:$0xff] }
 0x1a0   : > { %1478 = vmatmul.mubr.bf16.vlgmr.msra.gmra.mrb[0].mxu1 %v1207_v7  ;;  %4741 = vmatpush3.bf16.msra.mxu0 %v925_v8  ;;  %v958_v7 = vunpack.c.h.s8.bf16 %v793_v60  ;;  %v974_v8 = vunpack.c.h.s8.bf16 %v801_v62  ;;  %v822_v62 = vld [vmem:[%s6513_s21 + $0x1e8] sm:$0xff] }
 0x1a1   : > { %4763 = vmatpush3.bf16.msra.mxu1 %v941_v9  ;;  %4742 = vmatprep.subr.bf16.mxu0 %v934_v10  ;;  %v967_v9 = vunpack.c.l.s8.bf16 %v798_v4  ;;  %v794_v10 = vld [vmem:[%s6513_s21 + $0x108] sm:$0xff] }
 0x1a2   : > { %4764 = vmatprep.subr.bf16.mxu1 %v950_v11  ;;  %1517 = vmatprep.mubr.bf16.mxu0 %v1206_v6  ;;  %v1258_v6 = vcombine.high %v1248_v63, %v1248_v63  ;;  %v983_v11 = vunpack.c.l.s8.bf16 %v806_v5  ;;  %v959_v13 = vunpack.c.l.s8.bf16 %v794_v10 }
 0x1a3   : > { %1557 = vmatprep.mubr.bf16.mxu1 %v1210_v14  ;;  %v975_v14 = vunpack.c.l.s8.bf16 %v802_v12 }
 0x1a4   : > { %4743 = vmatpush3.bf16.msra.mxu0 %v926_v15  ;;  %v968_v15 = vunpack.c.h.s8.bf16 %v798_v4  ;;  %v818_v4 = vld [vmem:[%s6513_s21 + $0x1c8] sm:$0xff] }
 0x1a5   : > { %4765 = vmatpush3.bf16.msra.mxu1 %v942_v16  ;;  %4744 = vmatprep.subr.bf16.mxu0 %v935_v17  ;;  %v984_v16 = vunpack.c.h.s8.bf16 %v806_v5  ;;  %v799_v17 = vld [vmem:[%s6513_s21 + $0x130] sm:$0xff]  ;;  %v1008_v12 = vunpack.c.h.s8.bf16 %v818_v4 }
 0x1a6   : > { %4766 = vmatprep.subr.bf16.mxu1 %v951_v19  ;;  %v960_v19 = vunpack.c.h.s8.bf16 %v794_v10  ;;  %v823_v10 = vld [vmem:[%s6513_s21 + $0x1f0] sm:$0xff] }
 0x1a8   : > { %4745 = vmatpush3.bf16.msra.mxu0 %v927_v21  ;;  %v969_v21 = vunpack.c.l.s8.bf16 %v799_v17 }
 0x1a9   : > { %4767 = vmatpush3.bf16.msra.mxu1 %v943_v22  ;;  %4746 = vmatprep.subr.bf16.mxu0 %v936_v23  ;;  %v795_v22 = vld [vmem:[%s6513_s21 + $0x110] sm:$0xff]  ;;  %v985_v23 = vunpack.c.l.s8.bf16 %v807_v18 }
 0x1aa   : > { %4768 = vmatprep.subr.bf16.mxu1 %v952_v24  ;;  %v803_v24 = vld [vmem:[%s6513_s21 + $0x150] sm:$0xff]  ;;  %v961_v25 = vunpack.c.l.s8.bf16 %v795_v22  ;;  %v962_v32 = vunpack.c.h.s8.bf16 %v795_v22  ;;  %v824_v22 = vld [vmem:[%s6513_s21 + $0x1f8] sm:$0xff] }
 0x1ab   : > { %v977_v26 = vunpack.c.l.s8.bf16 %v803_v24 }
 0x1ac   : > { %4747 = vmatpush3.bf16.msra.mxu0 %v928_v27  ;;  %v970_v27 = vunpack.c.h.s8.bf16 %v799_v17 }
 0x1ad   : > { %4769 = vmatpush3.bf16.msra.mxu1 %v944_v28  ;;  %4748 = vmatprep.subr.bf16.mxu0 %v937_v29  ;;  %v986_v28 = vunpack.c.h.s8.bf16 %v807_v18  ;;  %v800_v29 = vld [vmem:[%s6513_s21 + $0x138] sm:$0xff] }
 0x1ae   : > { %4770 = vmatprep.subr.bf16.mxu1 %v953_v31  ;;  %v1211_v31 = vcombine.high %v6606_v40, %v6606_v40  ;;  %v972_v40 = vunpack.c.h.s8.bf16 %v800_v29 }
 0x1b0   : > { %4749 = vmatpush3.bf16.msra.mxu0 %v929_v33  ;;  %v978_v33 = vunpack.c.h.s8.bf16 %v803_v24  ;;  %v6638_v39 = vrot.slane %v1211_v31, %v6576_v37 }
 0x1b1   : > { %4771 = vmatpush3.bf16.msra.mxu1 %v945_v34  ;;  %4750 = vmatprep.subr.bf16.mxu0 %v938_v35  ;;  %v971_v34 = vunpack.c.l.s8.bf16 %v800_v29  ;;  %v796_v35 = vld [vmem:[%s6513_s21 + $0x118] sm:$0xff] }
 0x1b2   : > { %4772 = vmatprep.subr.bf16.mxu1 %v954_v36  ;;  %v987_v36 = vunpack.c.l.s8.bf16 %v808_v30  ;;  %v1227_v46 = vcombine.high %v6638_v39, %v6638_v39  ;;  %v820_v29 = vld [vmem:[%s6513_s21 + $0x1d8] sm:$0xff] }
 0x1b4   : > { %4751 = vmatpush3.bf16.msra.mxu0 %v930_v41  ;;  %v963_v41 = vunpack.c.l.s8.bf16 %v796_v35 }
 0x1b5   : > { %4773 = vmatpush3.bf16.msra.mxu1 %v946_v42  ;;  %4752 = vmatprep.subr.bf16.mxu0 %v939_v43  ;;  %v979_v42 = vunpack.c.l.s8.bf16 %v804_v38  ;;  %v988_v43 = vunpack.c.h.s8.bf16 %v808_v30 }
 0x1b6   : > { %4774 = vmatprep.subr.bf16.mxu1 %v955_v45  ;;  %v821_v45 = vld [vmem:[%s6513_s21 + $0x1e0] sm:$0xff] }
 0x1b7   : > { %v1013_v53 = vunpack.c.l.s8.bf16 %v821_v45  ;;  %v1014_v60 = vunpack.c.h.s8.bf16 %v821_v45 }
 0x1b8   : > { %4753 = vmatpush3.bf16.msra.mxu0 %v931_v48  ;;  %v1234_v48 = vrot.slane %v6612_v47, %v6576_v37  ;;  %v998_v47 = vunpack.c.h.s8.bf16 %v813_v44 }
 0x1b9   : > { %4775 = vmatpush3.bf16.msra.mxu1 %v947_v49  ;;  %4754 = vmatprep.subr.bf16.mxu0 %v940_v50  ;;  %v964_v49 = vunpack.c.h.s8.bf16 %v796_v35  ;;  %v980_v50 = vunpack.c.h.s8.bf16 %v804_v38  ;;  %v829_v35 = vld [vmem:[%s6513_s21 + $0x220] sm:$0xff] }
 0x1ba   : > { %4776 = vmatprep.subr.bf16.mxu1 %v956_v51  ;;  %v997_v51 = vunpack.c.l.s8.bf16 %v813_v44  ;;  %v825_v44 = vld [vmem:[%s6513_s21 + $0x200] sm:$0xff] }
 0x1bc   : > { %4755 = vmatpush3.bf16.msra.mxu0 %v932_v57  ;;  %v1256_v57 = vcombine.high %v1234_v48, %v1234_v48 }
 0x1bd   : > { %4777 = vmatpush3.bf16.msra.mxu1 %v948_v58  ;;  %4784 = vmatprep.subr.bf16.mxu0 %v965_v59  ;;  %v989_v58 = vunpack.c.l.s8.bf16 %v809_v52  ;;  %v1005_v59 = vunpack.c.l.s8.bf16 %v817_v54 }
 0x1be   : > { %4806 = vmatprep.subr.bf16.mxu1 %v981_v61  ;;  %v814_v61 = vld [vmem:[%s6513_s21 + $0x1a8] sm:$0xff] }
 0x1bf   : > { %1518 = vmatmul.mubr.bf16.vlgmr.msra.gmra.mrb[4].mxu0 %v1192_v56  ;;  %v1255_v56 = vrot.slane %v1227_v46, %v6576_v37  ;;  %v833_v46 = vld [vmem:[%s6513_s21 + $0x240] sm:$0xff] }
 0x1c0   : > { %1558 = vmatmul.mubr.bf16.vlgmr.msra.gmra.mrb[4].mxu1 %v1208_v0  ;;  %4785 = vmatpush3.bf16.msra.mxu0 %v957_v1  ;;  %v990_v0 = vunpack.c.h.s8.bf16 %v809_v52  ;;  %v1006_v1 = vunpack.c.h.s8.bf16 %v817_v54  ;;  %v838_v54 = vld [vmem:[%s6513_s21 + $0x268] sm:$0xff] }
 0x1c1   : > { %4807 = vmatpush3.bf16.msra.mxu1 %v973_v2  ;;  %4786 = vmatprep.subr.bf16.mxu0 %v966_v55  ;;  %v999_v2 = vunpack.c.l.s8.bf16 %v814_v61  ;;  %v810_v55 = vld [vmem:[%s6513_s21 + $0x188] sm:$0xff] }
 0x1c2   : > { %4808 = vmatprep.subr.bf16.mxu1 %v982_v3  ;;  %1597 = vmatprep.mubr.bf16.mxu0 %v1248_v63  ;;  %v1259_v63 = vcombine.high %v1255_v56, %v1255_v56  ;;  %v1015_v3 = vunpack.c.l.s8.bf16 %v822_v62  ;;  %v991_v5 = vunpack.c.l.s8.bf16 %v810_v55 }
 0x1c3   : > { %1637 = vmatprep.mubr.bf16.mxu1 %v1258_v6  ;;  %v1007_v6 = vunpack.c.l.s8.bf16 %v818_v4 }
 0x1c4   : > { %4787 = vmatpush3.bf16.msra.mxu0 %v958_v7  ;;  %v1000_v7 = vunpack.c.h.s8.bf16 %v814_v61  ;;  %v834_v61 = vld [vmem:[%s6513_s21 + $0x248] sm:$0xff] }
 0x1c5   : > { %4809 = vmatpush3.bf16.msra.mxu1 %v974_v8  ;;  %4788 = vmatprep.subr.bf16.mxu0 %v967_v9  ;;  %v1016_v8 = vunpack.c.h.s8.bf16 %v822_v62  ;;  %v815_v9 = vld [vmem:[%s6513_s21 + $0x1b0] sm:$0xff]  ;;  %v1040_v4 = vunpack.c.h.s8.bf16 %v834_v61 }
 0x1c6   : > { %4810 = vmatprep.subr.bf16.mxu1 %v983_v11  ;;  %v992_v11 = vunpack.c.h.s8.bf16 %v810_v55  ;;  %v839_v55 = vld [vmem:[%s6513_s21 + $0x270] sm:$0xff] }
 0x1c8   : > { %4789 = vmatpush3.bf16.msra.mxu0 %v959_v13  ;;  %v1001_v13 = vunpack.c.l.s8.bf16 %v815_v9 }
 0x1c9   : > { %4811 = vmatpush3.bf16.msra.mxu1 %v975_v14  ;;  %4790 = vmatprep.subr.bf16.mxu0 %v968_v15  ;;  %v811_v14 = vld [vmem:[%s6513_s21 + $0x190] sm:$0xff]  ;;  %v1017_v15 = vunpack.c.l.s8.bf16 %v823_v10 }
 0x1ca   : > { %4812 = vmatprep.subr.bf16.mxu1 %v984_v16  ;;  %v819_v16 = vld [vmem:[%s6513_s21 + $0x1d0] sm:$0xff]  ;;  %v993_v17 = vunpack.c.l.s8.bf16 %v811_v14  ;;  %v994_v24 = vunpack.c.h.s8.bf16 %v811_v14  ;;  %v840_v14 = vld [vmem:[%s6513_s21 + $0x278] sm:$0xff] }
 0x1cb   : > { %v1009_v18 = vunpack.c.l.s8.bf16 %v819_v16 }
 0x1cc   : > { %4791 = vmatpush3.bf16.msra.mxu0 %v960_v19  ;;  %v1002_v19 = vunpack.c.h.s8.bf16 %v815_v9 }
 0x1cd   : > { %4813 = vmatpush3.bf16.msra.mxu1 %v976_v20  ;;  %4792 = vmatprep.subr.bf16.mxu0 %v969_v21  ;;  %v1018_v20 = vunpack.c.h.s8.bf16 %v823_v10  ;;  %v816_v21 = vld [vmem:[%s6513_s21 + $0x1b8] sm:$0xff] }
 0x1ce   : > { %4814 = vmatprep.subr.bf16.mxu1 %v985_v23  ;;  %v6660_v23 = vld [vmem:[%s6553_s24 + $0x10] sm:$0xff] }
 0x1cf   : > { %v6666_v30 = vrot.slane %v6660_v23, %v6576_v37 }
 0x1d0   : > { %4793 = vmatpush3.bf16.msra.mxu0 %v961_v25  ;;  %v1010_v25 = vunpack.c.h.s8.bf16 %v819_v16 }
 0x1d1   : > { %4815 = vmatpush3.bf16.msra.mxu1 %v977_v26  ;;  %4794 = vmatprep.subr.bf16.mxu0 %v970_v27  ;;  %v1003_v26 = vunpack.c.l.s8.bf16 %v816_v21  ;;  %v812_v27 = vld [vmem:[%s6513_s21 + $0x198] sm:$0xff]  ;;  %v1275_v38 = vcombine.high %v6666_v30, %v6666_v30 }
 0x1d2   : > { %4816 = vmatprep.subr.bf16.mxu1 %v986_v28  ;;  %v1019_v28 = vunpack.c.l.s8.bf16 %v824_v22  ;;  %v995_v31 = vunpack.c.l.s8.bf16 %v812_v27 }
 0x1d4   : > { %4795 = vmatpush3.bf16.msra.mxu0 %v962_v32  ;;  %v1011_v32 = vunpack.c.l.s8.bf16 %v820_v29 }
 0x1d5   : > { %4817 = vmatpush3.bf16.msra.mxu1 %v978_v33  ;;  %4796 = vmatprep.subr.bf16.mxu0 %v971_v34  ;;  %v1004_v33 = vunpack.c.h.s8.bf16 %v816_v21  ;;  %v1020_v34 = vunpack.c.h.s8.bf16 %v824_v22  ;;  %v836_v21 = vld [vmem:[%s6513_s21 + $0x258] sm:$0xff] }
 0x1d6   : > { %4818 = vmatprep.subr.bf16.mxu1 %v987_v36  ;;  %v837_v36 = vld [vmem:[%s6513_s21 + $0x260] sm:$0xff] }
 0x1d7   : > { %v1045_v45 = vunpack.c.l.s8.bf16 %v837_v36  ;;  %v1046_v52 = vunpack.c.h.s8.bf16 %v837_v36 }
 0x1d8   : > { %4797 = vmatpush3.bf16.msra.mxu0 %v963_v41  ;;  %v1241_v41 = vrot.slane %v6638_v39, %v6576_v37  ;;  %v1030_v39 = vunpack.c.h.s8.bf16 %v829_v35 }
 0x1d9   : > { %4819 = vmatpush3.bf16.msra.mxu1 %v979_v42  ;;  %4798 = vmatprep.subr.bf16.mxu0 %v972_v40  ;;  %v996_v42 = vunpack.c.h.s8.bf16 %v812_v27  ;;  %v1012_v40 = vunpack.c.h.s8.bf16 %v820_v29  ;;  %v845_v27 = vld [vmem:[%s6513_s21 + $0x2a0] sm:$0xff] }
 0x1da   : > { %4820 = vmatprep.subr.bf16.mxu1 %v988_v43  ;;  %v1029_v43 = vunpack.c.l.s8.bf16 %v829_v35  ;;  %v841_v35 = vld [vmem:[%s6513_s21 + $0x280] sm:$0xff] }
 0x1dc   : > { %4799 = vmatpush3.bf16.msra.mxu0 %v964_v49  ;;  %v1257_v49 = vcombine.high %v1241_v41, %v1241_v41 }
 0x1dd   : > { %4821 = vmatpush3.bf16.msra.mxu1 %v980_v50  ;;  %4828 = vmatprep.subr.bf16.mxu0 %v997_v51  ;;  %v1021_v50 = vunpack.c.l.s8.bf16 %v825_v44  ;;  %v1037_v51 = vunpack.c.l.s8.bf16 %v833_v46 }
 0x1de   : > { %4850 = vmatprep.subr.bf16.mxu1 %v1013_v53  ;;  %v830_v53 = vld [vmem:[%s6513_s21 + $0x228] sm:$0xff] }
 0x1df   : > { %1598 = vmatmul.mubr.bf16.vlgmr.msra.gmra.mrb[8].mxu0 %v1234_v48  ;;  %v1297_v48 = vrot.slane %v1275_v38, %v6576_v37  ;;  %v849_v38 = vld [vmem:[%s6513_s21 + $0x2c0] sm:$0xff] }
 0x1e0   : > { %1638 = vmatmul.mubr.bf16.vlgmr.msra.gmra.mrb[8].mxu1 %v1256_v57  ;;  %4829 = vmatpush3.bf16.msra.mxu0 %v989_v58  ;;  %v1022_v57 = vunpack.c.h.s8.bf16 %v825_v44  ;;  %v1038_v58 = vunpack.c.h.s8.bf16 %v833_v46  ;;  %v854_v46 = vld [vmem:[%s6513_s21 + $0x2e8] sm:$0xff] }
 0x1e1   : > { %4851 = vmatpush3.bf16.msra.mxu1 %v1005_v59  ;;  %4830 = vmatprep.subr.bf16.mxu0 %v998_v47  ;;  %v1031_v59 = vunpack.c.l.s8.bf16 %v830_v53  ;;  %v826_v47 = vld [vmem:[%s6513_s21 + $0x208] sm:$0xff] }
 0x1e2   : > { %4852 = vmatprep.subr.bf16.mxu1 %v1014_v60  ;;  %1677 = vmatprep.mubr.bf16.mxu0 %v1255_v56  ;;  %v1307_v56 = vcombine.high %v1297_v48, %v1297_v48  ;;  %v1047_v60 = vunpack.c.l.s8.bf16 %v838_v54  ;;  %v1023_v62 = vunpack.c.l.s8.bf16 %v826_v47 }
 0x1e3   : > { %1717 = vmatprep.mubr.bf16.mxu1 %v1259_v63  ;;  %v1039_v63 = vunpack.c.l.s8.bf16 %v834_v61 }
 0x1e4   : > { %4831 = vmatpush3.bf16.msra.mxu0 %v990_v0  ;;  %v1032_v0 = vunpack.c.h.s8.bf16 %v830_v53  ;;  %v850_v53 = vld [vmem:[%s6513_s21 + $0x2c8] sm:$0xff] }
 0x1e5   : > { %4853 = vmatpush3.bf16.msra.mxu1 %v1006_v1  ;;  %4832 = vmatprep.subr.bf16.mxu0 %v999_v2  ;;  %v1048_v1 = vunpack.c.h.s8.bf16 %v838_v54  ;;  %v831_v2 = vld [vmem:[%s6513_s21 + $0x230] sm:$0xff]  ;;  %v1072_v61 = vunpack.c.h.s8.bf16 %v850_v53 }
 0x1e6   : > { %4854 = vmatprep.subr.bf16.mxu1 %v1015_v3  ;;  %v1024_v3 = vunpack.c.h.s8.bf16 %v826_v47  ;;  %v855_v47 = vld [vmem:[%s6513_s21 + $0x2f0] sm:$0xff] }
 0x1e8   : > { %4833 = vmatpush3.bf16.msra.mxu0 %v991_v5  ;;  %v1033_v5 = vunpack.c.l.s8.bf16 %v831_v2 }
 0x1e9   : > { %4855 = vmatpush3.bf16.msra.mxu1 %v1007_v6  ;;  %4834 = vmatprep.subr.bf16.mxu0 %v1000_v7  ;;  %v827_v6 = vld [vmem:[%s6513_s21 + $0x210] sm:$0xff]  ;;  %v1049_v7 = vunpack.c.l.s8.bf16 %v839_v55 }
 0x1ea   : > { %4856 = vmatprep.subr.bf16.mxu1 %v1016_v8  ;;  %v835_v8 = vld [vmem:[%s6513_s21 + $0x250] sm:$0xff]  ;;  %v1025_v9 = vunpack.c.l.s8.bf16 %v827_v6  ;;  %v1026_v16 = vunpack.c.h.s8.bf16 %v827_v6  ;;  %v856_v6 = vld [vmem:[%s6513_s21 + $0x2f8] sm:$0xff] }
 0x1eb   : > { %v1041_v10 = vunpack.c.l.s8.bf16 %v835_v8 }
 0x1ec   : > { %4835 = vmatpush3.bf16.msra.mxu0 %v992_v11  ;;  %v1034_v11 = vunpack.c.h.s8.bf16 %v831_v2 }
 0x1ed   : > { %4857 = vmatpush3.bf16.msra.mxu1 %v1008_v12  ;;  %4836 = vmatprep.subr.bf16.mxu0 %v1001_v13  ;;  %v1050_v12 = vunpack.c.h.s8.bf16 %v839_v55  ;;  %v832_v13 = vld [vmem:[%s6513_s21 + $0x238] sm:$0xff] }
 0x1ee   : > { %4858 = vmatprep.subr.bf16.mxu1 %v1017_v15  ;;  %v1260_v15 = vcombine.high %v6660_v23, %v6660_v23  ;;  %v1036_v23 = vunpack.c.h.s8.bf16 %v832_v13 }
 0x1f0   : > { %4837 = vmatpush3.bf16.msra.mxu0 %v993_v17  ;;  %v1042_v17 = vunpack.c.h.s8.bf16 %v835_v8  ;;  %v6692_v22 = vrot.slane %v1260_v15, %v6576_v37 }
 0x1f1   : > { %4859 = vmatpush3.bf16.msra.mxu1 %v1009_v18  ;;  %4838 = vmatprep.subr.bf16.mxu0 %v1002_v19  ;;  %v1035_v18 = vunpack.c.l.s8.bf16 %v832_v13  ;;  %v828_v19 = vld [vmem:[%s6513_s21 + $0x218] sm:$0xff] }
 0x1f2   : > { %4860 = vmatprep.subr.bf16.mxu1 %v1018_v20  ;;  %v1051_v20 = vunpack.c.l.s8.bf16 %v840_v14  ;;  %v1276_v29 = vcombine.high %v6692_v22, %v6692_v22  ;;  %v852_v13 = vld [vmem:[%s6513_s21 + $0x2d8] sm:$0xff] }
 0x1f4   : > { %4839 = vmatpush3.bf16.msra.mxu0 %v994_v24  ;;  %v1027_v24 = vunpack.c.l.s8.bf16 %v828_v19 }
 0x1f5   : > { %4861 = vmatpush3.bf16.msra.mxu1 %v1010_v25  ;;  %4840 = vmatprep.subr.bf16.mxu0 %v1003_v26  ;;  %v1043_v25 = vunpack.c.l.s8.bf16 %v836_v21  ;;  %v1052_v26 = vunpack.c.h.s8.bf16 %v840_v14 }
 0x1f6   : > { %4862 = vmatprep.subr.bf16.mxu1 %v1019_v28  ;;  %v853_v28 = vld [vmem:[%s6513_s21 + $0x2e0] sm:$0xff] }
 0x1f7   : > { %v1077_v36 = vunpack.c.l.s8.bf16 %v853_v28  ;;  %v1078_v44 = vunpack.c.h.s8.bf16 %v853_v28 }
 0x1f8   : > { %4841 = vmatpush3.bf16.msra.mxu0 %v995_v31  ;;  %v1283_v31 = vrot.slane %v6666_v30, %v6576_v37  ;;  %v1062_v30 = vunpack.c.h.s8.bf16 %v845_v27 }
 0x1f9   : > { %4863 = vmatpush3.bf16.msra.mxu1 %v1011_v32  ;;  %4842 = vmatprep.subr.bf16.mxu0 %v1004_v33  ;;  %v1028_v32 = vunpack.c.h.s8.bf16 %v828_v19  ;;  %v1044_v33 = vunpack.c.h.s8.bf16 %v836_v21  ;;  %v861_v19 = vld [vmem:[%s6513_s21 + $0x320] sm:$0xff] }
 0x1fa   : > { %4864 = vmatprep.subr.bf16.mxu1 %v1020_v34  ;;  %v1061_v34 = vunpack.c.l.s8.bf16 %v845_v27  ;;  %v857_v27 = vld [vmem:[%s6513_s21 + $0x300] sm:$0xff] }
 0x1fc   : > { %4843 = vmatpush3.bf16.msra.mxu0 %v996_v42  ;;  %v1305_v42 = vcombine.high %v1283_v31, %v1283_v31 }
 0x1fd   : > { %4865 = vmatpush3.bf16.msra.mxu1 %v1012_v40  ;;  %4872 = vmatprep.subr.bf16.mxu0 %v1029_v43  ;;  %v1053_v40 = vunpack.c.l.s8.bf16 %v841_v35  ;;  %v1069_v43 = vunpack.c.l.s8.bf16 %v849_v38 }
 0x1fe   : > { %4894 = vmatprep.subr.bf16.mxu1 %v1045_v45  ;;  %v846_v45 = vld [vmem:[%s6513_s21 + $0x2a8] sm:$0xff] }
 0x1ff   : > { %1678 = vmatmul.mubr.bf16.vlgmr.msra.gmra.mrb[12].mxu0 %v1241_v41  ;;  %v1304_v41 = vrot.slane %v1276_v29, %v6576_v37  ;;  %v865_v29 = vld [vmem:[%s6513_s21 + $0x340] sm:$0xff] }
 0x200   : > { %1718 = vmatmul.mubr.bf16.vlgmr.msra.gmra.mrb[12].mxu1 %v1257_v49  ;;  %4873 = vmatpush3.bf16.msra.mxu0 %v1021_v50  ;;  %v1054_v49 = vunpack.c.h.s8.bf16 %v841_v35  ;;  %v1070_v50 = vunpack.c.h.s8.bf16 %v849_v38  ;;  %v870_v38 = vld [vmem:[%s6513_s21 + $0x368] sm:$0xff] }
 0x201   : > { %4895 = vmatpush3.bf16.msra.mxu1 %v1037_v51  ;;  %4874 = vmatprep.subr.bf16.mxu0 %v1030_v39  ;;  %v1063_v51 = vunpack.c.l.s8.bf16 %v846_v45  ;;  %v842_v39 = vld [vmem:[%s6513_s21 + $0x288] sm:$0xff] }
 0x202   : > { %4896 = vmatprep.subr.bf16.mxu1 %v1046_v52  ;;  %1757 = vmatprep.mubr.bf16.mxu0 %v1297_v48  ;;  %v1308_v48 = vcombine.high %v1304_v41, %v1304_v41  ;;  %v1079_v52 = vunpack.c.l.s8.bf16 %v854_v46  ;;  %v1055_v54 = vunpack.c.l.s8.bf16 %v842_v39 }
 0x203   : > { %1797 = vmatprep.mubr.bf16.mxu1 %v1307_v56  ;;  %v1071_v56 = vunpack.c.l.s8.bf16 %v850_v53 }
 0x204   : > { %4875 = vmatpush3.bf16.msra.mxu0 %v1022_v57  ;;  %v1064_v57 = vunpack.c.h.s8.bf16 %v846_v45  ;;  %v866_v45 = vld [vmem:[%s6513_s21 + $0x348] sm:$0xff] }
 0x205   : > { %4897 = vmatpush3.bf16.msra.mxu1 %v1038_v58  ;;  %4876 = vmatprep.subr.bf16.mxu0 %v1031_v59  ;;  %v1080_v58 = vunpack.c.h.s8.bf16 %v854_v46  ;;  %v847_v59 = vld [vmem:[%s6513_s21 + $0x2b0] sm:$0xff]  ;;  %v1104_v53 = vunpack.c.h.s8.bf16 %v866_v45 }
 0x206   : > { %4898 = vmatprep.subr.bf16.mxu1 %v1047_v60  ;;  %v1056_v60 = vunpack.c.h.s8.bf16 %v842_v39  ;;  %v871_v39 = vld [vmem:[%s6513_s21 + $0x370] sm:$0xff] }
 0x208   : > { %4877 = vmatpush3.bf16.msra.mxu0 %v1023_v62  ;;  %v1065_v62 = vunpack.c.l.s8.bf16 %v847_v59 }
 0x209   : > { %4899 = vmatpush3.bf16.msra.mxu1 %v1039_v63  ;;  %4878 = vmatprep.subr.bf16.mxu0 %v1032_v0  ;;  %v843_v63 = vld [vmem:[%s6513_s21 + $0x290] sm:$0xff]  ;;  %v1081_v0 = vunpack.c.l.s8.bf16 %v855_v47 }
 0x20a   : > { %4900 = vmatprep.subr.bf16.mxu1 %v1048_v1  ;;  %v851_v1 = vld [vmem:[%s6513_s21 + $0x2d0] sm:$0xff]  ;;  %v1057_v2 = vunpack.c.l.s8.bf16 %v843_v63  ;;  %v1058_v8 = vunpack.c.h.s8.bf16 %v843_v63  ;;  %v872_v63 = vld [vmem:[%s6513_s21 + $0x378] sm:$0xff] }
 0x20b   : > { %v1073_v55 = vunpack.c.l.s8.bf16 %v851_v1 }
 0x20c   : > { %4879 = vmatpush3.bf16.msra.mxu0 %v1024_v3  ;;  %v1066_v3 = vunpack.c.h.s8.bf16 %v847_v59 }
 0x20d   : > { %4901 = vmatpush3.bf16.msra.mxu1 %v1040_v4  ;;  %4880 = vmatprep.subr.bf16.mxu0 %v1033_v5  ;;  %v1082_v4 = vunpack.c.h.s8.bf16 %v855_v47  ;;  %v848_v5 = vld [vmem:[%s6513_s21 + $0x2b8] sm:$0xff] }
 0x20e   : > { %4902 = vmatprep.subr.bf16.mxu1 %v1049_v7  ;;  %v6714_v7 = vld [vmem:[%s6553_s24 + $0x18] sm:$0xff] }
 0x20f   : > { %v6720_v14 = vrot.slane %v6714_v7, %v6576_v37 }
 0x210   : > { %4881 = vmatpush3.bf16.msra.mxu0 %v1025_v9  ;;  %v1074_v9 = vunpack.c.h.s8.bf16 %v851_v1 }
 0x211   : > { %4903 = vmatpush3.bf16.msra.mxu1 %v1041_v10  ;;  %4882 = vmatprep.subr.bf16.mxu0 %v1034_v11  ;;  %v1067_v10 = vunpack.c.l.s8.bf16 %v848_v5  ;;  %v844_v11 = vld [vmem:[%s6513_s21 + $0x298] sm:$0xff]  ;;  %v1324_v21 = vcombine.high %v6720_v14, %v6720_v14 }
 0x212   : > { %4904 = vmatprep.subr.bf16.mxu1 %v1050_v12  ;;  %v1083_v12 = vunpack.c.l.s8.bf16 %v856_v6  ;;  %v1059_v15 = vunpack.c.l.s8.bf16 %v844_v11 }
 0x214   : > { %4883 = vmatpush3.bf16.msra.mxu0 %v1026_v16  ;;  %v1075_v16 = vunpack.c.l.s8.bf16 %v852_v13 }
 0x215   : > { %4905 = vmatpush3.bf16.msra.mxu1 %v1042_v17  ;;  %4884 = vmatprep.subr.bf16.mxu0 %v1035_v18  ;;  %v1068_v17 = vunpack.c.h.s8.bf16 %v848_v5  ;;  %v1084_v18 = vunpack.c.h.s8.bf16 %v856_v6  ;;  %v868_v5 = vld [vmem:[%s6513_s21 + $0x358] sm:$0xff] }
 0x216   : > { %4906 = vmatprep.subr.bf16.mxu1 %v1051_v20  ;;  %v869_v20 = vld [vmem:[%s6513_s21 + $0x360] sm:$0xff] }
 0x217   : > { %v1109_v28 = vunpack.c.l.s8.bf16 %v869_v20  ;;  %v1110_v35 = vunpack.c.h.s8.bf16 %v869_v20 }
 0x218   : > { %4885 = vmatpush3.bf16.msra.mxu0 %v1027_v24  ;;  %v1290_v24 = vrot.slane %v6692_v22, %v6576_v37  ;;  %v1094_v22 = vunpack.c.h.s8.bf16 %v861_v19 }
 0x219   : > { %4907 = vmatpush3.bf16.msra.mxu1 %v1043_v25  ;;  %4886 = vmatprep.subr.bf16.mxu0 %v1036_v23  ;;  %v1060_v25 = vunpack.c.h.s8.bf16 %v844_v11  ;;  %v1076_v23 = vunpack.c.h.s8.bf16 %v852_v13  ;;  %v877_v11 = vld [vmem:[%s6513_s21 + $0x3a0] sm:$0xff] }
 0x21a   : > { %4908 = vmatprep.subr.bf16.mxu1 %v1052_v26  ;;  %v1093_v26 = vunpack.c.l.s8.bf16 %v861_v19  ;;  %v873_v19 = vld [vmem:[%s6513_s21 + $0x380] sm:$0xff] }
 0x21c   : > { %4887 = vmatpush3.bf16.msra.mxu0 %v1028_v32  ;;  %v1306_v32 = vcombine.high %v1290_v24, %v1290_v24 }
 0x21d   : > { %4909 = vmatpush3.bf16.msra.mxu1 %v1044_v33  ;;  %4916 = vmatprep.subr.bf16.mxu0 %v1061_v34  ;;  %v1085_v33 = vunpack.c.l.s8.bf16 %v857_v27  ;;  %v1101_v34 = vunpack.c.l.s8.bf16 %v865_v29 }
 0x21e   : > { %4938 = vmatprep.subr.bf16.mxu1 %v1077_v36  ;;  %v862_v36 = vld [vmem:[%s6513_s21 + $0x328] sm:$0xff] }
 0x21f   : > { %1758 = vmatmul.mubr.bf16.vlgmr.msra.gmra.mrb[16].mxu0 %v1283_v31  ;;  %v1346_v31 = vrot.slane %v1324_v21, %v6576_v37  ;;  %v881_v21 = vld [vmem:[%s6513_s21 + $0x3c0] sm:$0xff] }
 0x220   : > { %1798 = vmatmul.mubr.bf16.vlgmr.msra.gmra.mrb[16].mxu1 %v1305_v42  ;;  %4917 = vmatpush3.bf16.msra.mxu0 %v1053_v40  ;;  %v1086_v42 = vunpack.c.h.s8.bf16 %v857_v27  ;;  %v1102_v40 = vunpack.c.h.s8.bf16 %v865_v29  ;;  %v886_v29 = vld [vmem:[%s6513_s21 + $0x3e8] sm:$0xff] }
 0x221   : > { %4939 = vmatpush3.bf16.msra.mxu1 %v1069_v43  ;;  %4918 = vmatprep.subr.bf16.mxu0 %v1062_v30  ;;  %v1095_v43 = vunpack.c.l.s8.bf16 %v862_v36  ;;  %v858_v30 = vld [vmem:[%s6513_s21 + $0x308] sm:$0xff] }
 0x222   : > { %4940 = vmatprep.subr.bf16.mxu1 %v1078_v44  ;;  %1837 = vmatprep.mubr.bf16.mxu0 %v1304_v41  ;;  %v1356_v41 = vcombine.high %v1346_v31, %v1346_v31  ;;  %v1111_v44 = vunpack.c.l.s8.bf16 %v870_v38  ;;  %v1087_v46 = vunpack.c.l.s8.bf16 %v858_v30 }
 0x223   : > { %1877 = vmatprep.mubr.bf16.mxu1 %v1308_v48  ;;  %v1103_v48 = vunpack.c.l.s8.bf16 %v866_v45 }
 0x224   : > { %4919 = vmatpush3.bf16.msra.mxu0 %v1054_v49  ;;  %v1096_v49 = vunpack.c.h.s8.bf16 %v862_v36  ;;  %v882_v36 = vld [vmem:[%s6513_s21 + $0x3c8] sm:$0xff] }
 0x225   : > { %4941 = vmatpush3.bf16.msra.mxu1 %v1070_v50  ;;  %4920 = vmatprep.subr.bf16.mxu0 %v1063_v51  ;;  %v1112_v50 = vunpack.c.h.s8.bf16 %v870_v38  ;;  %v863_v51 = vld [vmem:[%s6513_s21 + $0x330] sm:$0xff]  ;;  %v1136_v45 = vunpack.c.h.s8.bf16 %v882_v36 }
 0x226   : > { %4942 = vmatprep.subr.bf16.mxu1 %v1079_v52  ;;  %v1088_v52 = vunpack.c.h.s8.bf16 %v858_v30  ;;  %v887_v30 = vld [vmem:[%s6513_s21 + $0x3f0] sm:$0xff] }
 0x228   : > { %4921 = vmatpush3.bf16.msra.mxu0 %v1055_v54  ;;  %v1097_v54 = vunpack.c.l.s8.bf16 %v863_v51 }
 0x229   : > { %4943 = vmatpush3.bf16.msra.mxu1 %v1071_v56  ;;  %4922 = vmatprep.subr.bf16.mxu0 %v1064_v57  ;;  %v859_v56 = vld [vmem:[%s6513_s21 + $0x310] sm:$0xff]  ;;  %v1113_v57 = vunpack.c.l.s8.bf16 %v871_v39 }
 0x22a   : > { %4944 = vmatprep.subr.bf16.mxu1 %v1080_v58  ;;  %v867_v58 = vld [vmem:[%s6513_s21 + $0x350] sm:$0xff]  ;;  %v1089_v59 = vunpack.c.l.s8.bf16 %v859_v56  ;;  %v1090_v1 = vunpack.c.h.s8.bf16 %v859_v56  ;;  %v888_v56 = vld [vmem:[%s6513_s21 + $0x3f8] sm:$0xff] }
 0x22b   : > { %v1105_v47 = vunpack.c.l.s8.bf16 %v867_v58 }
 0x22c   : > { %4923 = vmatpush3.bf16.msra.mxu0 %v1056_v60  ;;  %v1098_v60 = vunpack.c.h.s8.bf16 %v863_v51 }
 0x22d   : > { %4945 = vmatpush3.bf16.msra.mxu1 %v1072_v61  ;;  %4924 = vmatprep.subr.bf16.mxu0 %v1065_v62  ;;  %v1114_v61 = vunpack.c.h.s8.bf16 %v871_v39  ;;  %v864_v62 = vld [vmem:[%s6513_s21 + $0x338] sm:$0xff] }
 0x22e   : > { %4946 = vmatprep.subr.bf16.mxu1 %v1081_v0  ;;  %v1309_v0 = vcombine.high %v6714_v7, %v6714_v7  ;;  %v1100_v7 = vunpack.c.h.s8.bf16 %v864_v62 }
 0x230   : > { %4925 = vmatpush3.bf16.msra.mxu0 %v1057_v2  ;;  %v1106_v2 = vunpack.c.h.s8.bf16 %v867_v58  ;;  %v6746_v6 = vrot.slane %v1309_v0, %v6576_v37 }
 0x231   : > { %4947 = vmatpush3.bf16.msra.mxu1 %v1073_v55  ;;  %4926 = vmatprep.subr.bf16.mxu0 %v1066_v3  ;;  %v1099_v55 = vunpack.c.l.s8.bf16 %v864_v62  ;;  %v860_v3 = vld [vmem:[%s6513_s21 + $0x318] sm:$0xff] }
 0x232   : > { %4948 = vmatprep.subr.bf16.mxu1 %v1082_v4  ;;  %v1115_v4 = vunpack.c.l.s8.bf16 %v872_v63  ;;  %v1325_v13 = vcombine.high %v6746_v6, %v6746_v6 }
 0x234   : > { %4927 = vmatpush3.bf16.msra.mxu0 %v1058_v8  ;;  %v1091_v8 = vunpack.c.l.s8.bf16 %v860_v3 }
 0x235   : > { %4949 = vmatpush3.bf16.msra.mxu1 %v1074_v9  ;;  %4928 = vmatprep.subr.bf16.mxu0 %v1067_v10  ;;  %v1107_v9 = vunpack.c.l.s8.bf16 %v868_v5  ;;  %v1116_v10 = vunpack.c.h.s8.bf16 %v872_v63 }
 0x236   : > { %4950 = vmatprep.subr.bf16.mxu1 %v1083_v12  ;;  %v885_v12 = vld [vmem:[%s6513_s21 + $0x3e0] sm:$0xff] }
 0x237   : > { %v1141_v20 = vunpack.c.l.s8.bf16 %v885_v12  ;;  %v1142_v27 = vunpack.c.h.s8.bf16 %v885_v12 }
 0x238   : > { %4929 = vmatpush3.bf16.msra.mxu0 %v1059_v15  ;;  %v1332_v15 = vrot.slane %v6720_v14, %v6576_v37  ;;  %v1126_v14 = vunpack.c.h.s8.bf16 %v877_v11 }
 0x239   : > { %4951 = vmatpush3.bf16.msra.mxu1 %v1075_v16  ;;  %4930 = vmatprep.subr.bf16.mxu0 %v1068_v17  ;;  %v1092_v16 = vunpack.c.h.s8.bf16 %v860_v3  ;;  %v1108_v17 = vunpack.c.h.s8.bf16 %v868_v5 }
 0x23a   : > { %4952 = vmatprep.subr.bf16.mxu1 %v1084_v18  ;;  %v1125_v18 = vunpack.c.l.s8.bf16 %v877_v11 }
 0x23c   : > { %4931 = vmatpush3.bf16.msra.mxu0 %v1060_v25  ;;  %v1354_v25 = vcombine.high %v1332_v15, %v1332_v15 }
 0x23d   : > { %4953 = vmatpush3.bf16.msra.mxu1 %v1076_v23  ;;  %4960 = vmatprep.subr.bf16.mxu0 %v1093_v26  ;;  %v1117_v23 = vunpack.c.l.s8.bf16 %v873_v19  ;;  %v1133_v26 = vunpack.c.l.s8.bf16 %v881_v21 }
 0x23e   : > { %4982 = vmatprep.subr.bf16.mxu1 %v1109_v28  ;;  %v878_v28 = vld [vmem:[%s6513_s21 + $0x3a8] sm:$0xff] }
 0x23f   : > { %1838 = vmatmul.mubr.bf16.vlgmr.msra.gmra.mrb[20].mxu0 %v1290_v24  ;;  %v1353_v24 = vrot.slane %v1325_v13, %v6576_v37  ;;  %v1339_v13 = vrot.slane %v6746_v6, %v6576_v37  ;;  %v890_v6 = vld [vmem:[%s6513_s21 + $0x408] sm:$0xff] }
 0x240   : > { %1878 = vmatmul.mubr.bf16.vlgmr.msra.gmra.mrb[20].mxu1 %v1306_v32  ;;  %4961 = vmatpush3.bf16.msra.mxu0 %v1085_v33  ;;  %v1118_v32 = vunpack.c.h.s8.bf16 %v873_v19  ;;  %v1134_v33 = vunpack.c.h.s8.bf16 %v881_v21 }
 0x241   : > { %4983 = vmatpush3.bf16.msra.mxu1 %v1101_v34  ;;  %4962 = vmatprep.subr.bf16.mxu0 %v1094_v22  ;;  %v1127_v34 = vunpack.c.l.s8.bf16 %v878_v28  ;;  %v874_v22 = vld [vmem:[%s6513_s21 + $0x388] sm:$0xff] }
 0x242   : > { %4984 = vmatprep.subr.bf16.mxu1 %v1110_v35  ;;  %1917 = vmatprep.mubr.bf16.mxu0 %v1346_v31  ;;  %v1357_v31 = vcombine.high %v1353_v24, %v1353_v24  ;;  %v1143_v35 = vunpack.c.l.s8.bf16 %v886_v29  ;;  %v1119_v38 = vunpack.c.l.s8.bf16 %v874_v22 }
 0x243   : > { %1957 = vmatprep.mubr.bf16.mxu1 %v1356_v41  ;;  %v1135_v41 = vunpack.c.l.s8.bf16 %v882_v36 }
 0x244   : > { %4963 = vmatpush3.bf16.msra.mxu0 %v1086_v42  ;;  %v1128_v42 = vunpack.c.h.s8.bf16 %v878_v28 }
 0x245   : > { %4985 = vmatpush3.bf16.msra.mxu1 %v1102_v40  ;;  %4964 = vmatprep.subr.bf16.mxu0 %v1095_v43  ;;  %v1144_v40 = vunpack.c.h.s8.bf16 %v886_v29  ;;  %v879_v43 = vld [vmem:[%s6513_s21 + $0x3b0] sm:$0xff] }
 0x246   : > { %4986 = vmatprep.subr.bf16.mxu1 %v1111_v44  ;;  %v1120_v44 = vunpack.c.h.s8.bf16 %v874_v22 }
 0x248   : > { %4965 = vmatpush3.bf16.msra.mxu0 %v1087_v46  ;;  %v1129_v46 = vunpack.c.l.s8.bf16 %v879_v43 }
 0x249   : > { %4987 = vmatpush3.bf16.msra.mxu1 %v1103_v48  ;;  %4966 = vmatprep.subr.bf16.mxu0 %v1096_v49  ;;  %v875_v48 = vld [vmem:[%s6513_s21 + $0x390] sm:$0xff]  ;;  %v1145_v49 = vunpack.c.l.s8.bf16 %v887_v30 }
 0x24a   : > { %4988 = vmatprep.subr.bf16.mxu1 %v1112_v50  ;;  %v883_v50 = vld [vmem:[%s6513_s21 + $0x3d0] sm:$0xff]  ;;  %v1121_v51 = vunpack.c.l.s8.bf16 %v875_v48 }
 0x24b   : > { %v1137_v39 = vunpack.c.l.s8.bf16 %v883_v50  ;;  %v1138_v58 = vunpack.c.h.s8.bf16 %v883_v50 }
 0x24c   : > { %4967 = vmatpush3.bf16.msra.mxu0 %v1088_v52  ;;  %v1130_v52 = vunpack.c.h.s8.bf16 %v879_v43 }
 0x24d   : > { %4989 = vmatpush3.bf16.msra.mxu1 %v1104_v53  ;;  %4968 = vmatprep.subr.bf16.mxu0 %v1097_v54  ;;  %v1146_v53 = vunpack.c.h.s8.bf16 %v887_v30  ;;  %v880_v54 = vld [vmem:[%s6513_s21 + $0x3b8] sm:$0xff] }
 0x24e   : > { %4990 = vmatprep.subr.bf16.mxu1 %v1113_v57  ;;  %v1122_v57 = vunpack.c.h.s8.bf16 %v875_v48  ;;  %v4678_v30 = vld.sshfl [vmem:[%s6553_s24 + $0x20] sm:$0x1 pattern:$0x75316420] }
 0x250   : > { %4969 = vmatpush3.bf16.msra.mxu0 %v1089_v59  ;;  %v1131_v59 = vunpack.c.l.s8.bf16 %v880_v54 }
 0x251   : > { %4991 = vmatpush3.bf16.msra.mxu1 %v1105_v47  ;;  %4970 = vmatprep.subr.bf16.mxu0 %v1098_v60  ;;  %v876_v47 = vld [vmem:[%s6513_s21 + $0x398] sm:$0xff]  ;;  %v1147_v60 = vunpack.c.l.s8.bf16 %v888_v56 }
 0x252   : > { %4992 = vmatprep.subr.bf16.mxu1 %v1114_v61  ;;  %v884_v61 = vld [vmem:[%s6513_s21 + $0x3d8] sm:$0xff] }
 0x253   : > { %v1139_v5 = vunpack.c.l.s8.bf16 %v884_v61 }
 0x254   : > { %4971 = vmatpush3.bf16.msra.mxu0 %v1090_v1 }
 0x255   : > { %4993 = vmatpush3.bf16.msra.mxu1 %v1106_v2  ;;  %4972 = vmatprep.subr.bf16.mxu0 %v1099_v55 }
 0x256   : > { %4994 = vmatprep.subr.bf16.mxu1 %v1115_v4  ;;  %v1123_v4 = vunpack.c.l.s8.bf16 %v876_v47 }
 0x258   : > { %4973 = vmatpush3.bf16.msra.mxu0 %v1091_v8 }
 0x259   : > { %4995 = vmatpush3.bf16.msra.mxu1 %v1107_v9  ;;  %4974 = vmatprep.subr.bf16.mxu0 %v1100_v7  ;;  %v1132_v7 = vunpack.c.h.s8.bf16 %v880_v54 }
 0x25a   : > { %4996 = vmatprep.subr.bf16.mxu1 %v1116_v10  ;;  %v1148_v10 = vunpack.c.h.s8.bf16 %v888_v56 }
 0x25c   : > { %4975 = vmatpush3.bf16.msra.mxu0 %v1092_v16  ;;  %v1140_v16 = vunpack.c.h.s8.bf16 %v884_v61 }
 0x25d   : > { %4997 = vmatpush3.bf16.msra.mxu1 %v1108_v17  ;;  %5004 = vmatprep.subr.bf16.mxu0 %v1125_v18  ;;  %v889_v17 = vld [vmem:[%s6513_s21 + $0x400] sm:$0xff]  ;;  %v1355_v18 = vcombine.high %v1339_v13, %v1339_v13 }
 0x25e   : > { %5026 = vmatprep.subr.bf16.mxu1 %v1141_v20  ;;  %v1149_v19 = vunpack.c.l.s8.bf16 %v889_v17  ;;  %v6041_v20 = vmov 0.0   ;;  %v1150_v21 = vunpack.c.h.s8.bf16 %v889_v17 }
 0x25f   : > { %1918 = vmatmul.mubr.bf16.vlgmr.msra.gmra.mrb[24].mxu0 %v1332_v15  ;;  %v1124_v15 = vunpack.c.h.s8.bf16 %v876_v47 }
 0x260   : > { %1958 = vmatmul.mubr.bf16.vlgmr.msra.gmra.mrb[24].mxu1 %v1354_v25  ;;  %5005 = vmatpush3.bf16.msra.mxu0 %v1117_v23  ;;  %v1152_v25 = vunpack.c.h.s8.bf16 %v890_v6  ;;  %v891_v23 = vld [vmem:[%s6513_s21 + $0x410] sm:$0xff] }
 0x261   : > { %5027 = vmatpush3.bf16.msra.mxu1 %v1133_v26  ;;  %5006 = vmatprep.subr.bf16.mxu0 %v1126_v14  ;;  %v1153_v26 = vunpack.c.l.s8.bf16 %v891_v23  ;;  %v1154_v14 = vunpack.c.h.s8.bf16 %v891_v23 }
 0x262   : > { %5028 = vmatprep.subr.bf16.mxu1 %v1142_v27  ;;  %1997 = vmatprep.mubr.bf16.mxu0 %v1353_v24  ;;  %v1151_v24 = vunpack.c.l.s8.bf16 %v890_v6  ;;  %v892_v27 = vld [vmem:[%s6513_s21 + $0x418] sm:$0xff] }
 0x263   : > { %2037 = vmatprep.mubr.bf16.mxu1 %v1357_v31  ;;  %v1156_v43 = vunpack.c.h.s8.bf16 %v892_v27 }
 0x264   : > { %5007 = vmatpush3.bf16.msra.mxu0 %v1118_v32 }
 0x265   : > { %5029 = vmatpush3.bf16.msra.mxu1 %v1134_v33  ;;  %5008 = vmatprep.subr.bf16.mxu0 %v1127_v34 }
 0x266   : > { %5030 = vmatprep.subr.bf16.mxu1 %v1143_v35  ;;  %v1155_v35 = vunpack.c.l.s8.bf16 %v892_v27 }
 0x268   : > { %5009 = vmatpush3.bf16.msra.mxu0 %v1119_v38 }
 0x269   : > { %5031 = vmatpush3.bf16.msra.mxu1 %v1135_v41  ;;  %5010 = vmatprep.subr.bf16.mxu0 %v1128_v42 }
 0x26a   : > { %5032 = vmatprep.subr.bf16.mxu1 %v1144_v40 }
 0x26c   : > { %5011 = vmatpush3.bf16.msra.mxu0 %v1120_v44  ;;  %v1371_v44 = vrot.slane %v4678_v30, %v6576_v37 }
 0x26d   : > { %5033 = vmatpush3.bf16.msra.mxu1 %v1136_v45  ;;  %5012 = vmatprep.subr.bf16.mxu0 %v1129_v46 }
 0x26e   : > { %5034 = vmatprep.subr.bf16.mxu1 %v1145_v49 }
 0x270   : > { %5013 = vmatpush3.bf16.msra.mxu0 %v1121_v51 }
 0x271   : > { %5035 = vmatpush3.bf16.msra.mxu1 %v1137_v39  ;;  %5014 = vmatprep.subr.bf16.mxu0 %v1130_v52 }
 0x272   : > { %5036 = vmatprep.subr.bf16.mxu1 %v1146_v53  ;;  %v4712_v62 = vpop.f32.mrb[0].mxu0 }
 0x273   : > { %v4734_v63 = vpop.f32.mrb[0].mxu1  ;;  %v4713_v0 = vpop.f32.mrb[1].mxu0 }
 0x274   : > { %v4735_v1 = vpop.f32.mrb[1].mxu1  ;;  %v4714_v2 = vadd.f32 %v4713_v0, %v4712_v62  ;;  %v4715_v3 = vpop.f32.mrb[2].mxu0  ;;  %5015 = vmatpush3.bf16.msra.mxu0 %v1122_v57 }
 0x275   : > { %v4736_v55 = vadd.f32 %v4735_v1, %v4734_v63  ;;  %5037 = vmatpush3.bf16.msra.mxu1 %v1138_v58  ;;  %v4737_v8 = vpop.f32.mrb[2].mxu1  ;;  %v4716_v9 = vpop.f32.mrb[3].mxu0  ;;  %5016 = vmatprep.subr.bf16.mxu0 %v1131_v59 }
 0x276   : > { %5038 = vmatprep.subr.bf16.mxu1 %v1147_v60  ;;  %v4738_v11 = vpop.f32.mrb[3].mxu1 }
 0x277   : > { %v1480_v12 = vadd.f32 %v4736_v55, %v4714_v2 }
 0x278   : > { %5017 = vmatpush3.bf16.msra.mxu0 %v1123_v4 }
 0x279   : > { %5039 = vmatpush3.bf16.msra.mxu1 %v1139_v5  ;;  %5018 = vmatprep.subr.bf16.mxu0 %v1132_v7 }
 0x27a   : > { %5040 = vmatprep.subr.bf16.mxu1 %v1148_v10 }
 0x27c   : > { %5019 = vmatpush3.bf16.msra.mxu0 %v1124_v15 }
 0x27d   : > { %5041 = vmatpush3.bf16.msra.mxu1 %v1140_v16  ;;  %5066 = vmatprep.subr.bf16.mxu0 %v6041_v20 }
 0x27f   : > { %1998 = vmatmul.mubr.bf16.vlgmr.msra.gmra.mrb[28].mxu0 %v1339_v13 }
 0x280   : > { %2038 = vmatmul.mubr.bf16.vlgmr.msra.gmra.mrb[28].mxu1 %v1355_v18  ;;  %5067 = vmatpush3.bf16.msra.mxu0 %v1149_v19 }
 0x281   : > { %5082 = vmatprep.mubr.msk.bf16.mxu0 %vm6042_vm0, %v6041_v20  ;;  %5068 = vmatprep.subr.bf16.mxu0 %v6041_v20 }
 0x284   : > { %5069 = vmatpush3.bf16.msra.mxu0 %v1150_v21 }
 0x285   : > { %5070 = vmatprep.subr.bf16.mxu0 %v6041_v20 }
 0x288   : > { %5071 = vmatpush3.bf16.msra.mxu0 %v1151_v24 }
 0x289   : > { %5072 = vmatprep.subr.bf16.mxu0 %v6041_v20 }
 0x28c   : > { %5073 = vmatpush3.bf16.msra.mxu0 %v1152_v25 }
 0x28d   : > { %5074 = vmatprep.subr.bf16.mxu0 %v6041_v20 }
 0x290   : > { %5075 = vmatpush3.bf16.msra.mxu0 %v1153_v26 }
 0x291   : > { %5076 = vmatprep.subr.bf16.mxu0 %v6041_v20 }
 0x292   : > { %v4756_v28 = vpop.f32.mrb[4].mxu0 }
 0x293   : > { %v4778_v29 = vpop.f32.mrb[4].mxu1  ;;  %v4757_v31 = vpop.f32.mrb[5].mxu0 }
 0x294   : > { %v4779_v32 = vpop.f32.mrb[5].mxu1  ;;  %v4758_v33 = vadd.f32 %v4757_v31, %v4756_v28  ;;  %v4759_v34 = vpop.f32.mrb[6].mxu0  ;;  %5077 = vmatpush3.bf16.msra.mxu0 %v1154_v14 }
 0x295   : > { %v4780_v22 = vadd.f32 %v4779_v32, %v4778_v29  ;;  %v4781_v36 = vpop.f32.mrb[6].mxu1  ;;  %v4760_v38 = vpop.f32.mrb[7].mxu0  ;;  %5078 = vmatprep.subr.bf16.mxu0 %v6041_v20 }
 0x296   : > { %v4782_v41 = vpop.f32.mrb[7].mxu1  ;;  %v1520_v42 = vadd.f32 %v4758_v33, %v1480_v12 }
 0x298   : > { %v1560_v40 = vadd.f32 %v4780_v22, %v1520_v42  ;;  %5079 = vmatpush3.bf16.msra.mxu0 %v1155_v35 }
 0x299   : > { %5080 = vmatprep.subr.bf16.mxu0 %v6041_v20 }
 0x29c   : > { %5081 = vmatpush3.bf16.msra.mxu0 %v1156_v43 }
 0x29f   : > { %5083 = vmatmul.mubr.bf16.vlgmr.msra.gmra.mrb[32].mxu0 %v1371_v44 }
 0x2b2   : > { %v4800_v45 = vpop.f32.mrb[8].mxu0 }
 0x2b3   : > { %v4822_v46 = vpop.f32.mrb[8].mxu1  ;;  %v4801_v48 = vpop.f32.mrb[9].mxu0 }
 0x2b4   : > { %v4823_v49 = vpop.f32.mrb[9].mxu1  ;;  %v4802_v50 = vadd.f32 %v4801_v48, %v4800_v45  ;;  %v4803_v51 = vpop.f32.mrb[10].mxu0 }
 0x2b5   : > { %v4824_v39 = vadd.f32 %v4823_v49, %v4822_v46  ;;  %v4825_v52 = vpop.f32.mrb[10].mxu1  ;;  %v4804_v53 = vpop.f32.mrb[11].mxu0 }
 0x2b6   : > { %v4826_v54 = vpop.f32.mrb[11].mxu1  ;;  %v1600_v56 = vadd.f32 %v4802_v50, %v1560_v40  ;;  %v755_v53 = vld [vmem:[#allocation2] sm:$0x1] }
 0x2b8   : > { %v1640_v57 = vadd.f32 %v4824_v39, %v1600_v56 }
 0x2d2   : > { %v4844_v58 = vpop.f32.mrb[12].mxu0 }
 0x2d3   : > { %v4866_v59 = vpop.f32.mrb[12].mxu1  ;;  %v4845_v47 = vpop.f32.mrb[13].mxu0 }
 0x2d4   : > { %v4867_v60 = vpop.f32.mrb[13].mxu1  ;;  %v4846_v61 = vadd.f32 %v4845_v47, %v4844_v58  ;;  %v4847_v37 = vpop.f32.mrb[14].mxu0 }
 0x2d5   : > { %v4868_v62 = vadd.f32 %v4867_v60, %v4866_v59  ;;  %v4869_v63 = vpop.f32.mrb[14].mxu1  ;;  %v4848_v0 = vpop.f32.mrb[15].mxu0 }
 0x2d6   : > { %v4870_v1 = vpop.f32.mrb[15].mxu1  ;;  %v1680_v2 = vadd.f32 %v4846_v61, %v1640_v57 }
 0x2d8   : > { %v1720_v55 = vadd.f32 %v4868_v62, %v1680_v2 }
 0x2f2   : > { %v4888_v3 = vpop.f32.mrb[16].mxu0 }
 0x2f3   : > { %v4910_v4 = vpop.f32.mrb[16].mxu1  ;;  %v4889_v5 = vpop.f32.mrb[17].mxu0 }
 0x2f4   : > { %v4911_v8 = vpop.f32.mrb[17].mxu1  ;;  %v4890_v9 = vadd.f32 %v4889_v5, %v4888_v3  ;;  %v4891_v7 = vpop.f32.mrb[18].mxu0 }
 0x2f5   : > { %v4912_v10 = vadd.f32 %v4911_v8, %v4910_v4  ;;  %v4913_v11 = vpop.f32.mrb[18].mxu1  ;;  %v4892_v12 = vpop.f32.mrb[19].mxu0 }
 0x2f6   : > { %v4914_v13 = vpop.f32.mrb[19].mxu1  ;;  %v1760_v15 = vadd.f32 %v4890_v9, %v1720_v55 }
 0x2f8   : > { %v1800_v16 = vadd.f32 %v4912_v10, %v1760_v15 }
 0x312   : > { %v4932_v17 = vpop.f32.mrb[20].mxu0 }
 0x313   : > { %v4954_v18 = vpop.f32.mrb[20].mxu1  ;;  %v4933_v19 = vpop.f32.mrb[21].mxu0 }
 0x314   : > { %v4955_v20 = vpop.f32.mrb[21].mxu1  ;;  %v4934_v21 = vadd.f32 %v4933_v19, %v4932_v17  ;;  %v4935_v6 = vpop.f32.mrb[22].mxu0 }
 0x315   : > { %v4956_v24 = vadd.f32 %v4955_v20, %v4954_v18  ;;  %v4957_v25 = vpop.f32.mrb[22].mxu1  ;;  %v4936_v23 = vpop.f32.mrb[23].mxu0 }
 0x316   : > { %v4958_v26 = vpop.f32.mrb[23].mxu1  ;;  %v1840_v14 = vadd.f32 %v4934_v21, %v1800_v16 }
 0x318   : > { %v1880_v27 = vadd.f32 %v4956_v24, %v1840_v14 }
 0x332   : > { %v4976_v28 = vpop.f32.mrb[24].mxu0 }
 0x333   : > { %v4998_v29 = vpop.f32.mrb[24].mxu1  ;;  %v4977_v31 = vpop.f32.mrb[25].mxu0 }
 0x334   : > { %v4999_v32 = vpop.f32.mrb[25].mxu1  ;;  %v4978_v33 = vadd.f32 %v4977_v31, %v4976_v28  ;;  %v4979_v34 = vpop.f32.mrb[26].mxu0 }
 0x335   : > { %v5000_v22 = vadd.f32 %v4999_v32, %v4998_v29  ;;  %v5001_v35 = vpop.f32.mrb[26].mxu1  ;;  %v4980_v36 = vpop.f32.mrb[27].mxu0 }
 0x336   : > { %v5002_v38 = vpop.f32.mrb[27].mxu1  ;;  %v1920_v41 = vadd.f32 %v4978_v33, %v1880_v27 }
 0x338   : > { %v1960_v42 = vadd.f32 %v5000_v22, %v1920_v41 }
 0x352   : > { %v5020_v40 = vpop.f32.mrb[28].mxu0 }
 0x353   : > { %v5042_v43 = vpop.f32.mrb[28].mxu1  ;;  %v5021_v30 = vpop.f32.mrb[29].mxu0 }
 0x354   : > { %v5043_v44 = vpop.f32.mrb[29].mxu1  ;;  %v5022_v45 = vadd.f32 %v5021_v30, %v5020_v40  ;;  %v5023_v46 = vpop.f32.mrb[30].mxu0 }
 0x355   : > { %v5044_v48 = vadd.f32 %v5043_v44, %v5042_v43  ;;  %v5045_v49 = vpop.f32.mrb[30].mxu1  ;;  %v5024_v50 = vpop.f32.mrb[31].mxu0 }
 0x356   : > { %v5046_v51 = vpop.f32.mrb[31].mxu1  ;;  %v2000_v39 = vadd.f32 %v5022_v45, %v1960_v42 }
 0x358   : > { %v2040_v52 = vadd.f32 %v5044_v48, %v2000_v39 }
 0x372   : > { %v2079_v54 = vpop.f32.mrb[32].mxu0 }
 0x373   : > { %v2080_v56 = vadd.f32 %v2079_v54, %v2040_v52  ;;  %v5084_v57 = vpop.f32.mrb[33].mxu0 }
 0x374   : > { %v2082_v58 = vpop.f32.mrb[34].mxu0 }
 0x375   : > { %v2085_v59 = vadd.f32 %v2080_v56, %v755_v53  ;;  %v5085_v47 = vpop.f32.mrb[35].mxu0 }
 0x377   : > { %2086 = vst [vmem:[#allocation2] sm:$0x1] %v2085_v59 }
 0x378 PF: > { %p4679_p13 = scmp.ne.s32.totalorder %s6156_s17, 1 }
 0x379   : > { %v5482_v60 = vld [vmem:[#allocation9 + $0x4] ss:$16 sps:$4 sm:$0xff] (!%p4679_p13)   ;;  %v5484_v61 = vld [vmem:[#allocation9 + $0xc] ss:$16 sps:$4 sm:$0xff] (!%p4679_p13)   ;;  %v6043_v37 = vmov (!%p4679_p13), 0.0  }
 0x37a   : > { %2090 = sbr.rel (%p4679_p13) target bundleno = 1214 (0x4be), region = 116  ;;  %2351 = vmatprep.mubr.f32.mxu0 (!%p4679_p13), %v6043_v37  ;;  %2422 = vmatprep.mubr.f32.mxu1 (!%p4679_p13), %v6043_v37  ;;  %v5486_v62 = vld [vmem:[#allocation9] ss:$16 sps:$4 sm:$0xff] (!%p4679_p13)   ;;  %v5487_v63 = vld [vmem:[#allocation9 + $0x8] ss:$16 sps:$4 sm:$0xff] (!%p4679_p13)  }
 0x37b   : > { %5107 = vmatprep.subr.bf16.mxu0 (!%p4679_p13), %v5482_v60  ;;  %5139 = vmatprep.subr.bf16.mxu1 (!%p4679_p13), %v5484_v61  ;;  %v5488_v0 = vld [vmem:[#allocation9 + $0x24] ss:$16 sps:$4 sm:$0xff] (!%p4679_p13)   ;;  %v5490_v1 = vld [vmem:[#allocation9 + $0x2c] ss:$16 sps:$4 sm:$0xff] (!%p4679_p13)   ;;  %v5492_v2 = vld [vmem:[#allocation9 + $0x20] ss:$16 sps:$4 sm:$0xff] (!%p4679_p13)  }
 0x37c   : > { %5109 = vmatpush1.bf16.msra.mxu0 (!%p4679_p13), %v5486_v62  ;;  %5141 = vmatpush1.bf16.msra.mxu1 (!%p4679_p13), %v5487_v63  ;;  %v5493_v55 = vld [vmem:[#allocation9 + $0x28] ss:$16 sps:$4 sm:$0xff] (!%p4679_p13)   ;;  %v5494_v3 = vld [vmem:[#allocation9 + $0x44] ss:$16 sps:$4 sm:$0xff] (!%p4679_p13)   ;;  %v5496_v4 = vld [vmem:[#allocation9 + $0x4c] ss:$16 sps:$4 sm:$0xff] (!%p4679_p13)  }
 0x37d   : > { %5111 = vmatprep.subr.bf16.mxu0 (!%p4679_p13), %v5488_v0  ;;  %5143 = vmatprep.subr.bf16.mxu1 (!%p4679_p13), %v5490_v1  ;;  %v5498_v5 = vld [vmem:[#allocation9 + $0x40] ss:$16 sps:$4 sm:$0xff] (!%p4679_p13)   ;;  %v5499_v8 = vld [vmem:[#allocation9 + $0x48] ss:$16 sps:$4 sm:$0xff] (!%p4679_p13)   ;;  %v5500_v9 = vld [vmem:[#allocation9 + $0x64] ss:$16 sps:$4 sm:$0xff] (!%p4679_p13)   ;;  %v2573_v0 = vlaneseq (!%p4679_p13) }
 0x37e   : > { %v5502_v7 = vld [vmem:[#allocation9 + $0x6c] ss:$16 sps:$4 sm:$0xff] (!%p4679_p13)   ;;  %v5504_v10 = vld [vmem:[#allocation9 + $0x60] ss:$16 sps:$4 sm:$0xff] (!%p4679_p13)   ;;  %v5505_v11 = vld [vmem:[#allocation9 + $0x68] ss:$16 sps:$4 sm:$0xff] (!%p4679_p13)  }
 0x37f   : > { %v5506_v12 = vld [vmem:[#allocation9 + $0x84] ss:$16 sps:$4 sm:$0xff] (!%p4679_p13)   ;;  %v5508_v13 = vld [vmem:[#allocation9 + $0x8c] ss:$16 sps:$4 sm:$0xff] (!%p4679_p13)   ;;  %v5510_v15 = vld [vmem:[#allocation9 + $0x80] ss:$16 sps:$4 sm:$0xff] (!%p4679_p13)  }
 0x380   : > { %5113 = vmatpush1.bf16.msra.mxu0 (!%p4679_p13), %v5492_v2  ;;  %5145 = vmatpush1.bf16.msra.mxu1 (!%p4679_p13), %v5493_v55  ;;  %v5511_v16 = vld [vmem:[#allocation9 + $0x88] ss:$16 sps:$4 sm:$0xff] (!%p4679_p13)   ;;  %v5512_v17 = vld [vmem:[#allocation9 + $0xa4] ss:$16 sps:$4 sm:$0xff] (!%p4679_p13)   ;;  %v5514_v18 = vld [vmem:[#allocation9 + $0xac] ss:$16 sps:$4 sm:$0xff] (!%p4679_p13)  }
 0x381   : > { %5115 = vmatprep.subr.bf16.mxu0 %v5494_v3  ;;  %5147 = vmatprep.subr.bf16.mxu1 %v5496_v4  ;;  %v5516_v19 = vld [vmem:[#allocation9 + $0xa0] ss:$16 sps:$4 sm:$0xff]   ;;  %v5517_v20 = vld [vmem:[#allocation9 + $0xa8] ss:$16 sps:$4 sm:$0xff]   ;;  %v5518_v21 = vld [vmem:[#allocation9 + $0xc4] ss:$16 sps:$4 sm:$0xff]  }
 0x382   : > { %v5520_v6 = vld [vmem:[#allocation9 + $0xcc] ss:$16 sps:$4 sm:$0xff]   ;;  %v5522_v24 = vld [vmem:[#allocation9 + $0xc0] ss:$16 sps:$4 sm:$0xff]   ;;  %v5523_v25 = vld [vmem:[#allocation9 + $0xc8] ss:$16 sps:$4 sm:$0xff]  }
 0x383   : > { %v5524_v23 = vld [vmem:[#allocation9 + $0xe4] ss:$16 sps:$4 sm:$0xff]   ;;  %v5526_v26 = vld [vmem:[#allocation9 + $0xec] ss:$16 sps:$4 sm:$0xff]   ;;  %v5528_v14 = vld [vmem:[#allocation9 + $0xe0] ss:$16 sps:$4 sm:$0xff]  }
 0x384   : > { %5117 = vmatpush1.bf16.msra.mxu0 %v5498_v5  ;;  %5149 = vmatpush1.bf16.msra.mxu1 %v5499_v8  ;;  %v5529_v27 = vld [vmem:[#allocation9 + $0xe8] ss:$16 sps:$4 sm:$0xff]   ;;  %v5530_v28 = vld [vmem:[#allocation8 + $0x4] ss:$16 sps:$4 sm:$0xff]   ;;  %v5533_v29 = vld [vmem:[#allocation8 + $0xc] ss:$16 sps:$4 sm:$0xff]  }
 0x385   : > { %5119 = vmatprep.subr.bf16.mxu0 %v5500_v9  ;;  %5151 = vmatprep.subr.bf16.mxu1 %v5502_v7  ;;  %v5532_v31 = vld [vmem:[#allocation8] ss:$16 sps:$4 sm:$0xff]   ;;  %v5535_v32 = vld [vmem:[#allocation8 + $0x8] ss:$16 sps:$4 sm:$0xff]   ;;  %v2190_v33 = vld [vmem:[#allocation12] sm:$0x1] }
 0x386   : > { %v5536_v34 = vld [vmem:[#allocation8 + $0x24] ss:$16 sps:$4 sm:$0xff]   ;;  %v5539_v22 = vld [vmem:[#allocation8 + $0x2c] ss:$16 sps:$4 sm:$0xff]   ;;  %v5538_v35 = vld [vmem:[#allocation8 + $0x20] ss:$16 sps:$4 sm:$0xff]  }
 0x387   : > { %v5541_v36 = vld [vmem:[#allocation8 + $0x28] ss:$16 sps:$4 sm:$0xff]   ;;  %v5542_v38 = vld [vmem:[#allocation8 + $0x44] ss:$16 sps:$4 sm:$0xff]   ;;  %v5545_v41 = vld [vmem:[#allocation8 + $0x4c] ss:$16 sps:$4 sm:$0xff]  }
 0x388   : > { %5121 = vmatpush1.bf16.msra.mxu0 %v5504_v10  ;;  %5153 = vmatpush1.bf16.msra.mxu1 %v5505_v11  ;;  %v5544_v42 = vld [vmem:[#allocation8 + $0x40] ss:$16 sps:$4 sm:$0xff]   ;;  %v5547_v40 = vld [vmem:[#allocation8 + $0x48] ss:$16 sps:$4 sm:$0xff]   ;;  %v5548_v43 = vld [vmem:[#allocation8 + $0x64] ss:$16 sps:$4 sm:$0xff]  }
 0x389   : > { %5123 = vmatprep.subr.bf16.mxu0 %v5506_v12  ;;  %5155 = vmatprep.subr.bf16.mxu1 %v5508_v13  ;;  %v5551_v30 = vld [vmem:[#allocation8 + $0x6c] ss:$16 sps:$4 sm:$0xff]   ;;  %v5550_v44 = vld [vmem:[#allocation8 + $0x60] ss:$16 sps:$4 sm:$0xff]   ;;  %v5553_v45 = vld [vmem:[#allocation8 + $0x68] ss:$16 sps:$4 sm:$0xff]  }
 0x38a   : > { %v5554_v46 = vld [vmem:[#allocation8 + $0x84] ss:$16 sps:$4 sm:$0xff]   ;;  %v5557_v48 = vld [vmem:[#allocation8 + $0x8c] ss:$16 sps:$4 sm:$0xff]   ;;  %v5556_v49 = vld [vmem:[#allocation8 + $0x80] ss:$16 sps:$4 sm:$0xff]  }
 0x38b   : > { %v5559_v50 = vld [vmem:[#allocation8 + $0x88] ss:$16 sps:$4 sm:$0xff]   ;;  %v5560_v51 = vld [vmem:[#allocation8 + $0xa4] ss:$16 sps:$4 sm:$0xff]   ;;  %v5563_v39 = vld [vmem:[#allocation8 + $0xac] ss:$16 sps:$4 sm:$0xff]  }
 0x38c   : > { %5125 = vmatpush1.bf16.msra.mxu0 %v5510_v15  ;;  %5157 = vmatpush1.bf16.msra.mxu1 %v5511_v16  ;;  %v5562_v52 = vld [vmem:[#allocation8 + $0xa0] ss:$16 sps:$4 sm:$0xff]   ;;  %v5565_v53 = vld [vmem:[#allocation8 + $0xa8] ss:$16 sps:$4 sm:$0xff]   ;;  %v5566_v54 = vld [vmem:[#allocation8 + $0xc4] ss:$16 sps:$4 sm:$0xff]  }
 0x38d   : > { %5127 = vmatprep.subr.bf16.mxu0 %v5512_v17  ;;  %5159 = vmatprep.subr.bf16.mxu1 %v5514_v18  ;;  %v5569_v56 = vld [vmem:[#allocation8 + $0xcc] ss:$16 sps:$4 sm:$0xff]   ;;  %v5568_v57 = vld [vmem:[#allocation8 + $0xc0] ss:$16 sps:$4 sm:$0xff]   ;;  %v5571_v58 = vld [vmem:[#allocation8 + $0xc8] ss:$16 sps:$4 sm:$0xff]  }
 0x38e   : > { %v5572_v59 = vld [vmem:[#allocation8 + $0xe4] ss:$16 sps:$4 sm:$0xff]   ;;  %v5575_v47 = vld [vmem:[#allocation8 + $0xec] ss:$16 sps:$4 sm:$0xff]   ;;  %v5574_v60 = vld [vmem:[#allocation8 + $0xe0] ss:$16 sps:$4 sm:$0xff]  }
 0x38f   : > { %v5577_v61 = vld [vmem:[#allocation8 + $0xe8] ss:$16 sps:$4 sm:$0xff]   ;;  %v2092_v62 = vld [vmem:[#allocation6] sm:$0x1]  ;;  %v2574_v1 = vshrl.u32 %v2573_v0, 7 }
 0x390   : > { %5129 = vmatpush1.bf16.msra.mxu0 %v5516_v19  ;;  %5161 = vmatpush1.bf16.msra.mxu1 %v5517_v20  ;;  %v2571_v55 = vld [vmem:[#allocation11] sm:$0xf] }
 0x391   : > { %5131 = vmatprep.subr.bf16.mxu0 %v5518_v21  ;;  %5163 = vmatprep.subr.bf16.mxu1 %v5520_v6  ;;  %v2575_v2 = vsub.s32 0, %v2574_v1  ;;  %v2579_v3 = vsub.s32 1, %v2574_v1  ;;  %v2587_v7 = vsub.s32 3, %v2574_v1  ;;  %v2583_v18 = vsub.s32 2, %v2574_v1 }
 0x393   : > { %v2576_v4 = vrot.slane %v2571_v55, %v2575_v2  ;;  %v2580_v5 = vrot.slane %v2571_v55, %v2579_v3  ;;  %v2588_v17 = vrot.slane %v2571_v55, %v2587_v7  ;;  %v2584_v20 = vrot.slane %v2571_v55, %v2583_v18 }
 0x394   : > { %5133 = vmatpush1.bf16.msra.mxu0 %v5522_v24  ;;  %5165 = vmatpush1.bf16.msra.mxu1 %v5523_v25 }
 0x395   : > { %5135 = vmatprep.subr.bf16.mxu0 %v5524_v23  ;;  %5167 = vmatprep.subr.bf16.mxu1 %v5526_v26 }
 0x398   : > { %5137 = vmatpush1.bf16.msra.mxu0 %v5528_v14  ;;  %5169 = vmatpush1.bf16.msra.mxu1 %v5529_v27 }
 0x399   : > { %5171 = vmatprep.subr.bf16.mxu0 %v5530_v28  ;;  %5203 = vmatprep.subr.bf16.mxu1 %v5533_v29  ;;  %v2616_v28 = vld [vmem:[#allocation14] sm:$0x1] }
 0x39b   : > { %2352 = vmatmul.mubr.f32.vlgmr.msra.gmra.mrb[0].mxu0 %v2190_v33  ;;  %2423 = vmatmul.mubr.f32.vlgmr.msra.gmra.mrb[0].mxu1 %v2190_v33 }
 0x39c   : > { %5173 = vmatpush1.bf16.msra.mxu0 %v5532_v31  ;;  %5205 = vmatpush1.bf16.msra.mxu1 %v5535_v32 }
 0x39d   : > { %5175 = vmatprep.subr.bf16.mxu0 %v5536_v34  ;;  %5207 = vmatprep.subr.bf16.mxu1 %v5539_v22 }
 0x39e   : > { %2493 = vmatprep.mubr.f32.mxu0 %v6043_v37  ;;  %2564 = vmatprep.mubr.f32.mxu1 %v6043_v37  ;;  %v2091_v37 = vld [vmem:[#allocation2] sm:$0x1] }
 0x39f   : > { %v2093_v63 = vmul.f32 %v2092_v62, %v2091_v37 }
 0x3a0   : > { %5177 = vmatpush1.bf16.msra.mxu0 %v5538_v35  ;;  %5209 = vmatpush1.bf16.msra.mxu1 %v5541_v36 }
 0x3a1   : > { %5179 = vmatprep.subr.bf16.mxu0 %v5542_v38  ;;  %5211 = vmatprep.subr.bf16.mxu1 %v5545_v41 }
 0x3a4   : > { %5181 = vmatpush1.bf16.msra.mxu0 %v5544_v42  ;;  %5213 = vmatpush1.bf16.msra.mxu1 %v5547_v40 }
 0x3a5   : > { %5183 = vmatprep.subr.bf16.mxu0 %v5548_v43  ;;  %5215 = vmatprep.subr.bf16.mxu1 %v5551_v30 }
 0x3a8   : > { %5185 = vmatpush1.bf16.msra.mxu0 %v5550_v44  ;;  %5217 = vmatpush1.bf16.msra.mxu1 %v5553_v45 }
 0x3a9   : > { %5187 = vmatprep.subr.bf16.mxu0 %v5554_v46  ;;  %5219 = vmatprep.subr.bf16.mxu1 %v5557_v48 }
 0x3ac   : > { %5189 = vmatpush1.bf16.msra.mxu0 %v5556_v49  ;;  %5221 = vmatpush1.bf16.msra.mxu1 %v5559_v50 }
 0x3ad   : > { %5191 = vmatprep.subr.bf16.mxu0 %v5560_v51  ;;  %5223 = vmatprep.subr.bf16.mxu1 %v5563_v39 }
 0x3b0   : > { %5193 = vmatpush1.bf16.msra.mxu0 %v5562_v52  ;;  %5225 = vmatpush1.bf16.msra.mxu1 %v5565_v53 }
 0x3b1   : > { %5195 = vmatprep.subr.bf16.mxu0 %v5566_v54  ;;  %5227 = vmatprep.subr.bf16.mxu1 %v5569_v56 }
 0x3b4   : > { %5197 = vmatpush1.bf16.msra.mxu0 %v5568_v57  ;;  %5229 = vmatpush1.bf16.msra.mxu1 %v5571_v58 }
 0x3b5   : > { %5199 = vmatprep.subr.bf16.mxu0 %v5572_v59  ;;  %5231 = vmatprep.subr.bf16.mxu1 %v5575_v47 }
 0x3b8   : > { %5201 = vmatpush1.bf16.msra.mxu0 %v5574_v60  ;;  %5233 = vmatpush1.bf16.msra.mxu1 %v5577_v61 }
 0x3bb   : > { %2494 = vmatmul.mubr.f32.vlgmr.msra.gmra.mrb[0].mxu0 %v2093_v63  ;;  %2565 = vmatmul.mubr.f32.vlgmr.msra.gmra.mrb[0].mxu1 %v2093_v63 }
 0x48e   : > { %v2495_v8 = vpop.f32.mrb[0].mxu0  ;;  %v2566_v9 = vpop.f32.mrb[0].mxu1 }
 0x48f   : > { %v2593_v10 = vadd.f32 %v2576_v4, %v2495_v8  ;;  %v2497_v11 = vpop.f32.mrb[1].mxu0  ;;  %v2568_v12 = vpop.f32.mrb[1].mxu1  ;;  %v2595_v6 = vadd.f32 %v2584_v20, %v2566_v9 }
 0x490   : > { %v2594_v13 = vadd.f32 %v2580_v5, %v2497_v11  ;;  %v2596_v19 = vadd.f32 %v2588_v17, %v2568_v12 }
 0x491   : > { %v4680_v15 = vmul.f32 -1.442695, %v2593_v10 }
 0x492   : > { %v4681_v16 = vmul.f32 -1.442695, %v2594_v13  ;;  %v4682_v21 = vmul.f32 -1.442695, %v2596_v19 }
 0x493   : > { %5578 = vpow2.f32 %v4680_v15 }
 0x494   : > { %5580 = vpow2.f32 %v4681_v16 }
 0x495   : > { %5582 = vpow2.f32 %v4682_v21 }
 0x496   : > { %5584 = vtanh.f32 %v2595_v6 }
 0x49d   : > { %v5579_v24 = vpop.eup %5578 }
 0x49e   : > { %v5581_v25 = vpop.eup %5580  ;;  %v2600_v23 = vadd.f32 1.0, %v5579_v24 }
 0x49f   : > { %v2606_v26 = vadd.f32 1.0, %v5581_v25  ;;  %v5583_v14 = vpop.eup %5582 }
 0x4a0   : > { %5586 = vrcp.f32 %v2600_v23  ;;  %v5585_v27 = vpop.eup %5584  ;;  %v2613_v33 = vadd.f32 1.0, %v5583_v14 }
 0x4a1   : > { %5588 = vrcp.f32 %v2606_v26 }
 0x4a2   : > { %5590 = vrcp.f32 %v2613_v33 }
 0x4aa   : > { %v5587_v29 = vpop.eup %5586 }
 0x4ab   : > { %v5589_v31 = vpop.eup %5588  ;;  %v2618_v32 = vmul.f32 %v5587_v29, %v5585_v27 }
 0x4ac   : > { %v2617_v34 = vmul.f32 %v5589_v31, %v2616_v28  ;;  %v5591_v35 = vpop.eup %5590 }
 0x4ae   : > { %v2619_v22 = vadd.f32 %v2618_v32, %v2617_v34 }
 0x4b0   : > { %5592 = vtanh.f32 %v2619_v22  ;;  %2623 = vst [vmem:[#allocation21] sm:$0x1] %v2619_v22 }
 0x4ba   : > { %v5593_v36 = vpop.eup %5592 }
 0x4bb   : > { %v2621_v38 = vmul.f32 %v5593_v36, %v5591_v35 }
 0x4bd   : > { %2622 = vst [vmem:[#allocation20] sm:$0x1] %v2621_v38 }
 0x4be PF: > { %p4683_p1 = scmp.lt.s32.totalorder %s6156_s17, 2 }
 0x4bf   : > { %v2631_v41 = vld [vmem:[%s6533_s10 + $0x8] sm:$0xff] (!%p4683_p1)  ;;  %v2633_v42 = vld [vmem:[%s6533_s10 + $0x18] sm:$0xff] (!%p4683_p1)  ;;  %v2630_v40 = vld [vmem:[%s6533_s10] sm:$0xff] (!%p4683_p1)  ;;  %v6044_v48 = vmov (!%p4683_p1), 0   ;;  %vm6047_vm1 = vmmov (!%p4683_p1), 0  }
 0x4c0   : > { %2627 = sbr.rel (%p4683_p1) target bundleno = 1727 (0x6bf), region = 120  ;;  %v2763_v43 = vunpack.c.l.s8.bf16 (!%p4683_p1), %v2631_v41  ;;  %v2796_v30 = vunpack.c.h.s8.bf16 (!%p4683_p1), %v2631_v41  ;;  %v2765_v44 = vunpack.c.l.s8.bf16 (!%p4683_p1), %v2633_v42  ;;  %v2798_v45 = vunpack.c.h.s8.bf16 (!%p4683_p1), %v2633_v42  ;;  %v2632_v46 = vld [vmem:[%s6533_s10 + $0x10] sm:$0xff] (!%p4683_p1)  ;;  %3058 = vmatprep.mubr.bf16.mxu0 (!%p4683_p1), %v6044_v48  ;;  %3099 = vmatprep.mubr.bf16.mxu1 (!%p4683_p1), %v6044_v48  ;;  %v2666_v39 = vld [vmem:[%s6533_s10 + $0x120] sm:$0xff] (!%p4683_p1)  ;;  %v2663_v57 = vld [vmem:[%s6533_s10 + $0x108] sm:$0xff] (!%p4683_p1) }
 0x4c1   : > { %v2762_v49 = vunpack.c.l.s8.bf16 (!%p4683_p1), %v2630_v40  ;;  %v2764_v50 = vunpack.c.l.s8.bf16 (!%p4683_p1), %v2632_v46  ;;  %v2664_v51 = vld [vmem:[%s6533_s10 + $0x110] sm:$0xff] (!%p4683_p1)  ;;  %v2795_v52 = vunpack.c.h.s8.bf16 (!%p4683_p1), %v2630_v40  ;;  %v2797_v53 = vunpack.c.h.s8.bf16 (!%p4683_p1), %v2632_v46  ;;  %v2665_v58 = vld [vmem:[%s6533_s10 + $0x118] sm:$0xff] (!%p4683_p1)  ;;  %v2699_v62 = vld [vmem:[%s6533_s10 + $0x228] sm:$0xff] (!%p4683_p1) }
 0x4c2   : > { %3026 = vmatprep.subr.bf16.mxu0 (!%p4683_p1), %v2763_v43  ;;  %3067 = vmatprep.subr.bf16.mxu1 (!%p4683_p1), %v2765_v44  ;;  %v2829_v54 = vunpack.c.l.s8.bf16 (!%p4683_p1), %v2664_v51  ;;  %v2831_v56 = vunpack.c.l.s8.bf16 (!%p4683_p1), %v2666_v39  ;;  %v2828_v59 = vunpack.c.l.s8.bf16 (!%p4683_p1), %v2663_v57  ;;  %v2830_v47 = vunpack.c.l.s8.bf16 (!%p4683_p1), %v2665_v58  ;;  %v2697_v37 = vld [vmem:[%s6533_s10 + $0x218] sm:$0xff] (!%p4683_p1)  ;;  %v2696_v55 = vld [vmem:[%s6533_s10 + $0x210] sm:$0xff] (!%p4683_p1)  ;;  %v2698_v3 = vld [vmem:[%s6533_s10 + $0x220] sm:$0xff] (!%p4683_p1) }
 0x4c3   : > { %3027 = vmatpush1.bf16.msra.mxu0 (!%p4683_p1), %v2762_v49  ;;  %3068 = vmatpush1.bf16.msra.mxu1 (!%p4683_p1), %v2764_v50  ;;  %v2862_v60 = vunpack.c.h.s8.bf16 (!%p4683_p1), %v2664_v51  ;;  %v2864_v61 = vunpack.c.h.s8.bf16 (!%p4683_p1), %v2666_v39  ;;  %v2861_v63 = vunpack.c.h.s8.bf16 (!%p4683_p1), %v2663_v57  ;;  %v2863_v0 = vunpack.c.h.s8.bf16 (!%p4683_p1), %v2665_v58  ;;  %v2730_v7 = vld [vmem:[%s6533_s10 + $0x320] sm:$0xff] (!%p4683_p1)  ;;  %v2732_v10 = vld [vmem:[%s6533_s10 + $0x330] sm:$0xff] (!%p4683_p1)  ;;  %v2729_v16 = vld [vmem:[%s6533_s10 + $0x318] sm:$0xff] (!%p4683_p1) }
 0x4c4   : > { %3028 = vmatprep.subr.bf16.mxu0 (!%p4683_p1), %v2796_v30  ;;  %3069 = vmatprep.subr.bf16.mxu1 (!%p4683_p1), %v2798_v45  ;;  %v2895_v1 = vunpack.c.l.s8.bf16 (!%p4683_p1), %v2697_v37  ;;  %v2897_v2 = vunpack.c.l.s8.bf16 (!%p4683_p1), %v2699_v62  ;;  %v2894_v4 = vunpack.c.l.s8.bf16 (!%p4683_p1), %v2696_v55  ;;  %v2896_v5 = vunpack.c.l.s8.bf16 (!%p4683_p1), %v2698_v3  ;;  %v2731_v17 = vld [vmem:[%s6533_s10 + $0x328] sm:$0xff] (!%p4683_p1)  ;;  %v2637_v24 = vld [vmem:[%s6533_s10 + $0x38] sm:$0xff] (!%p4683_p1)  ;;  %v2628_v26 = vld [vmem:[#allocation20] sm:$0x1] (!%p4683_p1) }
 0x4c5   : > { %v2928_v8 = vunpack.c.h.s8.bf16 (!%p4683_p1), %v2697_v37  ;;  %v2930_v9 = vunpack.c.h.s8.bf16 (!%p4683_p1), %v2699_v62  ;;  %v2927_v11 = vunpack.c.h.s8.bf16 (!%p4683_p1), %v2696_v55  ;;  %v2929_v12 = vunpack.c.h.s8.bf16 (!%p4683_p1), %v2698_v3  ;;  %v2635_v6 = vld [vmem:[%s6533_s10 + $0x28] sm:$0xff] (!%p4683_p1)  ;;  %v2634_v28 = vld [vmem:[%s6533_s10 + $0x20] sm:$0xff] (!%p4683_p1)  ;;  %v2636_v29 = vld [vmem:[%s6533_s10 + $0x30] sm:$0xff] (!%p4683_p1) }
 0x4c6   : > { %v2961_v13 = vunpack.c.l.s8.bf16 (!%p4683_p1), %v2730_v7  ;;  %v2963_v15 = vunpack.c.l.s8.bf16 (!%p4683_p1), %v2732_v10  ;;  %v2960_v18 = vunpack.c.l.s8.bf16 (!%p4683_p1), %v2729_v16  ;;  %v2962_v19 = vunpack.c.l.s8.bf16 (!%p4683_p1), %v2731_v17  ;;  %v2668_v35 = vld [vmem:[%s6533_s10 + $0x130] sm:$0xff] (!%p4683_p1)  ;;  %v2670_v36 = vld [vmem:[%s6533_s10 + $0x140] sm:$0xff] (!%p4683_p1)  ;;  %v2667_v43 = vld [vmem:[%s6533_s10 + $0x128] sm:$0xff] (!%p4683_p1) }
 0x4c7   : > { %3029 = vmatpush1.bf16.msra.mxu0 %v2795_v52  ;;  %3070 = vmatpush1.bf16.msra.mxu1 %v2797_v53  ;;  %v2994_v20 = vunpack.c.h.s8.bf16 %v2730_v7  ;;  %v2996_v21 = vunpack.c.h.s8.bf16 %v2732_v10  ;;  %v2993_v25 = vunpack.c.h.s8.bf16 %v2729_v16  ;;  %v2995_v23 = vunpack.c.h.s8.bf16 %v2731_v17  ;;  %v2669_v30 = vld [vmem:[%s6533_s10 + $0x138] sm:$0xff]  ;;  %v2703_v51 = vld [vmem:[%s6533_s10 + $0x248] sm:$0xff]  ;;  %v2702_v57 = vld [vmem:[%s6533_s10 + $0x240] sm:$0xff] }
 0x4c8   : > { %3030 = vmatprep.subr.bf16.mxu0 %v2829_v54  ;;  %3071 = vmatprep.subr.bf16.mxu1 %v2831_v56  ;;  %v2767_v14 = vunpack.c.l.s8.bf16 %v2635_v6  ;;  %v2769_v27 = vunpack.c.l.s8.bf16 %v2637_v24  ;;  %v6805_v31 = vpack.c.bf16 %v2628_v26, %v2628_v26  ;;  %v2766_v32 = vunpack.c.l.s8.bf16 %v2634_v28  ;;  %v2701_v50 = vld [vmem:[%s6533_s10 + $0x238] sm:$0xff]  ;;  %v2700_v56 = vld [vmem:[%s6533_s10 + $0x230] sm:$0xff]  ;;  %v2735_v55 = vld [vmem:[%s6533_s10 + $0x348] sm:$0xff] }
 0x4c9   : > { %v2768_v33 = vunpack.c.l.s8.bf16 %v2636_v29  ;;  %v2800_v34 = vunpack.c.h.s8.bf16 %v2635_v6  ;;  %v2802_v22 = vunpack.c.h.s8.bf16 %v2637_v24  ;;  %v2799_v38 = vunpack.c.h.s8.bf16 %v2634_v28  ;;  %v2736_v37 = vld [vmem:[%s6533_s10 + $0x350] sm:$0xff]  ;;  %v2641_v7 = vld [vmem:[%s6533_s10 + $0x58] sm:$0xff]  ;;  %v2674_v6 = vld [vmem:[%s6533_s10 + $0x160] sm:$0xff] }
 0x4ca   : > { %v2801_v41 = vunpack.c.h.s8.bf16 %v2636_v29  ;;  %v2833_v42 = vunpack.c.l.s8.bf16 %v2668_v35  ;;  %v2835_v40 = vunpack.c.l.s8.bf16 %v2670_v36  ;;  %v2832_v44 = vunpack.c.l.s8.bf16 %v2667_v43  ;;  %v2640_v16 = vld [vmem:[%s6533_s10 + $0x50] sm:$0xff] }
 0x4cb   : > { %3031 = vmatpush1.bf16.msra.mxu0 %v2828_v59  ;;  %3072 = vmatpush1.bf16.msra.mxu1 %v2830_v47  ;;  %v2834_v45 = vunpack.c.l.s8.bf16 %v2669_v30  ;;  %v2866_v46 = vunpack.c.h.s8.bf16 %v2668_v35  ;;  %v2868_v49 = vunpack.c.h.s8.bf16 %v2670_v36  ;;  %v2865_v39 = vunpack.c.h.s8.bf16 %v2667_v43 }
 0x4cc   : > { %3032 = vmatprep.subr.bf16.mxu0 %v2862_v60  ;;  %3073 = vmatprep.subr.bf16.mxu1 %v2864_v61  ;;  %v2867_v52 = vunpack.c.h.s8.bf16 %v2669_v30  ;;  %v2899_v53 = vunpack.c.l.s8.bf16 %v2701_v50  ;;  %v2901_v54 = vunpack.c.l.s8.bf16 %v2703_v51  ;;  %v2898_v58 = vunpack.c.l.s8.bf16 %v2700_v56  ;;  %v2734_v61 = vld [vmem:[%s6533_s10 + $0x340] sm:$0xff] }
 0x4cd   : > { %v2900_v59 = vunpack.c.l.s8.bf16 %v2702_v57  ;;  %v2932_v47 = vunpack.c.h.s8.bf16 %v2701_v50  ;;  %v2934_v60 = vunpack.c.h.s8.bf16 %v2703_v51  ;;  %v2931_v62 = vunpack.c.h.s8.bf16 %v2700_v56 }
 0x4ce   : > { %v2839_v26 = vunpack.c.l.s8.bf16 %v2674_v6 }
 0x4cf   : > { %3033 = vmatpush1.bf16.msra.mxu0 %v2861_v63  ;;  %3074 = vmatpush1.bf16.msra.mxu1 %v2863_v0  ;;  %v2933_v63 = vunpack.c.h.s8.bf16 %v2702_v57  ;;  %v2965_v0 = vunpack.c.l.s8.bf16 %v2734_v61 }
 0x4d0   : > { %3034 = vmatprep.subr.bf16.mxu0 %v2895_v1  ;;  %3075 = vmatprep.subr.bf16.mxu1 %v2897_v2  ;;  %v2967_v1 = vunpack.c.l.s8.bf16 %v2736_v37  ;;  %v2733_v2 = vld [vmem:[%s6533_s10 + $0x338] sm:$0xff] }
 0x4d1   : > { %v2964_v3 = vunpack.c.l.s8.bf16 %v2733_v2  ;;  %v2997_v10 = vunpack.c.h.s8.bf16 %v2733_v2 }
 0x4d3   : > { %3035 = vmatpush1.bf16.msra.mxu0 %v2894_v4  ;;  %3076 = vmatpush1.bf16.msra.mxu1 %v2896_v5  ;;  %v2966_v4 = vunpack.c.l.s8.bf16 %v2735_v55  ;;  %v2998_v5 = vunpack.c.h.s8.bf16 %v2734_v61 }
 0x4d4   : > { %3036 = vmatprep.subr.bf16.mxu0 %v2928_v8  ;;  %3077 = vmatprep.subr.bf16.mxu1 %v2930_v9  ;;  %v3000_v8 = vunpack.c.h.s8.bf16 %v2736_v37  ;;  %v2639_v9 = vld [vmem:[%s6533_s10 + $0x48] sm:$0xff] }
 0x4d7   : > { %3037 = vmatpush1.bf16.msra.mxu0 %v2927_v11  ;;  %3078 = vmatpush1.bf16.msra.mxu1 %v2929_v12  ;;  %v2999_v11 = vunpack.c.h.s8.bf16 %v2735_v55  ;;  %v2771_v12 = vunpack.c.l.s8.bf16 %v2639_v9 }
 0x4d8   : > { %3038 = vmatprep.subr.bf16.mxu0 %v2961_v13  ;;  %3079 = vmatprep.subr.bf16.mxu1 %v2963_v15  ;;  %v2773_v13 = vunpack.c.l.s8.bf16 %v2641_v7  ;;  %v2638_v15 = vld [vmem:[%s6533_s10 + $0x40] sm:$0xff] }
 0x4d9   : > { %v2770_v17 = vunpack.c.l.s8.bf16 %v2638_v15  ;;  %v2803_v24 = vunpack.c.h.s8.bf16 %v2638_v15 }
 0x4db   : > { %3039 = vmatpush1.bf16.msra.mxu0 %v2960_v18  ;;  %3080 = vmatpush1.bf16.msra.mxu1 %v2962_v19  ;;  %v2772_v18 = vunpack.c.l.s8.bf16 %v2640_v16  ;;  %v2804_v19 = vunpack.c.h.s8.bf16 %v2639_v9 }
 0x4dc   : > { %3040 = vmatprep.subr.bf16.mxu0 %v2994_v20  ;;  %3081 = vmatprep.subr.bf16.mxu1 %v2996_v21  ;;  %v2806_v20 = vunpack.c.h.s8.bf16 %v2641_v7  ;;  %v2672_v21 = vld [vmem:[%s6533_s10 + $0x150] sm:$0xff] }
 0x4df   : > { %3041 = vmatpush1.bf16.msra.mxu0 %v2993_v25  ;;  %3082 = vmatpush1.bf16.msra.mxu1 %v2995_v23  ;;  %v2805_v25 = vunpack.c.h.s8.bf16 %v2640_v16  ;;  %v2837_v23 = vunpack.c.l.s8.bf16 %v2672_v21 }
 0x4e0   : > { %3108 = vmatprep.subr.bf16.mxu0 %v2767_v14  ;;  %3149 = vmatprep.subr.bf16.mxu1 %v2769_v27  ;;  %v2671_v14 = vld [vmem:[%s6533_s10 + $0x148] sm:$0xff]  ;;  %v2673_v27 = vld [vmem:[%s6533_s10 + $0x158] sm:$0xff] }
 0x4e1   : > { %v2836_v28 = vunpack.c.l.s8.bf16 %v2671_v14  ;;  %v2838_v29 = vunpack.c.l.s8.bf16 %v2673_v27  ;;  %v2869_v35 = vunpack.c.h.s8.bf16 %v2671_v14  ;;  %v2871_v36 = vunpack.c.h.s8.bf16 %v2673_v27 }
 0x4e2   : > { %3059 = vmatmul.mubr.bf16.vlgmr.msra.gmra.mrb[0].mxu0 %v6805_v31  ;;  %3100 = vmatmul.mubr.bf16.vlgmr.msra.gmra.mrb[0].mxu1 %v6805_v31 }
 0x4e3   : > { %3109 = vmatpush1.bf16.msra.mxu0 %v2766_v32  ;;  %3150 = vmatpush1.bf16.msra.mxu1 %v2768_v33  ;;  %v2870_v32 = vunpack.c.h.s8.bf16 %v2672_v21  ;;  %v2872_v33 = vunpack.c.h.s8.bf16 %v2674_v6 }
 0x4e4   : > { %3110 = vmatprep.subr.bf16.mxu0 %v2800_v34  ;;  %3151 = vmatprep.subr.bf16.mxu1 %v2802_v22  ;;  %v2705_v34 = vld [vmem:[%s6533_s10 + $0x258] sm:$0xff]  ;;  %v2707_v22 = vld [vmem:[%s6533_s10 + $0x268] sm:$0xff] }
 0x4e5   : > { %3140 = vmatprep.mubr.bf16.mxu0 %v6044_v48  ;;  %3181 = vmatprep.mubr.bf16.mxu1 %v6044_v48 }
 0x4e7   : > { %3111 = vmatpush1.bf16.msra.mxu0 %v2799_v38  ;;  %3152 = vmatpush1.bf16.msra.mxu1 %v2801_v41  ;;  %v2903_v38 = vunpack.c.l.s8.bf16 %v2705_v34  ;;  %v2905_v41 = vunpack.c.l.s8.bf16 %v2707_v22 }
 0x4e8   : > { %3112 = vmatprep.subr.bf16.mxu0 %v2833_v42  ;;  %3153 = vmatprep.subr.bf16.mxu1 %v2835_v40  ;;  %v2704_v42 = vld [vmem:[%s6533_s10 + $0x250] sm:$0xff]  ;;  %v2706_v40 = vld [vmem:[%s6533_s10 + $0x260] sm:$0xff] }
 0x4e9   : > { %v2902_v43 = vunpack.c.l.s8.bf16 %v2704_v42  ;;  %v2904_v30 = vunpack.c.l.s8.bf16 %v2706_v40  ;;  %v2935_v50 = vunpack.c.h.s8.bf16 %v2704_v42  ;;  %v2937_v51 = vunpack.c.h.s8.bf16 %v2706_v40 }
 0x4eb   : > { %3113 = vmatpush1.bf16.msra.mxu0 %v2832_v44  ;;  %3154 = vmatpush1.bf16.msra.mxu1 %v2834_v45  ;;  %v2936_v44 = vunpack.c.h.s8.bf16 %v2705_v34  ;;  %v2938_v45 = vunpack.c.h.s8.bf16 %v2707_v22 }
 0x4ec   : > { %3114 = vmatprep.subr.bf16.mxu0 %v2866_v46  ;;  %3155 = vmatprep.subr.bf16.mxu1 %v2868_v49  ;;  %v2738_v46 = vld [vmem:[%s6533_s10 + $0x360] sm:$0xff]  ;;  %v2740_v49 = vld [vmem:[%s6533_s10 + $0x370] sm:$0xff] }
 0x4ef   : > { %3115 = vmatpush1.bf16.msra.mxu0 %v2865_v39  ;;  %3156 = vmatpush1.bf16.msra.mxu1 %v2867_v52  ;;  %v2969_v39 = vunpack.c.l.s8.bf16 %v2738_v46  ;;  %v2971_v52 = vunpack.c.l.s8.bf16 %v2740_v49 }
 0x4f0   : > { %3116 = vmatprep.subr.bf16.mxu0 %v2899_v53  ;;  %3157 = vmatprep.subr.bf16.mxu1 %v2901_v54  ;;  %v2737_v53 = vld [vmem:[%s6533_s10 + $0x358] sm:$0xff]  ;;  %v2739_v54 = vld [vmem:[%s6533_s10 + $0x368] sm:$0xff] }
 0x4f1   : > { %v2968_v56 = vunpack.c.l.s8.bf16 %v2737_v53  ;;  %v2970_v57 = vunpack.c.l.s8.bf16 %v2739_v54  ;;  %v3001_v61 = vunpack.c.h.s8.bf16 %v2737_v53  ;;  %v3003_v37 = vunpack.c.h.s8.bf16 %v2739_v54 }
 0x4f3   : > { %3117 = vmatpush1.bf16.msra.mxu0 %v2898_v58  ;;  %3158 = vmatpush1.bf16.msra.mxu1 %v2900_v59  ;;  %v3002_v58 = vunpack.c.h.s8.bf16 %v2738_v46  ;;  %v3004_v59 = vunpack.c.h.s8.bf16 %v2740_v49 }
 0x4f4   : > { %3118 = vmatprep.subr.bf16.mxu0 %v2932_v47  ;;  %3159 = vmatprep.subr.bf16.mxu1 %v2934_v60  ;;  %v2643_v47 = vld [vmem:[%s6533_s10 + $0x68] sm:$0xff]  ;;  %v2645_v60 = vld [vmem:[%s6533_s10 + $0x78] sm:$0xff] }
 0x4f7   : > { %3119 = vmatpush1.bf16.msra.mxu0 %v2931_v62  ;;  %3160 = vmatpush1.bf16.msra.mxu1 %v2933_v63  ;;  %v2775_v62 = vunpack.c.l.s8.bf16 %v2643_v47  ;;  %v2777_v63 = vunpack.c.l.s8.bf16 %v2645_v60 }
 0x4f8   : > { %3120 = vmatprep.subr.bf16.mxu0 %v2965_v0  ;;  %3161 = vmatprep.subr.bf16.mxu1 %v2967_v1  ;;  %v2642_v0 = vld [vmem:[%s6533_s10 + $0x60] sm:$0xff]  ;;  %v2644_v1 = vld [vmem:[%s6533_s10 + $0x70] sm:$0xff] }
 0x4f9   : > { %v2774_v2 = vunpack.c.l.s8.bf16 %v2642_v0  ;;  %v2776_v55 = vunpack.c.l.s8.bf16 %v2644_v1  ;;  %v2807_v9 = vunpack.c.h.s8.bf16 %v2642_v0  ;;  %v2809_v7 = vunpack.c.h.s8.bf16 %v2644_v1 }
 0x4fb   : > { %3121 = vmatpush1.bf16.msra.mxu0 %v2964_v3  ;;  %3162 = vmatpush1.bf16.msra.mxu1 %v2966_v4  ;;  %v2808_v3 = vunpack.c.h.s8.bf16 %v2643_v47  ;;  %v2810_v4 = vunpack.c.h.s8.bf16 %v2645_v60 }
 0x4fc   : > { %3122 = vmatprep.subr.bf16.mxu0 %v2998_v5  ;;  %3163 = vmatprep.subr.bf16.mxu1 %v3000_v8  ;;  %v2676_v5 = vld [vmem:[%s6533_s10 + $0x170] sm:$0xff]  ;;  %v2678_v8 = vld [vmem:[%s6533_s10 + $0x180] sm:$0xff] }
 0x4ff   : > { %3123 = vmatpush1.bf16.msra.mxu0 %v2997_v10  ;;  %3164 = vmatpush1.bf16.msra.mxu1 %v2999_v11  ;;  %v2841_v10 = vunpack.c.l.s8.bf16 %v2676_v5  ;;  %v2843_v11 = vunpack.c.l.s8.bf16 %v2678_v8 }
 0x500   : > { %3190 = vmatprep.subr.bf16.mxu0 %v2771_v12  ;;  %3231 = vmatprep.subr.bf16.mxu1 %v2773_v13  ;;  %v2675_v12 = vld [vmem:[%s6533_s10 + $0x168] sm:$0xff]  ;;  %v2677_v13 = vld [vmem:[%s6533_s10 + $0x178] sm:$0xff] }
 0x501   : > { %v2840_v15 = vunpack.c.l.s8.bf16 %v2675_v12  ;;  %v2842_v16 = vunpack.c.l.s8.bf16 %v2677_v13  ;;  %v2873_v21 = vunpack.c.h.s8.bf16 %v2675_v12  ;;  %v2875_v6 = vunpack.c.h.s8.bf16 %v2677_v13 }
 0x502   : > { %3141 = vmatmul.mubr.bf16.vlgmr.msra.gmra.mrb[4].mxu0 %v6805_v31  ;;  %3182 = vmatmul.mubr.bf16.vlgmr.msra.gmra.mrb[4].mxu1 %v6805_v31 }
 0x503   : > { %3191 = vmatpush1.bf16.msra.mxu0 %v2770_v17  ;;  %3232 = vmatpush1.bf16.msra.mxu1 %v2772_v18  ;;  %v2874_v17 = vunpack.c.h.s8.bf16 %v2676_v5  ;;  %v2876_v18 = vunpack.c.h.s8.bf16 %v2678_v8 }
 0x504   : > { %3192 = vmatprep.subr.bf16.mxu0 %v2804_v19  ;;  %3233 = vmatprep.subr.bf16.mxu1 %v2806_v20  ;;  %v2709_v19 = vld [vmem:[%s6533_s10 + $0x278] sm:$0xff]  ;;  %v2711_v20 = vld [vmem:[%s6533_s10 + $0x288] sm:$0xff] }
 0x505   : > { %3222 = vmatprep.mubr.bf16.mxu0 %v6044_v48  ;;  %3263 = vmatprep.mubr.bf16.mxu1 %v6044_v48 }
 0x507   : > { %3193 = vmatpush1.bf16.msra.mxu0 %v2803_v24  ;;  %3234 = vmatpush1.bf16.msra.mxu1 %v2805_v25  ;;  %v2907_v24 = vunpack.c.l.s8.bf16 %v2709_v19  ;;  %v2909_v25 = vunpack.c.l.s8.bf16 %v2711_v20 }
 0x508   : > { %3194 = vmatprep.subr.bf16.mxu0 %v2837_v23  ;;  %3235 = vmatprep.subr.bf16.mxu1 %v2839_v26  ;;  %v2708_v23 = vld [vmem:[%s6533_s10 + $0x270] sm:$0xff]  ;;  %v2710_v26 = vld [vmem:[%s6533_s10 + $0x280] sm:$0xff] }
 0x509   : > { %v2906_v14 = vunpack.c.l.s8.bf16 %v2708_v23  ;;  %v2908_v27 = vunpack.c.l.s8.bf16 %v2710_v26  ;;  %v2939_v34 = vunpack.c.h.s8.bf16 %v2708_v23  ;;  %v2941_v22 = vunpack.c.h.s8.bf16 %v2710_v26 }
 0x50b   : > { %3195 = vmatpush1.bf16.msra.mxu0 %v2836_v28  ;;  %3236 = vmatpush1.bf16.msra.mxu1 %v2838_v29  ;;  %v2940_v28 = vunpack.c.h.s8.bf16 %v2709_v19  ;;  %v2942_v29 = vunpack.c.h.s8.bf16 %v2711_v20 }
 0x50c   : > { %3196 = vmatprep.subr.bf16.mxu0 %v2870_v32  ;;  %3237 = vmatprep.subr.bf16.mxu1 %v2872_v33  ;;  %v2742_v32 = vld [vmem:[%s6533_s10 + $0x380] sm:$0xff]  ;;  %v2744_v33 = vld [vmem:[%s6533_s10 + $0x390] sm:$0xff] }
 0x50f   : > { %3197 = vmatpush1.bf16.msra.mxu0 %v2869_v35  ;;  %3238 = vmatpush1.bf16.msra.mxu1 %v2871_v36  ;;  %v2973_v35 = vunpack.c.l.s8.bf16 %v2742_v32  ;;  %v2975_v36 = vunpack.c.l.s8.bf16 %v2744_v33 }
 0x510   : > { %3198 = vmatprep.subr.bf16.mxu0 %v2903_v38  ;;  %3239 = vmatprep.subr.bf16.mxu1 %v2905_v41  ;;  %v2741_v38 = vld [vmem:[%s6533_s10 + $0x378] sm:$0xff]  ;;  %v2743_v41 = vld [vmem:[%s6533_s10 + $0x388] sm:$0xff] }
 0x511   : > { %v2972_v42 = vunpack.c.l.s8.bf16 %v2741_v38  ;;  %v2974_v40 = vunpack.c.l.s8.bf16 %v2743_v41  ;;  %v3005_v46 = vunpack.c.h.s8.bf16 %v2741_v38  ;;  %v3007_v49 = vunpack.c.h.s8.bf16 %v2743_v41 }
 0x513   : > { %3199 = vmatpush1.bf16.msra.mxu0 %v2902_v43  ;;  %3240 = vmatpush1.bf16.msra.mxu1 %v2904_v30  ;;  %v3006_v43 = vunpack.c.h.s8.bf16 %v2742_v32  ;;  %v3008_v30 = vunpack.c.h.s8.bf16 %v2744_v33 }
 0x514   : > { %3200 = vmatprep.subr.bf16.mxu0 %v2936_v44  ;;  %3241 = vmatprep.subr.bf16.mxu1 %v2938_v45  ;;  %v2647_v44 = vld [vmem:[%s6533_s10 + $0x88] sm:$0xff]  ;;  %v2649_v45 = vld [vmem:[%s6533_s10 + $0x98] sm:$0xff] }
 0x517   : > { %3201 = vmatpush1.bf16.msra.mxu0 %v2935_v50  ;;  %3242 = vmatpush1.bf16.msra.mxu1 %v2937_v51  ;;  %v2779_v50 = vunpack.c.l.s8.bf16 %v2647_v44  ;;  %v2781_v51 = vunpack.c.l.s8.bf16 %v2649_v45 }
 0x518   : > { %3202 = vmatprep.subr.bf16.mxu0 %v2969_v39  ;;  %3243 = vmatprep.subr.bf16.mxu1 %v2971_v52  ;;  %v2646_v39 = vld [vmem:[%s6533_s10 + $0x80] sm:$0xff]  ;;  %v2648_v52 = vld [vmem:[%s6533_s10 + $0x90] sm:$0xff] }
 0x519   : > { %v2778_v53 = vunpack.c.l.s8.bf16 %v2646_v39  ;;  %v2780_v54 = vunpack.c.l.s8.bf16 %v2648_v52  ;;  %v2811_v47 = vunpack.c.h.s8.bf16 %v2646_v39  ;;  %v2813_v60 = vunpack.c.h.s8.bf16 %v2648_v52 }
 0x51b   : > { %3203 = vmatpush1.bf16.msra.mxu0 %v2968_v56  ;;  %3244 = vmatpush1.bf16.msra.mxu1 %v2970_v57  ;;  %v2812_v56 = vunpack.c.h.s8.bf16 %v2647_v44  ;;  %v2814_v57 = vunpack.c.h.s8.bf16 %v2649_v45 }
 0x51c   : > { %3204 = vmatprep.subr.bf16.mxu0 %v3002_v58  ;;  %3245 = vmatprep.subr.bf16.mxu1 %v3004_v59  ;;  %v2680_v58 = vld [vmem:[%s6533_s10 + $0x190] sm:$0xff]  ;;  %v2682_v59 = vld [vmem:[%s6533_s10 + $0x1a0] sm:$0xff] }
 0x51f   : > { %3205 = vmatpush1.bf16.msra.mxu0 %v3001_v61  ;;  %3246 = vmatpush1.bf16.msra.mxu1 %v3003_v37  ;;  %v2845_v61 = vunpack.c.l.s8.bf16 %v2680_v58  ;;  %v2847_v37 = vunpack.c.l.s8.bf16 %v2682_v59 }
 0x520   : > { %3272 = vmatprep.subr.bf16.mxu0 %v2775_v62  ;;  %3313 = vmatprep.subr.bf16.mxu1 %v2777_v63  ;;  %v2679_v62 = vld [vmem:[%s6533_s10 + $0x188] sm:$0xff]  ;;  %v2681_v63 = vld [vmem:[%s6533_s10 + $0x198] sm:$0xff] }
 0x521   : > { %v2844_v0 = vunpack.c.l.s8.bf16 %v2679_v62  ;;  %v2846_v1 = vunpack.c.l.s8.bf16 %v2681_v63  ;;  %v2877_v5 = vunpack.c.h.s8.bf16 %v2679_v62  ;;  %v2879_v8 = vunpack.c.h.s8.bf16 %v2681_v63 }
 0x522   : > { %3223 = vmatmul.mubr.bf16.vlgmr.msra.gmra.mrb[8].mxu0 %v6805_v31  ;;  %3264 = vmatmul.mubr.bf16.vlgmr.msra.gmra.mrb[8].mxu1 %v6805_v31 }
 0x523   : > { %3273 = vmatpush1.bf16.msra.mxu0 %v2774_v2  ;;  %3314 = vmatpush1.bf16.msra.mxu1 %v2776_v55  ;;  %v2878_v2 = vunpack.c.h.s8.bf16 %v2680_v58  ;;  %v2880_v55 = vunpack.c.h.s8.bf16 %v2682_v59 }
 0x524   : > { %3274 = vmatprep.subr.bf16.mxu0 %v2808_v3  ;;  %3315 = vmatprep.subr.bf16.mxu1 %v2810_v4  ;;  %v2713_v3 = vld [vmem:[%s6533_s10 + $0x298] sm:$0xff]  ;;  %v2715_v4 = vld [vmem:[%s6533_s10 + $0x2a8] sm:$0xff] }
 0x525   : > { %3304 = vmatprep.mubr.bf16.mxu0 %v6044_v48  ;;  %3345 = vmatprep.mubr.bf16.mxu1 %v6044_v48 }
 0x527   : > { %3275 = vmatpush1.bf16.msra.mxu0 %v2807_v9  ;;  %3316 = vmatpush1.bf16.msra.mxu1 %v2809_v7  ;;  %v2911_v9 = vunpack.c.l.s8.bf16 %v2713_v3  ;;  %v2913_v7 = vunpack.c.l.s8.bf16 %v2715_v4 }
 0x528   : > { %3276 = vmatprep.subr.bf16.mxu0 %v2841_v10  ;;  %3317 = vmatprep.subr.bf16.mxu1 %v2843_v11  ;;  %v2712_v10 = vld [vmem:[%s6533_s10 + $0x290] sm:$0xff]  ;;  %v2714_v11 = vld [vmem:[%s6533_s10 + $0x2a0] sm:$0xff] }
 0x529   : > { %v2910_v12 = vunpack.c.l.s8.bf16 %v2712_v10  ;;  %v2912_v13 = vunpack.c.l.s8.bf16 %v2714_v11  ;;  %v2943_v19 = vunpack.c.h.s8.bf16 %v2712_v10  ;;  %v2945_v20 = vunpack.c.h.s8.bf16 %v2714_v11 }
 0x52b   : > { %3277 = vmatpush1.bf16.msra.mxu0 %v2840_v15  ;;  %3318 = vmatpush1.bf16.msra.mxu1 %v2842_v16  ;;  %v2944_v15 = vunpack.c.h.s8.bf16 %v2713_v3  ;;  %v2946_v16 = vunpack.c.h.s8.bf16 %v2715_v4 }
 0x52c   : > { %3278 = vmatprep.subr.bf16.mxu0 %v2874_v17  ;;  %3319 = vmatprep.subr.bf16.mxu1 %v2876_v18  ;;  %v2746_v17 = vld [vmem:[%s6533_s10 + $0x3a0] sm:$0xff]  ;;  %v2748_v18 = vld [vmem:[%s6533_s10 + $0x3b0] sm:$0xff] }
 0x52f   : > { %3279 = vmatpush1.bf16.msra.mxu0 %v2873_v21  ;;  %3320 = vmatpush1.bf16.msra.mxu1 %v2875_v6  ;;  %v2977_v21 = vunpack.c.l.s8.bf16 %v2746_v17  ;;  %v2979_v6 = vunpack.c.l.s8.bf16 %v2748_v18 }
 0x530   : > { %3280 = vmatprep.subr.bf16.mxu0 %v2907_v24  ;;  %3321 = vmatprep.subr.bf16.mxu1 %v2909_v25  ;;  %v2745_v24 = vld [vmem:[%s6533_s10 + $0x398] sm:$0xff]  ;;  %v2747_v25 = vld [vmem:[%s6533_s10 + $0x3a8] sm:$0xff] }
 0x531   : > { %v2976_v23 = vunpack.c.l.s8.bf16 %v2745_v24  ;;  %v2978_v26 = vunpack.c.l.s8.bf16 %v2747_v25  ;;  %v3009_v32 = vunpack.c.h.s8.bf16 %v2745_v24  ;;  %v3011_v33 = vunpack.c.h.s8.bf16 %v2747_v25 }
 0x533   : > { %3281 = vmatpush1.bf16.msra.mxu0 %v2906_v14  ;;  %3322 = vmatpush1.bf16.msra.mxu1 %v2908_v27  ;;  %v3010_v14 = vunpack.c.h.s8.bf16 %v2746_v17  ;;  %v3012_v27 = vunpack.c.h.s8.bf16 %v2748_v18 }
 0x534   : > { %3282 = vmatprep.subr.bf16.mxu0 %v2940_v28  ;;  %3323 = vmatprep.subr.bf16.mxu1 %v2942_v29  ;;  %v2651_v28 = vld [vmem:[%s6533_s10 + $0xa8] sm:$0xff]  ;;  %v2653_v29 = vld [vmem:[%s6533_s10 + $0xb8] sm:$0xff] }
 0x537   : > { %3283 = vmatpush1.bf16.msra.mxu0 %v2939_v34  ;;  %3324 = vmatpush1.bf16.msra.mxu1 %v2941_v22  ;;  %v2783_v34 = vunpack.c.l.s8.bf16 %v2651_v28  ;;  %v2785_v22 = vunpack.c.l.s8.bf16 %v2653_v29 }
 0x538   : > { %3284 = vmatprep.subr.bf16.mxu0 %v2973_v35  ;;  %3325 = vmatprep.subr.bf16.mxu1 %v2975_v36  ;;  %v2650_v35 = vld [vmem:[%s6533_s10 + $0xa0] sm:$0xff]  ;;  %v2652_v36 = vld [vmem:[%s6533_s10 + $0xb0] sm:$0xff] }
 0x539   : > { %v2782_v38 = vunpack.c.l.s8.bf16 %v2650_v35  ;;  %v2784_v41 = vunpack.c.l.s8.bf16 %v2652_v36  ;;  %v2815_v44 = vunpack.c.h.s8.bf16 %v2650_v35  ;;  %v2817_v45 = vunpack.c.h.s8.bf16 %v2652_v36 }
 0x53b   : > { %3285 = vmatpush1.bf16.msra.mxu0 %v2972_v42  ;;  %3326 = vmatpush1.bf16.msra.mxu1 %v2974_v40  ;;  %v2816_v42 = vunpack.c.h.s8.bf16 %v2651_v28  ;;  %v2818_v40 = vunpack.c.h.s8.bf16 %v2653_v29 }
 0x53c   : > { %3286 = vmatprep.subr.bf16.mxu0 %v3006_v43  ;;  %3327 = vmatprep.subr.bf16.mxu1 %v3008_v30  ;;  %v2684_v43 = vld [vmem:[%s6533_s10 + $0x1b0] sm:$0xff]  ;;  %v2686_v30 = vld [vmem:[%s6533_s10 + $0x1c0] sm:$0xff] }
 0x53f   : > { %3287 = vmatpush1.bf16.msra.mxu0 %v3005_v46  ;;  %3328 = vmatpush1.bf16.msra.mxu1 %v3007_v49  ;;  %v2849_v46 = vunpack.c.l.s8.bf16 %v2684_v43  ;;  %v2851_v49 = vunpack.c.l.s8.bf16 %v2686_v30 }
 0x540   : > { %3354 = vmatprep.subr.bf16.mxu0 %v2779_v50  ;;  %3395 = vmatprep.subr.bf16.mxu1 %v2781_v51  ;;  %v2683_v50 = vld [vmem:[%s6533_s10 + $0x1a8] sm:$0xff]  ;;  %v2685_v51 = vld [vmem:[%s6533_s10 + $0x1b8] sm:$0xff] }
 0x541   : > { %v2848_v39 = vunpack.c.l.s8.bf16 %v2683_v50  ;;  %v2850_v52 = vunpack.c.l.s8.bf16 %v2685_v51  ;;  %v2881_v58 = vunpack.c.h.s8.bf16 %v2683_v50  ;;  %v2883_v59 = vunpack.c.h.s8.bf16 %v2685_v51 }
 0x542   : > { %3305 = vmatmul.mubr.bf16.vlgmr.msra.gmra.mrb[12].mxu0 %v6805_v31  ;;  %3346 = vmatmul.mubr.bf16.vlgmr.msra.gmra.mrb[12].mxu1 %v6805_v31 }
 0x543   : > { %3355 = vmatpush1.bf16.msra.mxu0 %v2778_v53  ;;  %3396 = vmatpush1.bf16.msra.mxu1 %v2780_v54  ;;  %v2882_v53 = vunpack.c.h.s8.bf16 %v2684_v43  ;;  %v2884_v54 = vunpack.c.h.s8.bf16 %v2686_v30 }
 0x544   : > { %3356 = vmatprep.subr.bf16.mxu0 %v2812_v56  ;;  %3397 = vmatprep.subr.bf16.mxu1 %v2814_v57  ;;  %v2717_v56 = vld [vmem:[%s6533_s10 + $0x2b8] sm:$0xff]  ;;  %v2719_v57 = vld [vmem:[%s6533_s10 + $0x2c8] sm:$0xff] }
 0x545   : > { %3386 = vmatprep.mubr.bf16.mxu0 %v6044_v48  ;;  %3427 = vmatprep.mubr.bf16.mxu1 %v6044_v48 }
 0x547   : > { %3357 = vmatpush1.bf16.msra.mxu0 %v2811_v47  ;;  %3398 = vmatpush1.bf16.msra.mxu1 %v2813_v60  ;;  %v2915_v47 = vunpack.c.l.s8.bf16 %v2717_v56  ;;  %v2917_v60 = vunpack.c.l.s8.bf16 %v2719_v57 }
 0x548   : > { %3358 = vmatprep.subr.bf16.mxu0 %v2845_v61  ;;  %3399 = vmatprep.subr.bf16.mxu1 %v2847_v37  ;;  %v2716_v61 = vld [vmem:[%s6533_s10 + $0x2b0] sm:$0xff]  ;;  %v2718_v37 = vld [vmem:[%s6533_s10 + $0x2c0] sm:$0xff] }
 0x549   : > { %v2914_v62 = vunpack.c.l.s8.bf16 %v2716_v61  ;;  %v2916_v63 = vunpack.c.l.s8.bf16 %v2718_v37  ;;  %v2947_v3 = vunpack.c.h.s8.bf16 %v2716_v61  ;;  %v2949_v4 = vunpack.c.h.s8.bf16 %v2718_v37 }
 0x54b   : > { %3359 = vmatpush1.bf16.msra.mxu0 %v2844_v0  ;;  %3400 = vmatpush1.bf16.msra.mxu1 %v2846_v1  ;;  %v2948_v0 = vunpack.c.h.s8.bf16 %v2717_v56  ;;  %v2950_v1 = vunpack.c.h.s8.bf16 %v2719_v57 }
 0x54c   : > { %3360 = vmatprep.subr.bf16.mxu0 %v2878_v2  ;;  %3401 = vmatprep.subr.bf16.mxu1 %v2880_v55  ;;  %v2750_v2 = vld [vmem:[%s6533_s10 + $0x3c0] sm:$0xff]  ;;  %v2752_v55 = vld [vmem:[%s6533_s10 + $0x3d0] sm:$0xff] }
 0x54f   : > { %3361 = vmatpush1.bf16.msra.mxu0 %v2877_v5  ;;  %3402 = vmatpush1.bf16.msra.mxu1 %v2879_v8  ;;  %v2981_v5 = vunpack.c.l.s8.bf16 %v2750_v2  ;;  %v2983_v8 = vunpack.c.l.s8.bf16 %v2752_v55 }
 0x550   : > { %3362 = vmatprep.subr.bf16.mxu0 %v2911_v9  ;;  %3403 = vmatprep.subr.bf16.mxu1 %v2913_v7  ;;  %v2749_v9 = vld [vmem:[%s6533_s10 + $0x3b8] sm:$0xff]  ;;  %v2751_v7 = vld [vmem:[%s6533_s10 + $0x3c8] sm:$0xff] }
 0x551   : > { %v2980_v10 = vunpack.c.l.s8.bf16 %v2749_v9  ;;  %v2982_v11 = vunpack.c.l.s8.bf16 %v2751_v7  ;;  %v3013_v17 = vunpack.c.h.s8.bf16 %v2749_v9  ;;  %v3015_v18 = vunpack.c.h.s8.bf16 %v2751_v7 }
 0x553   : > { %3363 = vmatpush1.bf16.msra.mxu0 %v2910_v12  ;;  %3404 = vmatpush1.bf16.msra.mxu1 %v2912_v13  ;;  %v3014_v12 = vunpack.c.h.s8.bf16 %v2750_v2  ;;  %v3016_v13 = vunpack.c.h.s8.bf16 %v2752_v55 }
 0x554   : > { %3364 = vmatprep.subr.bf16.mxu0 %v2944_v15  ;;  %3405 = vmatprep.subr.bf16.mxu1 %v2946_v16  ;;  %v2655_v15 = vld [vmem:[%s6533_s10 + $0xc8] sm:$0xff]  ;;  %v2657_v16 = vld [vmem:[%s6533_s10 + $0xd8] sm:$0xff] }
 0x557   : > { %3365 = vmatpush1.bf16.msra.mxu0 %v2943_v19  ;;  %3406 = vmatpush1.bf16.msra.mxu1 %v2945_v20  ;;  %v2787_v19 = vunpack.c.l.s8.bf16 %v2655_v15  ;;  %v2789_v20 = vunpack.c.l.s8.bf16 %v2657_v16 }
 0x558   : > { %3366 = vmatprep.subr.bf16.mxu0 %v2977_v21  ;;  %3407 = vmatprep.subr.bf16.mxu1 %v2979_v6  ;;  %v2654_v21 = vld [vmem:[%s6533_s10 + $0xc0] sm:$0xff]  ;;  %v2656_v6 = vld [vmem:[%s6533_s10 + $0xd0] sm:$0xff] }
 0x559   : > { %v2786_v24 = vunpack.c.l.s8.bf16 %v2654_v21  ;;  %v2788_v25 = vunpack.c.l.s8.bf16 %v2656_v6  ;;  %v2819_v28 = vunpack.c.h.s8.bf16 %v2654_v21  ;;  %v2821_v29 = vunpack.c.h.s8.bf16 %v2656_v6 }
 0x55a   : > { %v3732_v21 = vlaneseq }
 0x55b   : > { %3367 = vmatpush1.bf16.msra.mxu0 %v2976_v23  ;;  %3408 = vmatpush1.bf16.msra.mxu1 %v2978_v26  ;;  %v2820_v23 = vunpack.c.h.s8.bf16 %v2655_v15  ;;  %v2822_v26 = vunpack.c.h.s8.bf16 %v2657_v16 }
 0x55c   : > { %3368 = vmatprep.subr.bf16.mxu0 %v3010_v14  ;;  %3409 = vmatprep.subr.bf16.mxu1 %v3012_v27  ;;  %v2688_v14 = vld [vmem:[%s6533_s10 + $0x1d0] sm:$0xff]  ;;  %v2690_v27 = vld [vmem:[%s6533_s10 + $0x1e0] sm:$0xff]  ;;  %vm4392_vm2 = vcmp.lt.s32.totalorder %v3732_v21, 128 }
 0x55f   : > { %3369 = vmatpush1.bf16.msra.mxu0 %v3009_v32  ;;  %3410 = vmatpush1.bf16.msra.mxu1 %v3011_v33  ;;  %v2853_v32 = vunpack.c.l.s8.bf16 %v2688_v14  ;;  %v2855_v33 = vunpack.c.l.s8.bf16 %v2690_v27 }
 0x560   : > { %3436 = vmatprep.subr.bf16.mxu0 %v2783_v34  ;;  %3477 = vmatprep.subr.bf16.mxu1 %v2785_v22  ;;  %v2687_v34 = vld [vmem:[%s6533_s10 + $0x1c8] sm:$0xff]  ;;  %v2689_v22 = vld [vmem:[%s6533_s10 + $0x1d8] sm:$0xff] }
 0x561   : > { %v2852_v35 = vunpack.c.l.s8.bf16 %v2687_v34  ;;  %v2854_v36 = vunpack.c.l.s8.bf16 %v2689_v22  ;;  %v2885_v43 = vunpack.c.h.s8.bf16 %v2687_v34  ;;  %v2887_v30 = vunpack.c.h.s8.bf16 %v2689_v22  ;;  %v2726_v34 = vld [vmem:[%s6533_s10 + $0x300] sm:$0xff] }
 0x562   : > { %3387 = vmatmul.mubr.bf16.vlgmr.msra.gmra.mrb[16].mxu0 %v6805_v31  ;;  %3428 = vmatmul.mubr.bf16.vlgmr.msra.gmra.mrb[16].mxu1 %v6805_v31 }
 0x563   : > { %3437 = vmatpush1.bf16.msra.mxu0 %v2782_v38  ;;  %3478 = vmatpush1.bf16.msra.mxu1 %v2784_v41  ;;  %v2886_v38 = vunpack.c.h.s8.bf16 %v2688_v14  ;;  %v2888_v41 = vunpack.c.h.s8.bf16 %v2690_v27  ;;  %v2727_v14 = vld [vmem:[%s6533_s10 + $0x308] sm:$0xff]  ;;  %v6938_v27 = vshrl.u32 %v3732_v21, 7 }
 0x564   : > { %3438 = vmatprep.subr.bf16.mxu0 %v2816_v42  ;;  %3479 = vmatprep.subr.bf16.mxu1 %v2818_v40  ;;  %v2721_v42 = vld [vmem:[%s6533_s10 + $0x2d8] sm:$0xff]  ;;  %v2723_v40 = vld [vmem:[%s6533_s10 + $0x2e8] sm:$0xff] }
 0x565   : > { %3468 = vmatprep.mubr.bf16.mxu0 %v6044_v48  ;;  %3509 = vmatprep.mubr.bf16.mxu1 %v6044_v48  ;;  %v6943_v22 = vsub.s32 0, %v6938_v27 }
 0x567   : > { %3439 = vmatpush1.bf16.msra.mxu0 %v2815_v44  ;;  %3480 = vmatpush1.bf16.msra.mxu1 %v2817_v45  ;;  %v2919_v44 = vunpack.c.l.s8.bf16 %v2721_v42  ;;  %v2921_v45 = vunpack.c.l.s8.bf16 %v2723_v40 }
 0x568   : > { %3440 = vmatprep.subr.bf16.mxu0 %v2849_v46  ;;  %3481 = vmatprep.subr.bf16.mxu1 %v2851_v49  ;;  %v2720_v46 = vld [vmem:[%s6533_s10 + $0x2d0] sm:$0xff]  ;;  %v2722_v49 = vld [vmem:[%s6533_s10 + $0x2e0] sm:$0xff] }
 0x569   : > { %v2918_v50 = vunpack.c.l.s8.bf16 %v2720_v46  ;;  %v2920_v51 = vunpack.c.l.s8.bf16 %v2722_v49  ;;  %v2951_v56 = vunpack.c.h.s8.bf16 %v2720_v46  ;;  %v2953_v57 = vunpack.c.h.s8.bf16 %v2722_v49  ;;  %v2758_v49 = vld [vmem:[%s6533_s10 + $0x400] sm:$0xff] }
 0x56b   : > { %3441 = vmatpush1.bf16.msra.mxu0 %v2848_v39  ;;  %3482 = vmatpush1.bf16.msra.mxu1 %v2850_v52  ;;  %v2952_v39 = vunpack.c.h.s8.bf16 %v2721_v42  ;;  %v2954_v52 = vunpack.c.h.s8.bf16 %v2723_v40  ;;  %v6952_v42 = vsub.s32 1, %v6938_v27  ;;  %v6955_v40 = vsub.s32 3, %v6938_v27 }
 0x56c   : > { %3442 = vmatprep.subr.bf16.mxu0 %v2882_v53  ;;  %3483 = vmatprep.subr.bf16.mxu1 %v2884_v54  ;;  %v2754_v53 = vld [vmem:[%s6533_s10 + $0x3e0] sm:$0xff]  ;;  %v2756_v54 = vld [vmem:[%s6533_s10 + $0x3f0] sm:$0xff] }
 0x56f   : > { %3443 = vmatpush1.bf16.msra.mxu0 %v2881_v58  ;;  %3484 = vmatpush1.bf16.msra.mxu1 %v2883_v59  ;;  %v2985_v58 = vunpack.c.l.s8.bf16 %v2754_v53  ;;  %v2987_v59 = vunpack.c.l.s8.bf16 %v2756_v54 }
 0x570   : > { %3444 = vmatprep.subr.bf16.mxu0 %v2915_v47  ;;  %3485 = vmatprep.subr.bf16.mxu1 %v2917_v60  ;;  %v2753_v47 = vld [vmem:[%s6533_s10 + $0x3d8] sm:$0xff]  ;;  %v2755_v60 = vld [vmem:[%s6533_s10 + $0x3e8] sm:$0xff] }
 0x571   : > { %v2984_v61 = vunpack.c.l.s8.bf16 %v2753_v47  ;;  %v2986_v37 = vunpack.c.l.s8.bf16 %v2755_v60  ;;  %v3017_v2 = vunpack.c.h.s8.bf16 %v2753_v47  ;;  %v3019_v55 = vunpack.c.h.s8.bf16 %v2755_v60  ;;  %v2757_v60 = vld [vmem:[%s6533_s10 + $0x3f8] sm:$0xff] }
 0x573   : > { %3445 = vmatpush1.bf16.msra.mxu0 %v2914_v62  ;;  %3486 = vmatpush1.bf16.msra.mxu1 %v2916_v63  ;;  %v3018_v62 = vunpack.c.h.s8.bf16 %v2754_v53  ;;  %v3020_v63 = vunpack.c.h.s8.bf16 %v2756_v54 }
 0x574   : > { %3446 = vmatprep.subr.bf16.mxu0 %v2948_v0  ;;  %3487 = vmatprep.subr.bf16.mxu1 %v2950_v1  ;;  %v2659_v0 = vld [vmem:[%s6533_s10 + $0xe8] sm:$0xff]  ;;  %v2661_v1 = vld [vmem:[%s6533_s10 + $0xf8] sm:$0xff] }
 0x577   : > { %3447 = vmatpush1.bf16.msra.mxu0 %v2947_v3  ;;  %3488 = vmatpush1.bf16.msra.mxu1 %v2949_v4  ;;  %v2791_v3 = vunpack.c.l.s8.bf16 %v2659_v0  ;;  %v2793_v4 = vunpack.c.l.s8.bf16 %v2661_v1 }
 0x578   : > { %3448 = vmatprep.subr.bf16.mxu0 %v2981_v5  ;;  %3489 = vmatprep.subr.bf16.mxu1 %v2983_v8  ;;  %v2658_v5 = vld [vmem:[%s6533_s10 + $0xe0] sm:$0xff]  ;;  %v2660_v8 = vld [vmem:[%s6533_s10 + $0xf0] sm:$0xff] }
 0x579   : > { %v2790_v9 = vunpack.c.l.s8.bf16 %v2658_v5  ;;  %v2792_v7 = vunpack.c.l.s8.bf16 %v2660_v8  ;;  %v2823_v15 = vunpack.c.h.s8.bf16 %v2658_v5  ;;  %v2825_v16 = vunpack.c.h.s8.bf16 %v2660_v8 }
 0x57b   : > { %3449 = vmatpush1.bf16.msra.mxu0 %v2980_v10  ;;  %3490 = vmatpush1.bf16.msra.mxu1 %v2982_v11  ;;  %v2824_v10 = vunpack.c.h.s8.bf16 %v2659_v0  ;;  %v2826_v11 = vunpack.c.h.s8.bf16 %v2661_v1 }
 0x57c   : > { %3450 = vmatprep.subr.bf16.mxu0 %v3014_v12  ;;  %3491 = vmatprep.subr.bf16.mxu1 %v3016_v13  ;;  %v2692_v12 = vld [vmem:[%s6533_s10 + $0x1f0] sm:$0xff]  ;;  %v2694_v13 = vld [vmem:[%s6533_s10 + $0x200] sm:$0xff] }
 0x57f   : > { %3451 = vmatpush1.bf16.msra.mxu0 %v3013_v17  ;;  %3492 = vmatpush1.bf16.msra.mxu1 %v3015_v18  ;;  %v2857_v17 = vunpack.c.l.s8.bf16 %v2692_v12  ;;  %v2859_v18 = vunpack.c.l.s8.bf16 %v2694_v13 }
 0x580   : > { %3518 = vmatprep.subr.bf16.mxu0 %v2787_v19  ;;  %3559 = vmatprep.subr.bf16.mxu1 %v2789_v20  ;;  %v2691_v19 = vld [vmem:[%s6533_s10 + $0x1e8] sm:$0xff]  ;;  %v2693_v20 = vld [vmem:[%s6533_s10 + $0x1f8] sm:$0xff] }
 0x581   : > { %v2856_v6 = vunpack.c.l.s8.bf16 %v2691_v19 }
 0x582   : > { %3469 = vmatmul.mubr.bf16.vlgmr.msra.gmra.mrb[20].mxu0 %v6805_v31  ;;  %3510 = vmatmul.mubr.bf16.vlgmr.msra.gmra.mrb[20].mxu1 %v6805_v31 }
 0x583   : > { %3519 = vmatpush1.bf16.msra.mxu0 %v2786_v24  ;;  %3560 = vmatpush1.bf16.msra.mxu1 %v2788_v25  ;;  %v2858_v24 = vunpack.c.l.s8.bf16 %v2693_v20  ;;  %v2890_v25 = vunpack.c.h.s8.bf16 %v2692_v12 }
 0x584   : > { %3520 = vmatprep.subr.bf16.mxu0 %v2820_v23  ;;  %3561 = vmatprep.subr.bf16.mxu1 %v2822_v26  ;;  %v2892_v23 = vunpack.c.h.s8.bf16 %v2694_v13  ;;  %v2725_v26 = vld [vmem:[%s6533_s10 + $0x2f8] sm:$0xff] }
 0x585   : > { %3550 = vmatprep.mubr.bf16.mxu0 %v6044_v48  ;;  %3591 = vmatprep.mubr.bf16.mxu1 %v6044_v48 }
 0x587   : > { %3521 = vmatpush1.bf16.msra.mxu0 %v2819_v28  ;;  %3562 = vmatpush1.bf16.msra.mxu1 %v2821_v29  ;;  %v2891_v28 = vunpack.c.h.s8.bf16 %v2693_v20  ;;  %v2923_v29 = vunpack.c.l.s8.bf16 %v2725_v26 }
 0x588   : > { %3522 = vmatprep.subr.bf16.mxu0 %v2853_v32  ;;  %3563 = vmatprep.subr.bf16.mxu1 %v2855_v33  ;;  %v2925_v32 = vunpack.c.l.s8.bf16 %v2727_v14  ;;  %v2724_v33 = vld [vmem:[%s6533_s10 + $0x2f0] sm:$0xff] }
 0x589   : > { %v2955_v54 = vunpack.c.h.s8.bf16 %v2724_v33 }
 0x58b   : > { %3523 = vmatpush1.bf16.msra.mxu0 %v2852_v35  ;;  %3564 = vmatpush1.bf16.msra.mxu1 %v2854_v36  ;;  %v6946_v35 = vsub.s32 2, %v6938_v27  ;;  %v2922_v36 = vunpack.c.l.s8.bf16 %v2724_v33  ;;  %v6046_v33 = vmov 0.0  }
 0x58c   : > { %3524 = vmatprep.subr.bf16.mxu0 %v2886_v38  ;;  %3565 = vmatprep.subr.bf16.mxu1 %v2888_v41  ;;  %v2924_v38 = vunpack.c.l.s8.bf16 %v2726_v34  ;;  %v6949_v41 = vld [vmem:[%s6539_s16] sm:$0xff] }
 0x58d   : > { %v3747_v53 = vrot.slane %v6949_v41, %v6955_v40 }
 0x58f   : > { %3525 = vmatpush1.bf16.msra.mxu0 %v2885_v43  ;;  %3566 = vmatpush1.bf16.msra.mxu1 %v2887_v30  ;;  %v2956_v43 = vunpack.c.h.s8.bf16 %v2725_v26  ;;  %v2958_v30 = vunpack.c.h.s8.bf16 %v2727_v14  ;;  %v2662_v14 = vld [vmem:[%s6533_s10 + $0x100] sm:$0xff] }
 0x590   : > { %3526 = vmatprep.subr.bf16.mxu0 %v2919_v44  ;;  %3567 = vmatprep.subr.bf16.mxu1 %v2921_v45  ;;  %v6958_v44 = vld [vmem:[%s6541_s12] sm:$0xff]  ;;  %v6045_v45 = vmov 1966171168  }
 0x591   : > { %v4176_v46 = vunpack.c.l.s4 %v6045_v45  ;;  %v3955_v1 = vrot.slane %v6958_v44, %v6955_v40  ;;  %v6997_v45 = vsub.s32 4, %v6938_v27 }
 0x593   : > { %3527 = vmatpush1.bf16.msra.mxu0 %v2918_v50  ;;  %3568 = vmatpush1.bf16.msra.mxu1 %v2920_v51  ;;  %v2760_v50 = vld [vmem:[%s6533_s10 + $0x410] sm:$0xff]  ;;  %v3735_v51 = vrot.slane %v6949_v41, %v6943_v22  ;;  %v4177_v0 = vunpack.c.0.s8 %v4176_v46  ;;  %v7000_v46 = vsub.s32 6, %v6938_v27 }
 0x594   : > { %3528 = vmatprep.subr.bf16.mxu0 %v2952_v39  ;;  %3569 = vmatprep.subr.bf16.mxu1 %v2954_v52  ;;  %v3743_v39 = vrot.slane %v6949_v41, %v6946_v35  ;;  %v3739_v52 = vrot.slane %v6949_v41, %v6952_v42  ;;  %v2991_v47 = vunpack.c.l.s8.bf16 %v2760_v50 }
 0x595   : > { %v6981_v20 = vsub.s32 %v4177_v0, %v6938_v27 }
 0x597   : > { %3529 = vmatpush1.bf16.msra.mxu0 %v2951_v56  ;;  %3570 = vmatpush1.bf16.msra.mxu1 %v2953_v57  ;;  %v2957_v56 = vunpack.c.h.s8.bf16 %v2726_v34  ;;  %v3943_v57 = vrot.slane %v6958_v44, %v6943_v22  ;;  %v2827_v34 = vunpack.c.h.s8.bf16 %v2662_v14 }
 0x598   : > { %3530 = vmatprep.subr.bf16.mxu0 %v2985_v58  ;;  %3571 = vmatprep.subr.bf16.mxu1 %v2987_v59  ;;  %v3951_v58 = vrot.slane %v6958_v44, %v6946_v35  ;;  %v2989_v59 = vunpack.c.l.s8.bf16 %v2758_v49 }
 0x59b   : > { %3531 = vmatpush1.bf16.msra.mxu0 %v2984_v61  ;;  %3572 = vmatpush1.bf16.msra.mxu1 %v2986_v37  ;;  %v2759_v61 = vld [vmem:[%s6533_s10 + $0x408] sm:$0xff] }
 0x59c   : > { %3532 = vmatprep.subr.bf16.mxu0 %v3018_v62  ;;  %3573 = vmatprep.subr.bf16.mxu1 %v3020_v63  ;;  %v3947_v63 = vrot.slane %v6958_v44, %v6952_v42  ;;  %v3023_v26 = vunpack.c.h.s8.bf16 %v2759_v61 }
 0x59f   : > { %3533 = vmatpush1.bf16.msra.mxu0 %v3017_v2  ;;  %3574 = vmatpush1.bf16.msra.mxu1 %v3019_v55 }
 0x5a0   : > { %3600 = vmatprep.subr.bf16.mxu0 %v2791_v3  ;;  %3641 = vmatprep.subr.bf16.mxu1 %v2793_v4 }
 0x5a2   : > { %3551 = vmatmul.mubr.bf16.vlgmr.msra.gmra.mrb[24].mxu0 %v6805_v31  ;;  %3592 = vmatmul.mubr.bf16.vlgmr.msra.gmra.mrb[24].mxu1 %v6805_v31 }
 0x5a3   : > { %3601 = vmatpush1.bf16.msra.mxu0 %v2790_v9  ;;  %3642 = vmatpush1.bf16.msra.mxu1 %v2792_v7  ;;  %v2988_v7 = vunpack.c.l.s8.bf16 %v2757_v60 }
 0x5a4   : > { %3602 = vmatprep.subr.bf16.mxu0 %v2824_v10  ;;  %3643 = vmatprep.subr.bf16.mxu1 %v2826_v11  ;;  %v2990_v10 = vunpack.c.l.s8.bf16 %v2759_v61 }
 0x5a5   : > { %3632 = vmatprep.mubr.bf16.mxu0 %v6044_v48  ;;  %3673 = vmatprep.mubr.bf16.mxu1 %v6044_v48  ;;  %v2889_v48 = vunpack.c.h.s8.bf16 %v2691_v19 }
 0x5a7   : > { %3603 = vmatpush1.bf16.msra.mxu0 %v2823_v15  ;;  %3644 = vmatpush1.bf16.msra.mxu1 %v2825_v16  ;;  %v3022_v16 = vunpack.c.h.s8.bf16 %v2758_v49 }
 0x5a8   : > { %3604 = vmatprep.subr.bf16.mxu0 %v2857_v17  ;;  %3645 = vmatprep.subr.bf16.mxu1 %v2859_v18  ;;  %v3024_v17 = vunpack.c.h.s8.bf16 %v2760_v50  ;;  %v7003_v50 = vsub.s32 5, %v6938_v27 }
 0x5ab   : > { %3605 = vmatpush1.bf16.msra.mxu0 %v2856_v6  ;;  %3646 = vmatpush1.bf16.msra.mxu1 %v2858_v24 }
 0x5ac   : > { %3606 = vmatprep.subr.bf16.mxu0 %v2890_v25  ;;  %3647 = vmatprep.subr.bf16.mxu1 %v2892_v23  ;;  %v3021_v23 = vunpack.c.h.s8.bf16 %v2757_v60  ;;  %v3963_v60 = vrot.slane %v6958_v44, %v7003_v50 }
 0x5af   : > { %3607 = vmatpush1.bf16.msra.mxu0 %v2889_v48  ;;  %3648 = vmatpush1.bf16.msra.mxu1 %v2891_v28 }
 0x5b0   : > { %3608 = vmatprep.subr.bf16.mxu0 %v2923_v29  ;;  %3649 = vmatprep.subr.bf16.mxu1 %v2925_v32  ;;  %v2794_v32 = vunpack.c.l.s8.bf16 %v2662_v14 }
 0x5b3   : > { %3609 = vmatpush1.bf16.msra.mxu0 %v2922_v36  ;;  %3650 = vmatpush1.bf16.msra.mxu1 %v2924_v38  ;;  %v2695_v36 = vld [vmem:[%s6533_s10 + $0x208] sm:$0xff] }
 0x5b4   : > { %3610 = vmatprep.subr.bf16.mxu0 %v2956_v43  ;;  %3651 = vmatprep.subr.bf16.mxu1 %v2958_v30  ;;  %v2860_v38 = vunpack.c.l.s8.bf16 %v2695_v36  ;;  %v2893_v43 = vunpack.c.h.s8.bf16 %v2695_v36  ;;  %v2728_v30 = vld [vmem:[%s6533_s10 + $0x310] sm:$0xff] }
 0x5b5   : > { %v3060_v37 = vpop.f32.mrb[0].mxu0  ;;  %v3101_v62 = vpop.f32.mrb[0].mxu1  ;;  %v2926_v49 = vunpack.c.l.s8.bf16 %v2728_v30 }
 0x5b6   : > { %v3897_v2 = vmul.f32 %v3735_v51, %v3060_v37  ;;  %v3899_v55 = vmul.f32 %v3743_v39, %v3101_v62  ;;  %v3062_v3 = vpop.f32.mrb[1].mxu0  ;;  %v3103_v4 = vpop.f32.mrb[1].mxu1  ;;  %v7006_v51 = vsub.s32 7, %v6938_v27  ;;  %v3751_v39 = vrot.slane %v6949_v41, %v6997_v45 }
 0x5b7   : > { %v3898_v5 = vmul.f32 %v3739_v52, %v3062_v3  ;;  %v3900_v8 = vmul.f32 %v3747_v53, %v3103_v4  ;;  %v3064_v9 = vpop.f32.mrb[2].mxu0  ;;  %3611 = vmatpush1.bf16.msra.mxu0 %v2955_v54  ;;  %3652 = vmatpush1.bf16.msra.mxu1 %v2957_v56  ;;  %v3105_v11 = vpop.f32.mrb[2].mxu1  ;;  %v3759_v52 = vrot.slane %v6949_v41, %v7000_v46  ;;  %v2959_v56 = vunpack.c.h.s8.bf16 %v2728_v30 }
 0x5b8   : > { %v4105_v12 = vadd.f32 %v3943_v57, %v3897_v2  ;;  %v4107_v13 = vadd.f32 %v3951_v58, %v3899_v55  ;;  %v3065_v15 = vpop.f32.mrb[3].mxu0  ;;  %3612 = vmatprep.subr.bf16.mxu0 %v2989_v59  ;;  %3653 = vmatprep.subr.bf16.mxu1 %v2991_v47  ;;  %v3106_v18 = vpop.f32.mrb[3].mxu1  ;;  %v3755_v53 = vrot.slane %v6949_v41, %v7003_v50  ;;  %v2761_v58 = vld [vmem:[%s6533_s10 + $0x418] sm:$0xff] }
 0x5b9   : > { %v4106_v19 = vadd.f32 %v3947_v63, %v3898_v5  ;;  %v4108_v6 = vadd.f32 %v3955_v1, %v3900_v8  ;;  %v3763_v54 = vrot.slane %v6949_v41, %v7006_v51  ;;  %v3959_v57 = vrot.slane %v6958_v44, %v6997_v45 }
 0x5ba   : > { %v3967_v27 = vrot.slane %v6958_v44, %v7000_v46  ;;  %v3971_v61 = vrot.slane %v6958_v44, %v7006_v51  ;;  %v2992_v55 = vunpack.c.l.s8.bf16 %v2761_v58 }
 0x5bb   : > { %v4171_v24 = vcombine.low %v4105_v12, %v4106_v19  ;;  %v4172_v25 = vcombine.low %v4107_v13, %v4108_v6  ;;  %3613 = vmatpush1.bf16.msra.mxu0 %v2988_v7  ;;  %3654 = vmatpush1.bf16.msra.mxu1 %v2990_v10  ;;  %v3025_v12 = vunpack.c.h.s8.bf16 %v2761_v58  ;;  %v3723_v6 = vld [vmem:[%s6539_s16 + $0x8] sm:$0xff] }
 0x5bc   : > { %3614 = vmatprep.subr.bf16.mxu0 %v3022_v16  ;;  %3655 = vmatprep.subr.bf16.mxu1 %v3024_v17  ;;  %v3779_v14 = vrot.slane %v3723_v6, %v6955_v40 }
 0x5bd   : > { %v6985_v48 = vrot.slane %v4171_v24, %v6981_v20  ;;  %v6988_v28 = vrot.slane %v4172_v25, %v6981_v20  ;;  %v3931_v24 = vld [vmem:[%s6541_s12 + $0x8] sm:$0xff]  ;;  %v3767_v25 = vrot.slane %v3723_v6, %v6943_v22 }
 0x5bf   : > { %v4203_v29 = vcombine.low %v6985_v48, %v6988_v28  ;;  %3615 = vmatpush1.bf16.msra.mxu0 %v3021_v23  ;;  %3656 = vmatpush1.bf16.msra.mxu1 %v3023_v26  ;;  %v3775_v23 = vrot.slane %v3723_v6, %v6946_v35  ;;  %v3771_v26 = vrot.slane %v3723_v6, %v6952_v42 }
 0x5c0   : > { %5086 = vmatprep.subr.bf16.mxu0 %v6046_v33  ;;  %v3983_v48 = vrot.slane %v3931_v24, %v6946_v35 }
 0x5c1   : > { %v4211_v17 = vrot.slane %v4203_v29, %v6981_v20 }
 0x5c2   : > { %3633 = vmatmul.mubr.bf16.vlgmr.msra.gmra.mrb[28].mxu0 %v6805_v31  ;;  %3674 = vmatmul.mubr.bf16.vlgmr.msra.gmra.mrb[28].mxu1 %v6805_v31 }
 0x5c3   : > { %5087 = vmatpush3.bf16.msra.mxu0 %v2794_v32  ;;  %5102 = vmatprep.mubr.msk.bf16.mxu0 %vm6047_vm1, %v6046_v33  ;;  %v3975_v32 = vrot.slane %v3931_v24, %v6943_v22 }
 0x5c4   : > { %5088 = vmatprep.subr.bf16.mxu0 %v6046_v33 }
 0x5c7   : > { %5089 = vmatpush3.bf16.msra.mxu0 %v2827_v34 }
 0x5c8   : > { %5090 = vmatprep.subr.bf16.mxu0 %v6046_v33 }
 0x5cb   : > { %5091 = vmatpush3.bf16.msra.mxu0 %v2860_v38 }
 0x5cc   : > { %5092 = vmatprep.subr.bf16.mxu0 %v6046_v33 }
 0x5cf   : > { %5093 = vmatpush3.bf16.msra.mxu0 %v2893_v43 }
 0x5d0   : > { %5094 = vmatprep.subr.bf16.mxu0 %v6046_v33 }
 0x5d3   : > { %5095 = vmatpush3.bf16.msra.mxu0 %v2926_v49 }
 0x5d4   : > { %5096 = vmatprep.subr.bf16.mxu0 %v6046_v33 }
 0x5d5   : > { %v3142_v59 = vpop.f32.mrb[4].mxu0  ;;  %v3183_v47 = vpop.f32.mrb[4].mxu1 }
 0x5d6   : > { %v3901_v37 = vmul.f32 %v3751_v39, %v3142_v59  ;;  %v3903_v62 = vmul.f32 %v3759_v52, %v3183_v47  ;;  %v3144_v41 = vpop.f32.mrb[5].mxu0  ;;  %v3185_v63 = vpop.f32.mrb[5].mxu1 }
 0x5d7   : > { %v3902_v0 = vmul.f32 %v3755_v53, %v3144_v41  ;;  %v3904_v1 = vmul.f32 %v3763_v54, %v3185_v63  ;;  %v3146_v2 = vpop.f32.mrb[6].mxu0  ;;  %5097 = vmatpush3.bf16.msra.mxu0 %v2959_v56  ;;  %v3187_v3 = vpop.f32.mrb[6].mxu1  ;;  %v3791_v41 = vrot.slane %v3723_v6, %v7000_v46  ;;  %v3787_v63 = vrot.slane %v3723_v6, %v7003_v50 }
 0x5d8   : > { %v4109_v4 = vadd.f32 %v3959_v57, %v3901_v37  ;;  %v4111_v5 = vadd.f32 %v3967_v27, %v3903_v62  ;;  %v3147_v8 = vpop.f32.mrb[7].mxu0  ;;  %5098 = vmatprep.subr.bf16.mxu0 %v6046_v33  ;;  %v3188_v9 = vpop.f32.mrb[7].mxu1  ;;  %v3783_v62 = vrot.slane %v3723_v6, %v6997_v45  ;;  %v3999_v2 = vrot.slane %v3931_v24, %v7000_v46 }
 0x5d9   : > { %v4110_v7 = vadd.f32 %v3963_v60, %v3902_v0  ;;  %v4112_v10 = vadd.f32 %v3971_v61, %v3904_v1  ;;  %v3795_v0 = vrot.slane %v3723_v6, %v7006_v51  ;;  %v3991_v1 = vrot.slane %v3931_v24, %v6997_v45 }
 0x5db   : > { %v4173_v44 = vcombine.low %v4109_v4, %v4110_v7  ;;  %v4174_v11 = vcombine.low %v4111_v5, %v4112_v10  ;;  %5099 = vmatpush3.bf16.msra.mxu0 %v2992_v55  ;;  %v3995_v4 = vrot.slane %v3931_v24, %v7003_v50  ;;  %v4003_v5 = vrot.slane %v3931_v24, %v7006_v51 }
 0x5dc   : > { %5100 = vmatprep.subr.bf16.mxu0 %v6046_v33  ;;  %v3987_v33 = vrot.slane %v3931_v24, %v6955_v40 }
 0x5dd   : > { %v4195_v13 = vrot.slane %v4173_v44, %v6981_v20  ;;  %v4202_v15 = vrot.slane %v4174_v11, %v6981_v20 }
 0x5df   : > { %v4204_v16 = vcombine.low %v4195_v13, %v4202_v15  ;;  %5101 = vmatpush3.bf16.msra.mxu0 %v3025_v12 }
 0x5e1   : > { %v4218_v18 = vrot.slane %v4204_v16, %v6981_v20 }
 0x5e2   : > { %5103 = vmatmul.mubr.bf16.vlgmr.msra.gmra.mrb[32].mxu0 %v6805_v31  ;;  %v3979_v31 = vrot.slane %v3931_v24, %v6952_v42 }
 0x5e3   : > { %v4219_v19 = vcombine.low %v4211_v17, %v4218_v18 }
 0x5e5   : > { %4386 = vst [vmem:[%s6558_s20] sm:$0xff] %v4219_v19 }
 0x5f5   : > { %v3224_v28 = vpop.f32.mrb[8].mxu0  ;;  %v3265_v29 = vpop.f32.mrb[8].mxu1 }
 0x5f6   : > { %v3905_v34 = vmul.f32 %v3767_v25, %v3224_v28  ;;  %v3907_v36 = vmul.f32 %v3775_v23, %v3265_v29  ;;  %v3226_v38 = vpop.f32.mrb[9].mxu0  ;;  %v3267_v43 = vpop.f32.mrb[9].mxu1  ;;  %v3724_v29 = vld [vmem:[%s6539_s16 + $0x10] sm:$0xff] }
 0x5f7   : > { %v3906_v30 = vmul.f32 %v3771_v26, %v3226_v38  ;;  %v3908_v49 = vmul.f32 %v3779_v14, %v3267_v43  ;;  %v3228_v39 = vpop.f32.mrb[10].mxu0  ;;  %v3269_v52 = vpop.f32.mrb[10].mxu1  ;;  %v3811_v38 = vrot.slane %v3724_v29, %v6955_v40 }
 0x5f8   : > { %v4113_v53 = vadd.f32 %v3975_v32, %v3905_v34  ;;  %v4115_v54 = vadd.f32 %v3983_v48, %v3907_v36  ;;  %v3229_v56 = vpop.f32.mrb[11].mxu0  ;;  %v3270_v57 = vpop.f32.mrb[11].mxu1  ;;  %v3807_v34 = vrot.slane %v3724_v29, %v6946_v35  ;;  %v3803_v36 = vrot.slane %v3724_v29, %v6952_v42 }
 0x5f9   : > { %v4114_v27 = vadd.f32 %v3979_v31, %v3906_v30  ;;  %v4116_v58 = vadd.f32 %v3987_v33, %v3908_v49  ;;  %v3932_v31 = vld [vmem:[%s6541_s12 + $0x10] sm:$0xff]  ;;  %v3799_v33 = vrot.slane %v3724_v29, %v6943_v22 }
 0x5fa   : > { %v4007_v43 = vrot.slane %v3932_v31, %v6943_v22  ;;  %v4015_v30 = vrot.slane %v3932_v31, %v6946_v35  ;;  %v4011_v52 = vrot.slane %v3932_v31, %v6952_v42 }
 0x5fb   : > { %v4220_v59 = vcombine.low %v4113_v53, %v4114_v27  ;;  %v4221_v47 = vcombine.low %v4115_v54, %v4116_v58  ;;  %v4019_v53 = vrot.slane %v3932_v31, %v6955_v40 }
 0x5fd   : > { %v4230_v60 = vrot.slane %v4220_v59, %v6981_v20  ;;  %v4237_v61 = vrot.slane %v4221_v47, %v6981_v20 }
 0x5ff   : > { %v4252_v37 = vcombine.low %v4230_v60, %v4237_v61 }
 0x601   : > { %v4260_v32 = vrot.slane %v4252_v37, %v6981_v20 }
 0x615   : > { %v3306_v55 = vpop.f32.mrb[12].mxu0  ;;  %v3347_v3 = vpop.f32.mrb[12].mxu1 }
 0x616   : > { %v3909_v8 = vmul.f32 %v3783_v62, %v3306_v55  ;;  %v3911_v9 = vmul.f32 %v3791_v41, %v3347_v3  ;;  %v3308_v7 = vpop.f32.mrb[13].mxu0  ;;  %v3349_v10 = vpop.f32.mrb[13].mxu1 }
 0x617   : > { %v3910_v44 = vmul.f32 %v3787_v63, %v3308_v7  ;;  %v3912_v11 = vmul.f32 %v3795_v0, %v3349_v10  ;;  %v3310_v12 = vpop.f32.mrb[14].mxu0  ;;  %v3351_v13 = vpop.f32.mrb[14].mxu1  ;;  %v3827_v7 = vrot.slane %v3724_v29, %v7006_v51  ;;  %v4023_v10 = vrot.slane %v3932_v31, %v6997_v45 }
 0x618   : > { %v4117_v15 = vadd.f32 %v3991_v1, %v3909_v8  ;;  %v4119_v16 = vadd.f32 %v3999_v2, %v3911_v9  ;;  %v3311_v17 = vpop.f32.mrb[15].mxu0  ;;  %v3352_v18 = vpop.f32.mrb[15].mxu1  ;;  %v3823_v8 = vrot.slane %v3724_v29, %v7000_v46  ;;  %v3819_v9 = vrot.slane %v3724_v29, %v7003_v50 }
 0x619   : > { %v4118_v19 = vadd.f32 %v3995_v4, %v3910_v44  ;;  %v4120_v6 = vadd.f32 %v4003_v5, %v3912_v11  ;;  %v3815_v5 = vrot.slane %v3724_v29, %v6997_v45  ;;  %v4031_v44 = vrot.slane %v3932_v31, %v7000_v46 }
 0x61a   : > { %v4027_v13 = vrot.slane %v3932_v31, %v7003_v50 }
 0x61b   : > { %v4222_v25 = vcombine.low %v4117_v15, %v4118_v19  ;;  %v4223_v23 = vcombine.low %v4119_v16, %v4120_v6  ;;  %v4035_v15 = vrot.slane %v3932_v31, %v7006_v51 }
 0x61d   : > { %v4244_v24 = vrot.slane %v4222_v25, %v6981_v20  ;;  %v4251_v26 = vrot.slane %v4223_v23, %v6981_v20 }
 0x61f   : > { %v4253_v14 = vcombine.low %v4244_v24, %v4251_v26 }
 0x621   : > { %v4267_v48 = vrot.slane %v4253_v14, %v6981_v20 }
 0x623   : > { %v4268_v28 = vcombine.low %v4260_v32, %v4267_v48 }
 0x625   : > { %4387 = vst [vmem:[%s6558_s20 + $0x8] sm:$0xff] %v4268_v28 }
 0x635   : > { %v3388_v49 = vpop.f32.mrb[16].mxu0  ;;  %v3429_v39 = vpop.f32.mrb[16].mxu1 }
 0x636   : > { %v3913_v54 = vmul.f32 %v3799_v33, %v3388_v49  ;;  %v3915_v56 = vmul.f32 %v3807_v34, %v3429_v39  ;;  %v3390_v57 = vpop.f32.mrb[17].mxu0  ;;  %v3431_v27 = vpop.f32.mrb[17].mxu1  ;;  %v3725_v39 = vld [vmem:[%s6539_s16 + $0x18] sm:$0xff] }
 0x637   : > { %v3914_v58 = vmul.f32 %v3803_v36, %v3390_v57  ;;  %v3916_v59 = vmul.f32 %v3811_v38, %v3431_v27  ;;  %v3392_v47 = vpop.f32.mrb[18].mxu0  ;;  %v3433_v60 = vpop.f32.mrb[18].mxu1  ;;  %v3843_v57 = vrot.slane %v3725_v39, %v6955_v40 }
 0x638   : > { %v4121_v61 = vadd.f32 %v4007_v43, %v3913_v54  ;;  %v4123_v37 = vadd.f32 %v4015_v30, %v3915_v56  ;;  %v3393_v62 = vpop.f32.mrb[19].mxu0  ;;  %v3434_v41 = vpop.f32.mrb[19].mxu1  ;;  %v3839_v54 = vrot.slane %v3725_v39, %v6946_v35  ;;  %v3835_v56 = vrot.slane %v3725_v39, %v6952_v42 }
 0x639   : > { %v4122_v63 = vadd.f32 %v4011_v52, %v3914_v58  ;;  %v4124_v0 = vadd.f32 %v4019_v53, %v3916_v59  ;;  %v3933_v52 = vld [vmem:[%s6541_s12 + $0x18] sm:$0xff]  ;;  %v3831_v53 = vrot.slane %v3725_v39, %v6943_v22 }
 0x63a   : > { %v4039_v27 = vrot.slane %v3933_v52, %v6943_v22  ;;  %v4047_v58 = vrot.slane %v3933_v52, %v6946_v35  ;;  %v4043_v60 = vrot.slane %v3933_v52, %v6952_v42 }
 0x63b   : > { %v4269_v1 = vcombine.low %v4121_v61, %v4122_v63  ;;  %v4270_v2 = vcombine.low %v4123_v37, %v4124_v0  ;;  %v4051_v61 = vrot.slane %v3933_v52, %v6955_v40 }
 0x63d   : > { %v4279_v55 = vrot.slane %v4269_v1, %v6981_v20  ;;  %v4286_v3 = vrot.slane %v4270_v2, %v6981_v20 }
 0x63f   : > { %v4301_v4 = vcombine.low %v4279_v55, %v4286_v3 }
 0x641   : > { %v4309_v43 = vrot.slane %v4301_v4, %v6981_v20 }
 0x655   : > { %v3470_v11 = vpop.f32.mrb[20].mxu0  ;;  %v3511_v12 = vpop.f32.mrb[20].mxu1 }
 0x656   : > { %v3917_v16 = vmul.f32 %v3815_v5, %v3470_v11  ;;  %v3919_v17 = vmul.f32 %v3823_v8, %v3511_v12  ;;  %v3472_v18 = vpop.f32.mrb[21].mxu0  ;;  %v3513_v19 = vpop.f32.mrb[21].mxu1  ;;  %v3855_v11 = vrot.slane %v3725_v39, %v7000_v46  ;;  %v3851_v12 = vrot.slane %v3725_v39, %v7003_v50 }
 0x657   : > { %v3918_v6 = vmul.f32 %v3819_v9, %v3472_v18  ;;  %v3920_v25 = vmul.f32 %v3827_v7, %v3513_v19  ;;  %v3474_v23 = vpop.f32.mrb[22].mxu0  ;;  %v3515_v24 = vpop.f32.mrb[22].mxu1  ;;  %v4059_v19 = vrot.slane %v3933_v52, %v7003_v50 }
 0x658   : > { %v4125_v26 = vadd.f32 %v4023_v10, %v3917_v16  ;;  %v4127_v14 = vadd.f32 %v4031_v44, %v3919_v17  ;;  %v3475_v32 = vpop.f32.mrb[23].mxu0  ;;  %v3516_v48 = vpop.f32.mrb[23].mxu1  ;;  %v3847_v44 = vrot.slane %v3725_v39, %v6997_v45  ;;  %v4063_v16 = vrot.slane %v3933_v52, %v7000_v46 }
 0x659   : > { %v4126_v28 = vadd.f32 %v4027_v13, %v3918_v6  ;;  %v4128_v29 = vadd.f32 %v4035_v15, %v3920_v25  ;;  %v3859_v13 = vrot.slane %v3725_v39, %v7006_v51  ;;  %v4055_v15 = vrot.slane %v3933_v52, %v6997_v45 }
 0x65a   : > { %v4067_v6 = vrot.slane %v3933_v52, %v7006_v51  ;;  %v4684_v52 = vld [vmem:[%s6539_s16 + $0x20] ss:$0 sm:$0xff] }
 0x65b   : > { %v4271_v33 = vcombine.low %v4125_v26, %v4126_v28  ;;  %v4272_v34 = vcombine.low %v4127_v14, %v4128_v29 }
 0x65d   : > { %v4293_v31 = vrot.slane %v4271_v33, %v6981_v20  ;;  %v4300_v36 = vrot.slane %v4272_v34, %v6981_v20 }
 0x65f   : > { %v4302_v38 = vcombine.low %v4293_v31, %v4300_v36 }
 0x661   : > { %v4316_v30 = vrot.slane %v4302_v38, %v6981_v20 }
 0x663   : > { %v4317_v49 = vcombine.low %v4309_v43, %v4316_v30 }
 0x665   : > { %4388 = vst [vmem:[%s6558_s20 + $0x10] sm:$0xff] %v4317_v49 }
 0x675   : > { %v3552_v59 = vpop.f32.mrb[24].mxu0  ;;  %v3593_v47 = vpop.f32.mrb[24].mxu1 }
 0x676   : > { %v3921_v37 = vmul.f32 %v3831_v53, %v3552_v59  ;;  %v3923_v62 = vmul.f32 %v3839_v54, %v3593_v47  ;;  %v3554_v41 = vpop.f32.mrb[25].mxu0  ;;  %v3595_v63 = vpop.f32.mrb[25].mxu1  ;;  %v4685_v54 = vld [vmem:[%s6541_s12 + $0x20] ss:$0 sm:$0xff] }
 0x677   : > { %v3922_v0 = vmul.f32 %v3835_v56, %v3554_v41  ;;  %v3924_v1 = vmul.f32 %v3843_v57, %v3595_v63  ;;  %v3556_v2 = vpop.f32.mrb[26].mxu0  ;;  %v3597_v55 = vpop.f32.mrb[26].mxu1 }
 0x678   : > { %v4129_v3 = vadd.f32 %v4039_v27, %v3921_v37  ;;  %v4131_v4 = vadd.f32 %v4047_v58, %v3923_v62  ;;  %v3557_v5 = vpop.f32.mrb[27].mxu0  ;;  %v3598_v22 = vpop.f32.mrb[27].mxu1 }
 0x679   : > { %v4130_v8 = vadd.f32 %v4043_v60, %v3922_v0  ;;  %v4132_v35 = vadd.f32 %v4051_v61, %v3924_v1 }
 0x67b   : > { %v4318_v9 = vcombine.low %v4129_v3, %v4130_v8  ;;  %v4319_v7 = vcombine.low %v4131_v4, %v4132_v35 }
 0x67d   : > { %v4328_v42 = vrot.slane %v4318_v9, %v6981_v20  ;;  %v4335_v40 = vrot.slane %v4319_v7, %v6981_v20 }
 0x67f   : > { %v4350_v10 = vcombine.low %v4328_v42, %v4335_v40 }
 0x681   : > { %v4358_v30 = vrot.slane %v4350_v10, %v6981_v20 }
 0x695   : > { %v3634_v17 = vpop.f32.mrb[28].mxu0  ;;  %v3675_v18 = vpop.f32.mrb[28].mxu1 }
 0x696   : > { %v3925_v25 = vmul.f32 %v3847_v44, %v3634_v17  ;;  %v3927_v23 = vmul.f32 %v3855_v11, %v3675_v18  ;;  %v3636_v24 = vpop.f32.mrb[29].mxu0  ;;  %v3677_v26 = vpop.f32.mrb[29].mxu1 }
 0x697   : > { %v3926_v14 = vmul.f32 %v3851_v12, %v3636_v24  ;;  %v3928_v32 = vmul.f32 %v3859_v13, %v3677_v26  ;;  %v3638_v48 = vpop.f32.mrb[30].mxu0  ;;  %v3679_v28 = vpop.f32.mrb[30].mxu1 }
 0x698   : > { %v4133_v29 = vadd.f32 %v4055_v15, %v3925_v25  ;;  %v4135_v45 = vadd.f32 %v4063_v16, %v3927_v23  ;;  %v3639_v46 = vpop.f32.mrb[31].mxu0  ;;  %v3680_v33 = vpop.f32.mrb[31].mxu1 }
 0x699   : > { %v4134_v34 = vadd.f32 %v4059_v19, %v3926_v14  ;;  %v4136_v31 = vadd.f32 %v4067_v6, %v3928_v32 }
 0x69b   : > { %v4320_v50 = vcombine.low %v4133_v29, %v4134_v34  ;;  %v4321_v36 = vcombine.low %v4135_v45, %v4136_v31 }
 0x69d   : > { %v4342_v51 = vrot.slane %v4320_v50, %v6981_v20  ;;  %v4349_v38 = vrot.slane %v4321_v36, %v6981_v20 }
 0x69f   : > { %v4351_v43 = vcombine.low %v4342_v51, %v4349_v38 }
 0x6a1   : > { %v4365_v49 = vrot.slane %v4351_v43, %v6981_v20 }
 0x6a3   : > { %v4366_v39 = vcombine.low %v4358_v30, %v4365_v49 }
 0x6a5   : > { %4389 = vst [vmem:[%s6558_s20 + $0x18] sm:$0xff] %v4366_v39 }
 0x6b5   : > { %v3716_v53 = vpop.f32.mrb[32].mxu0 }
 0x6b6   : > { %v3929_v56 = vmul.f32 %v4684_v52, %v3716_v53  ;;  %v5104_v57 = vpop.f32.mrb[33].mxu0 }
 0x6b7   : > { %v3719_v27 = vpop.f32.mrb[34].mxu0 }
 0x6b8   : > { %v4137_v58 = vadd.f32 %v4685_v54, %v3929_v56  ;;  %v5105_v59 = vpop.f32.mrb[35].mxu0 }
 0x6ba   : > { %v4373_v47 = vrot.slane %v4137_v58, %v6981_v20 }
 0x6bc   : > { %v4380_v60 = vrot.slane %v4373_v47, %v6981_v20 }
 0x6be   : > { %4394 = vst.msk [vmem:[%s6558_s20 + $0x20] sm:$0x1] %vm4392_vm2, %v4380_v60 }
 0x6bf PF: > { %p5394_p8 = scmp.eq.s32.totalorder %s6156_s17, 3  ;;  %s6048_s21 = smov [#allocation20]  }
 0x6c0   : > { %s4416_s8 = sshll.u32 %s6048_s21, 4  ;;  %s6049_s25 = smov [#allocation21]   ;;  %s4417_s8 = int_to_ptr.vmem [resolvable:$true] %s4416_s8 }
 0x6c1   : > { %s4427_s10 = sshll.u32 %s6049_s25, 4  ;;  %s5882_s0 = scalar_lea.vmem %s4417_s8, 16  ;;  %s7116_s10 = int_to_ptr.vmem [resolvable:$true] %s4427_s10 }
 0x6c2   : > { %p5883_p4 = scmp.ne.s32.totalorder %s4417_s8, %s5882_s0  ;;  %s5888_s16 = scalar_lea.vmem %s4417_s8, 32 }
 0x6c3   : > { %p5889_p2 = scmp.lt.s32.totalorder %s4417_s8, %s4417_s8  ;;  %p5890_p6 = scmp.lt.s32.totalorder %s5888_s16, %s5882_s0 }
 0x6c4   : > { %p5884_p12 = pnand %p5883_p4, %p5394_p8 }
 0x6c5   : > { %p5891_p0 = por %p5890_p6, %p5889_p2 }
 0x6c6   : > { %p5885_p9 = pneg %p5884_p12 }
 0x6c8   : > { %p5892_p11 = pnand %p5891_p0, %p5885_p9 }
 0x6ca   : > { %5895 = shalt.err (!%p5892_p11)
}
 0x6cb   : > { %s7291_s11 = sld [smem:[#allocation45_spill]] }
 0x6d1   : > { %s5896_s13 = scalar_lea.hbm %s7291_s11, 16 }
 0x6d2   : > { %p5897_p10 = scmp.ne.s32.totalorder %s7291_s11, %s5896_s13  ;;  %p5902_p5 = scmp.lt.u32.totalorder %s5896_s13, %s7291_s11 }
 0x6d4   : > { %p5898_p3 = pnand %p5897_p10, %p5394_p8 }
 0x6d6   : > { %p5899_p7 = pneg %p5898_p3 }
 0x6d8   : > { %p5904_p13 = pnand %p5902_p5, %p5899_p7 }
 0x6da   : > { %5907 = shalt.err (!%p5904_p13)
}
 0x6db   : > { %5342 = dma.vmem_to_hbm [thread:$0]  (%p5394_p8), %s4417_s8, 16, %s7291_s11, [#allocation5]  }
 0x6dc   : > { %s5908_s2 = scalar_lea.vmem %s7116_s10, 16  ;;  %s5914_s3 = scalar_lea.vmem %s7116_s10, 32 }
 0x6dd   : > { %p5909_p1 = scmp.ne.s32.totalorder %s7116_s10, %s5908_s2  ;;  %p5915_p9 = scmp.lt.s32.totalorder %s7116_s10, %s7116_s10 }
 0x6de   : > { %p5916_p2 = scmp.lt.s32.totalorder %s5914_s3, %s5908_s2 }
 0x6df   : > { %p5910_p4 = pnand %p5909_p1, %p5394_p8 }
 0x6e0   : > { %p5917_p6 = por %p5916_p2, %p5915_p9 }
 0x6e1   : > { %p5911_p12 = pneg %p5910_p4 }
 0x6e3   : > { %p5918_p0 = pnand %p5917_p6, %p5911_p12 }
 0x6e5   : > { %5921 = shalt.err (!%p5918_p0)
}
 0x6e6   : > { %s7292_s21 = sld [smem:[#allocation46_spill]] }
 0x6ec   : > { %s5922_s25 = scalar_lea.hbm %s7292_s21, 16 }
 0x6ed   : > { %p5923_p11 = scmp.ne.s32.totalorder %s7292_s21, %s5922_s25  ;;  %p5928_p7 = scmp.lt.u32.totalorder %s5922_s25, %s7292_s21 }
 0x6ef   : > { %p5924_p10 = pnand %p5923_p11, %p5394_p8 }
 0x6f1   : > { %p5925_p3 = pneg %p5924_p10 }
 0x6f3   : > { %p5930_p5 = pnand %p5928_p7, %p5925_p3 }
 0x6f5   : > { %5933 = shalt.err (!%p5930_p5)
}
 0x6f6   : > { %5344 = dma.vmem_to_hbm [thread:$0]  (%p5394_p8), %s7116_s10, 16, %s7292_s21, [#allocation22]  }
 0x6f7   : > { %5987 = dma.done.wait (%p5394_p8), [#allocation5], 16  }
 0x6f8   : > { %5989 = vsyncadd (%p5394_p8), [#allocation5], 4294967280 }
 0x6f9   : > { %5991 = dma.done.wait (%p5394_p8), [#allocation22], 16  }
 0x6fa   : > { %5993 = vsyncadd (%p5394_p8), [#allocation22], 4294967280 }
 0x6fb PF: > { %s7293_s25 = sld [smem:[#allocation31_spill]]  ;;  %s7294_s28 = smov %s6421_s26 }
 0x6fc   : > { %p35_p13 = scmp.ge.s32.totalorder %s6384_s19, 6   ;;  %s7295_s26 = smov %s6004_s27 }
 0x6fd   : > { %s7296_s27 = smov %s7294_s28  ;;  %s7297_s28 = smov %s6012_s29 }
 0x6fe   : > { %s7298_s29 = smov %s6016_s30  ;;  %s7299_s30 = smov %s6410_s23 }
 0x6ff   : > { %s7300_s14 = smov %s6384_s19  ;;  %37 = sbr.rel (!%p35_p13) target bundleno = 27 (0x1b), region = 201 }
 0x706   :  { %4454 = vsyncpa [#allocation4], 1 }
 0x707   :  { %4456 = vsyncpa [#allocation4 + $0x1], 1 }
 0x708   :  { %4457 = vsyncpa [#allocation7], 1 }
 0x709   :  { %4458 = vsyncpa [#allocation10], 1 }
 0x70a   :  { %4459 = vsyncpa [#allocation13], 1 }
 0x70b   :  { %4460 = vsyncpa [#allocation16], 1 }
 0x70c   :  { %4462 = vsyncpa [#allocation16 + $0x1], 1 }
 0x70d   :  { %4463 = vsyncpa [#allocation19], 1 }
 0x70e   :  { %4465 = vsyncpa [#allocation19 + $0x1], 1 }
 0x70f   :  { %4466 = vsyncpa [#allocation5], 1 }
 0x710   :  { %4468 = vsyncpa [#allocation5 + $0x1], 1 }
 0x711   :  { %4469 = vsyncpa [#allocation22], 1 }

</bundles_post_ra>
